<compile_context>
chip_gen: v5e
topology: v5e:2x2
jax: 0.10.0
libtpu: 0.0.40
codegen_flags: <defaults>
</compile_context>

<pallas_src>
import numpy as np

import jax
import jax.numpy as jnp
from jax.experimental import pallas as pl


# --------------------------- fused forward kernel ----------------------------
def _fused_forward_kernel(x_ref, wc_ref, bc_ref, w1_ref, b1_ref,
                          w2_ref, b2_ref, w3_ref, b3_ref, o_ref):
    # conv (exact, f32): valid conv written as a single dense MXU matmul whose
    # output columns are already in PyTorch NCHW-flatten order.
    a0 = jnp.dot(x_ref[...], wc_ref[...],
                 preferred_element_type=jnp.float32) + bc_ref[...]
    # fc1 -> tanh  (bf16 weights streamed from HBM, f32 accumulation)
    h1 = jnp.tanh(jnp.dot(a0.astype(w1_ref.dtype), w1_ref[...],
                          preferred_element_type=jnp.float32) + b1_ref[...])
    # fc2 -> tanh
    h2 = jnp.tanh(jnp.dot(h1.astype(w2_ref.dtype), w2_ref[...],
                          preferred_element_type=jnp.float32) + b2_ref[...])
    # fc3 (output padded to 128 lanes -> full-lane store; wrapper slices to 66)
    o_ref[...] = (jnp.dot(h2.astype(w3_ref.dtype), w3_ref[...],
                          preferred_element_type=jnp.float32)
                  + b3_ref[...]).astype(o_ref.dtype)


# ---------------------------------- model ------------------------------------
class CnnInF3fcPallas:
    """Pallas TPU port of cnn_InF_3fc(n_R, n_T, T, filt_size, num_channel)."""

    def __init__(self, n_R=4, n_T=8, T=8, filt_size=3, num_channel=8,
                 fc_dtype=jnp.bfloat16, key=None):
        if key is None:
            key = jax.random.PRNGKey(0)
        Cin, Cout = 3, num_channel
        H, W = n_R, T
        Ho, Wo = n_R - filt_size + 1, T - filt_size + 1
        d_in = Cin * H * W                     # flattened NCHW input features
        d_conv = Cout * Ho * Wo                # fc1 input features (NCHW flatten)
        d_out = 2 * n_R * n_T + 2              # true fc3 output width
        self.d_out = d_out
        self.n3_pad = ((d_out + 127) // 128) * 128

        ks = iter(jax.random.split(key, 8))

        def norm(shape, scale):
            return jax.random.normal(next(ks), shape, jnp.float32) * scale

        # ---- conv weights (PyTorch layout) -> exact dense conv matrix -------
        w_conv = np.asarray(norm((Cout, Cin, filt_size, filt_size),
                                 1.0 / np.sqrt(Cin * filt_size * filt_size)))
        b_conv = np.asarray(norm((Cout,), 0.05))
        M = np.zeros((d_in, d_conv), np.float32)
        for co in range(Cout):
            for ci in range(Cin):
                for dy in range(filt_size):
                    for dx in range(filt_size):
                        for ho in range(Ho):
                            for wo in range(Wo):
                                row = ci * H * W + (ho + dy) * W + (wo + dx)
                                col = co * Ho * Wo + ho * Wo + wo
                                M[row, col] = w_conv[co, ci, dy, dx]
        self.wc = jnp.asarray(M)                                    # (d_in, d_conv) f32
        self.bc = jnp.asarray(np.repeat(b_conv, Ho * Wo))[None, :]  # (1, d_conv)  f32

        # ---- FC weights: stored transposed (in, out), streamed as bf16 ------
        self.w1 = norm((d_conv, 1024), 1.0 / np.sqrt(d_conv)).astype(fc_dtype)
        self.b1 = norm((1024,), 0.02)[None, :]
        self.w2 = norm((1024, 1024), 1.0 / np.sqrt(1024)).astype(fc_dtype)
        self.b2 = norm((1024,), 0.02)[None, :]
        w3 = norm((1024, d_out), 1.0 / np.sqrt(1024))
        b3 = norm((d_out,), 0.02)
        pad = self.n3_pad - d_out
        self.w3 = jnp.pad(w3, ((0, 0), (0, pad))).astype(fc_dtype)  # (1024, 128)
        self.b3 = jnp.pad(b3, (0, pad))[None, :]                    # (1, 128) f32

    def forward(self, x_nchw):
        B = x_nchw.shape[0]
        # Row-major NCHW flatten of the input (free / view-like in XLA).
        x2d = x_nchw.reshape(B, -1).astype(jnp.float32)
        out_pad = pl.pallas_call(
            _fused_forward_kernel,
            out_shape=jax.ShapeDtypeStruct((B, self.n3_pad), jnp.float32),
        )(x2d, self.wc, self.bc, self.w1, self.b1, self.w2, self.b2,
          self.w3, self.b3)
        return out_pad[:, :self.d_out]

    __call__ = forward


# ---------------------- pure-jnp reference (same math) -----------------------
def _reference_forward(x2d, m):
    a0 = jnp.dot(x2d, m.wc, preferred_element_type=jnp.float32) + m.bc
    h1 = jnp.tanh(jnp.dot(a0.astype(m.w1.dtype), m.w1,
                          preferred_element_type=jnp.float32) + m.b1)
    h2 = jnp.tanh(jnp.dot(h1.astype(m.w2.dtype), m.w2,
                          preferred_element_type=jnp.float32) + m.b2)
    out = jnp.dot(h2.astype(m.w3.dtype), m.w3,
                  preferred_element_type=jnp.float32) + m.b3
    return out[:, :m.d_out]


if __name__ == "__main__":
    key = jax.random.PRNGKey(0)
    B = 2
    n_R, n_T, T, num_channel = 4, 8, 8, 8

    model = CnnInF3fcPallas(n_R=n_R, n_T=n_T, T=T, filt_size=3,
                            num_channel=num_channel, key=key)

    x = jax.random.normal(jax.random.fold_in(key, 123),
                          (B, 3, n_R, T), jnp.float32)

    fwd = jax.jit(model.forward)
    out = jax.block_until_ready(fwd(x))

    assert out.shape == (B, 2 * n_R * n_T + 2)
    assert out.dtype == jnp.float32

    ref = jax.block_until_ready(_reference_forward(x.reshape(B, -1), model))
    max_err = float(jnp.max(jnp.abs(out - ref)))
    assert max_err < 1e-2, f"mismatch vs reference: {max_err}"

    print("KERNEL_OK")
</pallas_src>

<mosaic_0001>
module attributes {stable_mosaic.version = 11 : i64} {
  func.func @_fused_forward_kernel(%arg0: memref<2x96xf32, #tpu.memory_space<vmem>>, %arg1: memref<96x96xf32, #tpu.memory_space<vmem>>, %arg2: memref<1x96xf32, #tpu.memory_space<vmem>>, %arg3: memref<96x1024xbf16, #tpu.memory_space<vmem>>, %arg4: memref<1x1024xf32, #tpu.memory_space<vmem>>, %arg5: memref<1024x1024xbf16, #tpu.memory_space<vmem>>, %arg6: memref<1x1024xf32, #tpu.memory_space<vmem>>, %arg7: memref<1024x128xbf16, #tpu.memory_space<vmem>>, %arg8: memref<1x128xf32, #tpu.memory_space<vmem>>, %arg9: memref<2x128xf32, #tpu.memory_space<vmem>>) attributes {dimension_semantics = [], scalar_prefetch = 0 : i64, scratch_operands = 0 : i64, tpu.core_type = #tpu.core_type<tc>} {
    %c0 = arith.constant 0 : index
    %c0_0 = arith.constant 0 : index
    %0 = vector.load %arg0[%c0, %c0_0] : memref<2x96xf32, #tpu.memory_space<vmem>>, vector<2x96xf32>
    %c0_1 = arith.constant 0 : index
    %c0_2 = arith.constant 0 : index
    %1 = vector.load %arg1[%c0_1, %c0_2] : memref<96x96xf32, #tpu.memory_space<vmem>>, vector<96x96xf32>
    %cst = arith.constant dense<0.000000e+00> : vector<2x96xf32>
    %2 = tpu.matmul %0, %1, %cst {dimension_numbers = #tpu.dot_dimension_numbers<[1], [0], [0], [1], [0, 0, 1, 1], [], []>} : vector<2x96xf32>, vector<96x96xf32>, vector<2x96xf32> -> vector<2x96xf32>
    %c0_3 = arith.constant 0 : index
    %c0_4 = arith.constant 0 : index
    %3 = vector.load %arg2[%c0_3, %c0_4] : memref<1x96xf32, #tpu.memory_space<vmem>>, vector<1x96xf32>
    %4 = vector.broadcast %3 : vector<1x96xf32> to vector<2x96xf32>
    %5 = arith.addf %2, %4 : vector<2x96xf32>
    %6 = arith.truncf %5 : vector<2x96xf32> to vector<2x96xbf16>
    %c0_5 = arith.constant 0 : index
    %c0_6 = arith.constant 0 : index
    %7 = vector.load %arg3[%c0_5, %c0_6] : memref<96x1024xbf16, #tpu.memory_space<vmem>>, vector<96x1024xbf16>
    %cst_7 = arith.constant dense<0.000000e+00> : vector<2x1024xf32>
    %8 = tpu.matmul %6, %7, %cst_7 {dimension_numbers = #tpu.dot_dimension_numbers<[1], [0], [0], [1], [0, 0, 1, 1], [], []>} : vector<2x96xbf16>, vector<96x1024xbf16>, vector<2x1024xf32> -> vector<2x1024xf32>
    %c0_8 = arith.constant 0 : index
    %c0_9 = arith.constant 0 : index
    %9 = vector.load %arg4[%c0_8, %c0_9] : memref<1x1024xf32, #tpu.memory_space<vmem>>, vector<1x1024xf32>
    %10 = vector.broadcast %9 : vector<1x1024xf32> to vector<2x1024xf32>
    %11 = arith.addf %8, %10 : vector<2x1024xf32>
    %12 = math.tanh %11 : vector<2x1024xf32>
    %13 = arith.truncf %12 : vector<2x1024xf32> to vector<2x1024xbf16>
    %c0_10 = arith.constant 0 : index
    %c0_11 = arith.constant 0 : index
    %14 = vector.load %arg5[%c0_10, %c0_11] : memref<1024x1024xbf16, #tpu.memory_space<vmem>>, vector<1024x1024xbf16>
    %cst_12 = arith.constant dense<0.000000e+00> : vector<2x1024xf32>
    %15 = tpu.matmul %13, %14, %cst_12 {dimension_numbers = #tpu.dot_dimension_numbers<[1], [0], [0], [1], [0, 0, 1, 1], [], []>} : vector<2x1024xbf16>, vector<1024x1024xbf16>, vector<2x1024xf32> -> vector<2x1024xf32>
    %c0_13 = arith.constant 0 : index
    %c0_14 = arith.constant 0 : index
    %16 = vector.load %arg6[%c0_13, %c0_14] : memref<1x1024xf32, #tpu.memory_space<vmem>>, vector<1x1024xf32>
    %17 = vector.broadcast %16 : vector<1x1024xf32> to vector<2x1024xf32>
    %18 = arith.addf %15, %17 : vector<2x1024xf32>
    %19 = math.tanh %18 : vector<2x1024xf32>
    %20 = arith.truncf %19 : vector<2x1024xf32> to vector<2x1024xbf16>
    %c0_15 = arith.constant 0 : index
    %c0_16 = arith.constant 0 : index
    %21 = vector.load %arg7[%c0_15, %c0_16] : memref<1024x128xbf16, #tpu.memory_space<vmem>>, vector<1024x128xbf16>
    %cst_17 = arith.constant dense<0.000000e+00> : vector<2x128xf32>
    %22 = tpu.matmul %20, %21, %cst_17 {dimension_numbers = #tpu.dot_dimension_numbers<[1], [0], [0], [1], [0, 0, 1, 1], [], []>} : vector<2x1024xbf16>, vector<1024x128xbf16>, vector<2x128xf32> -> vector<2x128xf32>
    %c0_18 = arith.constant 0 : index
    %c0_19 = arith.constant 0 : index
    %23 = vector.load %arg8[%c0_18, %c0_19] : memref<1x128xf32, #tpu.memory_space<vmem>>, vector<1x128xf32>
    %24 = vector.broadcast %23 : vector<1x128xf32> to vector<2x128xf32>
    %25 = arith.addf %22, %24 : vector<2x128xf32>
    %c0_20 = arith.constant 0 : index
    %c0_21 = arith.constant 0 : index
    %26 = vector.load %arg9[%c0_20, %c0_21] : memref<2x128xf32, #tpu.memory_space<vmem>>, vector<2x128xf32>
    tpu.vector_store %arg9[%c0_20, %c0_21], %25 {strides = array<i32>} : memref<2x128xf32, #tpu.memory_space<vmem>>, vector<2x128xf32>,
    return
  }
}

</mosaic_0001>

<bundles_post_ra>
// kernel: forward.1
= control target key start
LH: loop header
LB: loop body
LE: loop exit
PB: predicated region body
PF: predicated region fallthrough
CT: control target
= control target key end

     0   :  { %14 = vsyncpa [#allocation3], 0  ;;  %s8897_s0 = inlined_call_operand.vmem [shape: f32[2,96], index: 0, kind: input, shape index: {}]   ;;  %s8898_s1 = inlined_call_operand.hbm [shape: f32[96,96], index: 1, kind: input, shape index: {}]   ;;  %s8899_s2 = inlined_call_operand.hbm [shape: f32[1,96], index: 2, kind: input, shape index: {}]   ;;  %s8900_s3 = inlined_call_operand.hbm [shape: bf16[96,1024], index: 3, kind: input, shape index: {}]   ;;  %s8901_s4 = inlined_call_operand.hbm [shape: f32[1,1024], index: 4, kind: input, shape index: {}]   ;;  %s8902_s5 = inlined_call_operand.hbm [shape: bf16[1024,1024], index: 5, kind: input, shape index: {}]   ;;  %s8903_s6 = inlined_call_operand.hbm [shape: f32[1,1024], index: 6, kind: input, shape index: {}]   ;;  %s8904_s7 = inlined_call_operand.hbm [shape: bf16[1024,128], index: 7, kind: input, shape index: {}]   ;;  %s8905_s8 = inlined_call_operand.hbm [shape: f32[1,128], index: 8, kind: input, shape index: {}]   ;;  %s8906_s9 = inlined_call_operand.hbm [shape: f32[2,128], index: 9, kind: output, shape index: {}]  }
   0x1   :  { %15 = vsyncpa [#allocation6], 0 }
   0x2   :  { %16 = vsyncpa [#allocation9], 0 }
   0x3   :  { %17 = vsyncpa [#allocation12], 0 }
   0x4   :  { %18 = vsyncpa [#allocation15], 0  ;;  %s40_s11 = sshll.u32 %s8899_s2, 4  ;;  %s41_s11 = int_to_ptr.hbm [resolvable:$true] %s40_s11 }
   0x5   :  { %19 = vsyncpa [#allocation4], 0  ;;  %s8610_s12 = smov [#allocation5]   ;;  %s64_s16 = sshll.u32 %s8901_s4, 4  ;;  %s65_s16 = int_to_ptr.hbm [resolvable:$true] %s64_s16 }
   0x6   :  { %s42_s13 = sshll.u32 %s8610_s12, 4  ;;  %s8611_s17 = smov [#allocation8]   ;;  %s43_s13 = int_to_ptr.vmem [resolvable:$true] %s42_s13 }
   0x7   :  { %45 = dma.hbm_to_vmem [thread:$0]  %s41_s11, 16, %s43_s13, [#allocation6]  }
   0x8   :  { %s66_s18 = sshll.u32 %s8611_s17, 4  ;;  %s88_s21 = sshll.u32 %s8903_s6, 4  ;;  %s67_s18 = int_to_ptr.vmem [resolvable:$true] %s66_s18  ;;  %s89_s21 = int_to_ptr.hbm [resolvable:$true] %s88_s21 }
   0x9   :  { %69 = dma.hbm_to_vmem [thread:$0]  %s65_s16, 128, %s67_s18, [#allocation9]  }
   0xa   :  { %s26_s23 = sshll.u32 %s8898_s1, 4  ;;  %s8612_s24 = smov [#allocation11]   ;;  %s27_s23 = int_to_ptr.hbm [resolvable:$true] %s26_s23 }
   0xb   :  { %s90_s25 = sshll.u32 %s8612_s24, 4  ;;  %s8613_s4 = smov [#allocation2]   ;;  %s91_s25 = int_to_ptr.vmem [resolvable:$true] %s90_s25 }
   0xc   :  { %93 = dma.hbm_to_vmem [thread:$0]  %s89_s21, 128, %s91_s25, [#allocation12]  }
   0xd   :  { %s28_s26 = sshll.u32 %s8613_s4, 4  ;;  %s8614_s27 = smov 128   ;;  %s29_s26 = int_to_ptr.vmem [resolvable:$true] %s28_s26 }
   0xe   :  { %s8615_s28 = smov 8   ;;  %s50_s30 = sshll.u32 %s8900_s3, 4  ;;  %s51_s30 = int_to_ptr.hbm [resolvable:$true] %s50_s30 }
   0xf   :  { %34 = dma.hbm_to_vmem [thread:$0]  %s27_s23, 1536, %s29_s26, [#allocation3], %s8614_s27, %s8614_s27, %s8615_s28  }
  0x10   :  { %s8616_s10 = smov [#allocation7]   ;;  %s74_s13 = sshll.u32 %s8902_s5, 4  ;;  %s75_s13 = int_to_ptr.hbm [resolvable:$true] %s74_s13 }
  0x11   :  { %s52_s11 = sshll.u32 %s8616_s10, 4  ;;  %s8617_s14 = smov 512   ;;  %s53_s11 = int_to_ptr.vmem [resolvable:$true] %s52_s11 }
  0x12   :  { %s8618_s15 = smov 32   ;;  %s8619_s16 = smov [#allocation10]  }
  0x13   :  { %58 = dma.hbm_to_vmem [thread:$0]  %s51_s30, 6144, %s53_s11, [#allocation6], %s8617_s14, %s8617_s14, %s8618_s15  }
  0x14   :  { %s76_s17 = sshll.u32 %s8619_s16, 4  ;;  %s98_s20 = sshll.u32 %s8904_s7, 4  ;;  %s77_s17 = int_to_ptr.vmem [resolvable:$true] %s76_s17  ;;  %s99_s20 = int_to_ptr.hbm [resolvable:$true] %s98_s20 }
  0x15   :  { %82 = dma.hbm_to_vmem [thread:$0]  %s75_s13, 65536, %s77_s17, [#allocation9], %s8617_s14, %s8617_s14, %s8618_s15  }
  0x16   :  { %s8620_s3 = smov [#allocation13]   ;;  %s112_s5 = sshll.u32 %s8905_s8, 4  ;;  %s113_s5 = int_to_ptr.hbm [resolvable:$true] %s112_s5 }
  0x17   :  { %s100_s21 = sshll.u32 %s8620_s3, 4  ;;  %s8621_s23 = smov 64   ;;  %s101_s21 = int_to_ptr.vmem [resolvable:$true] %s100_s21 }
  0x18   :  { %s8622_s24 = smov 4   ;;  %s8623_s25 = smov [#allocation14]  }
  0x19   :  { %106 = dma.hbm_to_vmem [thread:$0]  %s99_s20, 8192, %s101_s21, [#allocation12], %s8621_s23, %s8621_s23, %s8622_s24  }
  0x1a   :  { %s114_s4 = sshll.u32 %s8623_s25, 4  ;;  %s115_s4 = int_to_ptr.vmem [resolvable:$true] %s114_s4 }
  0x1b   :  { %117 = dma.hbm_to_vmem [thread:$0]  %s113_s5, 16, %s115_s4, [#allocation15]  }
  0x1c   :  { %8598 = dma.done.wait [#allocation3], 1536  }
  0x1d   :  { %8599 = vsyncadd [#allocation3], 4294965760 }
  0x1e   :  { %8600 = dma.done.wait [#allocation6], 6160  }
  0x1f   :  { %8601 = vsyncadd [#allocation6], 4294961136 }
  0x20   :  { %8602 = dma.done.wait [#allocation9], 65664  }
  0x21   :  { %8603 = vsyncadd [#allocation9], 4294901632 }
  0x22   :  { %8604 = dma.done.wait [#allocation12], 8320  }
  0x23   :  { %8605 = vsyncadd [#allocation12], 4294958976 }
  0x24   :  { %8606 = dma.done.wait [#allocation15], 16  }
  0x25   :  { %8607 = vsyncadd [#allocation15], 4294967280  ;;  %v163_v0 = vld [vmem:[#allocation2 + $0x58] sm:$0xff]  ;;  %v162_v1 = vld [vmem:[#allocation2 + $0x50] sm:$0xff]  ;;  %vm168_vm0 = vcmask 785408   ;;  %s5188_s29 = sshll.u32 %s8906_s9, 4  ;;  %s5189_s29 = int_to_ptr.hbm [resolvable:$true] %s5188_s29 }
  0x26   :  { %176 = vmatpush.msra.mxu0 %v163_v0  ;;  %v161_v2 = vld [vmem:[#allocation2 + $0x48] sm:$0xff]  ;;  %v160_v3 = vld [vmem:[#allocation2 + $0x40] sm:$0xff]  ;;  %v159_v10 = vld [vmem:[#allocation2 + $0x38] sm:$0xff] }
  0x27   :  { %v5365_v4 = vld [vmem:[#allocation7 + $0x140] sm:$0xf]  ;;  %v7747_v7 = vld [vmem:[#allocation7 + $0x144] sm:$0xf]  ;;  %v5373_v9 = vld [vmem:[#allocation7 + $0x148] sm:$0xf] }
  0x28   :  { %177 = vmatpush.msra.mxu0 %v162_v1  ;;  %v7751_v5 = vld [vmem:[#allocation7 + $0x15c] sm:$0xf0]  ;;  %v5367_v8 = vld [vmem:[#allocation7 + $0x160] sm:$0xf0]  ;;  %v158_v11 = vld [vmem:[#allocation2 + $0x30] sm:$0xff] }
  0x29   :  { %v5366_v6 = vor.u32 %v7751_v5, %v5365_v4  ;;  %v5370_v12 = vor.u32 %v7747_v7, %v5367_v8  ;;  %v7752_v13 = vld [vmem:[#allocation7 + $0x164] sm:$0xf0]  ;;  %v5333_v15 = vld [vmem:[#allocation7 + $0x100] sm:$0xf]  ;;  %v7739_v17 = vld [vmem:[#allocation7 + $0x104] sm:$0xf] }
  0x2a   :  { %178 = vmatpush.msra.mxu0 %v161_v2  ;;  %v5374_v14 = vor.u32 %v7752_v13, %v5373_v9  ;;  %v7743_v16 = vld [vmem:[#allocation7 + $0x11c] sm:$0xf0]  ;;  %v5335_v19 = vld [vmem:[#allocation7 + $0x120] sm:$0xf0]  ;;  %v5341_v20 = vld [vmem:[#allocation7 + $0x108] sm:$0xf] }
  0x2b   :  { %504 = vmatpush.bf16.msra.mxu1 %v5366_v6  ;;  %517 = vmatpush.bf16.msra.mxu2 %v5370_v12  ;;  %v5334_v18 = vor.u32 %v7743_v16, %v5333_v15  ;;  %v7744_v21 = vld [vmem:[#allocation7 + $0x124] sm:$0xf0]  ;;  %v5338_v23 = vor.u32 %v7739_v17, %v5335_v19  ;;  %v5301_v25 = vld [vmem:[#allocation7 + $0xc0] sm:$0xf]  ;;  %v7731_v27 = vld [vmem:[#allocation7 + $0xc4] sm:$0xf] }
  0x2c   :  { %179 = vmatpush.msra.mxu0 %v160_v3  ;;  %v157_v22 = vld [vmem:[#allocation2 + $0x28] sm:$0xff]  ;;  %530 = vmatpush.bf16.msra.mxu3 %v5374_v14  ;;  %v5342_v24 = vor.u32 %v7744_v21, %v5341_v20  ;;  %v7735_v26 = vld [vmem:[#allocation7 + $0xdc] sm:$0xf0]  ;;  %v155_v39 = vld [vmem:[#allocation2 + $0x18] sm:$0xff] }
  0x2d   :  { %v5303_v28 = vld [vmem:[#allocation7 + $0xe0] sm:$0xf0]  ;;  %v5302_v29 = vor.u32 %v7735_v26, %v5301_v25  ;;  %v5309_v30 = vld [vmem:[#allocation7 + $0xc8] sm:$0xf]  ;;  %v5269_v34 = vld [vmem:[#allocation7 + $0x80] sm:$0xf] }
  0x2e   :  { %180 = vmatpush.msra.mxu0 %v159_v10  ;;  %v7736_v31 = vld [vmem:[#allocation7 + $0xe4] sm:$0xf0]  ;;  %v156_v32 = vld [vmem:[#allocation2 + $0x20] sm:$0xff]  ;;  %v5306_v33 = vor.u32 %v7731_v27, %v5303_v28  ;;  %v154_v42 = vld [vmem:[#allocation2 + $0x10] sm:$0xff] }
  0x2f   :  { %505 = vmatpush.bf16.msra.mxu1 %v5334_v18  ;;  %518 = vmatpush.bf16.msra.mxu2 %v5338_v23  ;;  %v7727_v35 = vld [vmem:[#allocation7 + $0x9c] sm:$0xf0]  ;;  %v5310_v36 = vor.u32 %v7736_v31, %v5309_v30  ;;  %v7723_v37 = vld [vmem:[#allocation7 + $0x84] sm:$0xf]  ;;  %v5277_v40 = vld [vmem:[#allocation7 + $0x88] sm:$0xf] }
  0x30   :  { %181 = vmatpush.msra.mxu0 %v158_v11  ;;  %531 = vmatpush.bf16.msra.mxu3 %v5342_v24  ;;  %v5271_v38 = vld [vmem:[#allocation7 + $0xa0] sm:$0xf0]  ;;  %v7728_v41 = vld [vmem:[#allocation7 + $0xa4] sm:$0xf0]  ;;  %v5270_v43 = vor.u32 %v7727_v35, %v5269_v34  ;;  %v5237_v46 = vld [vmem:[#allocation7 + $0x40] sm:$0xf] }
  0x31   :  { %v153_v44 = vld [vmem:[#allocation2 + $0x8] sm:$0xff]  ;;  %v5274_v45 = vor.u32 %v7723_v37, %v5271_v38  ;;  %v7719_v47 = vld [vmem:[#allocation7 + $0x5c] sm:$0xf0]  ;;  %v5278_v49 = vor.u32 %v7728_v41, %v5277_v40  ;;  %v151_v56 = vld [vmem:[%s8897_s0] sm:$0x3]  ;;  %s8624_s0 = smov [#allocation16]  }
  0x32   :  { %182 = vmatpush.msra.mxu0 %v157_v22  ;;  %v7748_v48 = vld [vmem:[#allocation7 + $0x14c] sm:$0xf]  ;;  %v7715_v50 = vld [vmem:[#allocation7 + $0x44] sm:$0xf]  ;;  %v5245_v54 = vld [vmem:[#allocation7 + $0x48] sm:$0xf]  ;;  %v5238_v57 = vor.u32 %v7719_v47, %v5237_v46 }
  0x33   :  { %506 = vmatpush.bf16.msra.mxu1 %v5302_v29  ;;  %519 = vmatpush.bf16.msra.mxu2 %v5306_v33  ;;  %v5239_v51 = vld [vmem:[#allocation7 + $0x60] sm:$0xf0]  ;;  %v5375_v53 = vld [vmem:[#allocation7 + $0x168] sm:$0xf0]  ;;  %v7720_v55 = vld [vmem:[#allocation7 + $0x64] sm:$0xf0] }
  0x34   :  { %183 = vmatpush.msra.mxu0 %v156_v32  ;;  %532 = vmatpush.bf16.msra.mxu3 %v5310_v36  ;;  %v152_v52 = vld [vmem:[#allocation2] sm:$0xff]  ;;  %v7740_v60 = vld [vmem:[#allocation7 + $0x10c] sm:$0xf]  ;;  %v5242_v62 = vor.u32 %v7715_v50, %v5239_v51  ;;  %v5213_v1 = vld [vmem:[#allocation7 + $0x8] sm:$0xf]  ;;  %v5378_v2 = vor.u32 %v7748_v48, %v5375_v53  ;;  %v5246_v3 = vor.u32 %v7720_v55, %v5245_v54  ;;  %s5186_s26 = sshll.u32 %s8624_s0, 4  ;;  %s5187_s26 = int_to_ptr.vmem [resolvable:$true] %s5186_s26 }
  0x35   :  { %v5205_v58 = vld [vmem:[#allocation7] sm:$0xf]  ;;  %v5343_v61 = vld [vmem:[#allocation7 + $0x128] sm:$0xf0]  ;;  %v7707_v63 = vld [vmem:[#allocation7 + $0x4] sm:$0xf] }
  0x36   :  { %184 = vmatpush.msra.mxu0 %v155_v39  ;;  %v7711_v59 = vld [vmem:[#allocation7 + $0x1c] sm:$0xf0]  ;;  %v5207_v0 = vld [vmem:[#allocation7 + $0x20] sm:$0xf0]  ;;  %v7712_v4 = vld [vmem:[#allocation7 + $0x24] sm:$0xf0]  ;;  %v5346_v14 = vor.u32 %v7740_v60, %v5343_v61 }
  0x37   :  { %507 = vmatpush.bf16.msra.mxu1 %v5270_v43  ;;  %520 = vmatpush.bf16.msra.mxu2 %v5274_v45  ;;  %v5381_v5 = vld [vmem:[#allocation7 + $0x150] sm:$0xf]  ;;  %v7749_v7 = vld [vmem:[#allocation7 + $0x154] sm:$0xf]  ;;  %v5389_v9 = vld [vmem:[#allocation7 + $0x158] sm:$0xf]  ;;  %v5206_v10 = vor.u32 %v7711_v59, %v5205_v58  ;;  %v5210_v12 = vor.u32 %v7707_v63, %v5207_v0  ;;  %v5214_v15 = vor.u32 %v7712_v4, %v5213_v1 }
  0x38   :  { %185 = vmatpush.msra.mxu0 %v154_v42  ;;  %533 = vmatpush.bf16.msra.mxu3 %v5278_v49  ;;  %v7753_v6 = vld [vmem:[#allocation7 + $0x16c] sm:$0xf0]  ;;  %v5383_v8 = vld [vmem:[#allocation7 + $0x170] sm:$0xf0]  ;;  %v7754_v11 = vld [vmem:[#allocation7 + $0x174] sm:$0xf0] }
  0x39   :  { %v5382_v13 = vor.u32 %v7753_v6, %v5381_v5  ;;  %v7732_v16 = vld [vmem:[#allocation7 + $0xcc] sm:$0xf]  ;;  %v5386_v18 = vor.u32 %v7749_v7, %v5383_v8  ;;  %v5390_v19 = vor.u32 %v7754_v11, %v5389_v9  ;;  %v7750_v29 = vld [vmem:[#allocation7 + $0x15c] sm:$0xf]  ;;  %v5349_v33 = vld [vmem:[#allocation7 + $0x110] sm:$0xf] }
  0x3a   :  { %186 = vmatpush.msra.mxu0 %v153_v44  ;;  %v5311_v17 = vld [vmem:[#allocation7 + $0xe8] sm:$0xf0]  ;;  %v5391_v30 = vld [vmem:[#allocation7 + $0x178] sm:$0xf0]  ;;  %v7745_v34 = vld [vmem:[#allocation7 + $0x12c] sm:$0xf0] }
  0x3b   :  { %508 = vmatpush.bf16.msra.mxu1 %v5238_v57  ;;  %521 = vmatpush.bf16.msra.mxu2 %v5242_v62  ;;  %v5314_v20 = vor.u32 %v7732_v16, %v5311_v17  ;;  %v7724_v21 = vld [vmem:[#allocation7 + $0x8c] sm:$0xf]  ;;  %v5394_v32 = vor.u32 %v7750_v29, %v5391_v30  ;;  %v7741_v35 = vld [vmem:[#allocation7 + $0x114] sm:$0xf]  ;;  %v5350_v36 = vor.u32 %v7745_v34, %v5349_v33  ;;  %v5357_v38 = vld [vmem:[#allocation7 + $0x118] sm:$0xf] }
  0x3c   :  { %187 = vmatpush.msra.mxu0 %v152_v52  ;;  %534 = vmatpush.bf16.msra.mxu3 %v5246_v3  ;;  %v5279_v22 = vld [vmem:[#allocation7 + $0xa8] sm:$0xf0]  ;;  %v5351_v37 = vld [vmem:[#allocation7 + $0x130] sm:$0xf0]  ;;  %v7746_v39 = vld [vmem:[#allocation7 + $0x134] sm:$0xf0] }
  0x3d   :  { %5202 = vmatmul.msk.f32.vlgmr.msra.gmra.mxu0 %vm168_vm0, %v151_v56  ;;  %v5282_v23 = vor.u32 %v7724_v21, %v5279_v22  ;;  %v7716_v24 = vld [vmem:[#allocation7 + $0x4c] sm:$0xf]  ;;  %v5354_v40 = vor.u32 %v7741_v35, %v5351_v37  ;;  %v5358_v41 = vor.u32 %v7746_v39, %v5357_v38  ;;  %v7742_v42 = vld [vmem:[#allocation7 + $0x11c] sm:$0xf]  ;;  %v5317_v45 = vld [vmem:[#allocation7 + $0xd0] sm:$0xf] }
  0x3e   :  { %543 = vmatpush.bf16.msrb.mxu0 %v5378_v2  ;;  %v5247_v25 = vld [vmem:[#allocation7 + $0x68] sm:$0xf0]  ;;  %v5359_v43 = vld [vmem:[#allocation7 + $0x138] sm:$0xf0]  ;;  %v7737_v46 = vld [vmem:[#allocation7 + $0xec] sm:$0xf0] }
  0x3f   :  { %509 = vmatpush.bf16.msra.mxu1 %v5206_v10  ;;  %522 = vmatpush.bf16.msra.mxu2 %v5210_v12  ;;  %v5250_v26 = vor.u32 %v7716_v24, %v5247_v25  ;;  %v7708_v27 = vld [vmem:[#allocation7 + $0xc] sm:$0xf]  ;;  %v5362_v44 = vor.u32 %v7742_v42, %v5359_v43  ;;  %v7733_v47 = vld [vmem:[#allocation7 + $0xd4] sm:$0xf]  ;;  %v5318_v48 = vor.u32 %v7737_v46, %v5317_v45  ;;  %v5325_v50 = vld [vmem:[#allocation7 + $0xd8] sm:$0xf] }
  0x40   :  { %535 = vmatpush.bf16.msra.mxu3 %v5214_v15  ;;  %v5215_v28 = vld [vmem:[#allocation7 + $0x28] sm:$0xf0]  ;;  %v5319_v49 = vld [vmem:[#allocation7 + $0xf0] sm:$0xf0]  ;;  %v7738_v51 = vld [vmem:[#allocation7 + $0xf4] sm:$0xf0] }
  0x41   :  { %v5218_v31 = vor.u32 %v7708_v27, %v5215_v28  ;;  %v5322_v52 = vor.u32 %v7733_v47, %v5319_v49  ;;  %v5326_v53 = vor.u32 %v7738_v51, %v5325_v50  ;;  %v7734_v54 = vld [vmem:[#allocation7 + $0xdc] sm:$0xf]  ;;  %v5285_v56 = vld [vmem:[#allocation7 + $0x90] sm:$0xf]  ;;  %v7725_v59 = vld [vmem:[#allocation7 + $0x94] sm:$0xf] }
  0x42   :  { %544 = vmatpush.bf16.msrb.mxu0 %v5346_v14  ;;  %v5327_v55 = vld [vmem:[#allocation7 + $0xf8] sm:$0xf0]  ;;  %v7729_v58 = vld [vmem:[#allocation7 + $0xac] sm:$0xf0]  ;;  %v5287_v60 = vld [vmem:[#allocation7 + $0xb0] sm:$0xf0] }
  0x43   :  { %556 = vmatpush.bf16.msrb.mxu1 %v5382_v13  ;;  %569 = vmatpush.bf16.msrb.mxu2 %v5386_v18  ;;  %v5330_v57 = vor.u32 %v7734_v54, %v5327_v55  ;;  %v5286_v61 = vor.u32 %v7729_v58, %v5285_v56  ;;  %v5290_v62 = vor.u32 %v7725_v59, %v5287_v60  ;;  %v5293_v63 = vld [vmem:[#allocation7 + $0x98] sm:$0xf]  ;;  %v7726_v1 = vld [vmem:[#allocation7 + $0x9c] sm:$0xf]  ;;  %v5253_v4 = vld [vmem:[#allocation7 + $0x50] sm:$0xf] }
  0x44   :  { %582 = vmatpush.bf16.msrb.mxu3 %v5390_v19  ;;  %v7730_v0 = vld [vmem:[#allocation7 + $0xb4] sm:$0xf0]  ;;  %v5295_v3 = vld [vmem:[#allocation7 + $0xb8] sm:$0xf0]  ;;  %v7721_v5 = vld [vmem:[#allocation7 + $0x6c] sm:$0xf0] }
  0x45   :  { %v5294_v2 = vor.u32 %v7730_v0, %v5293_v63  ;;  %v5298_v6 = vor.u32 %v7726_v1, %v5295_v3  ;;  %v7717_v7 = vld [vmem:[#allocation7 + $0x54] sm:$0xf]  ;;  %v5261_v9 = vld [vmem:[#allocation7 + $0x58] sm:$0xf]  ;;  %v5254_v10 = vor.u32 %v7721_v5, %v5253_v4  ;;  %v7718_v12 = vld [vmem:[#allocation7 + $0x5c] sm:$0xf] }
  0x46   :  { %545 = vmatpush.bf16.msrb.mxu0 %v5314_v20  ;;  %v5255_v8 = vld [vmem:[#allocation7 + $0x70] sm:$0xf0]  ;;  %v7722_v11 = vld [vmem:[#allocation7 + $0x74] sm:$0xf0]  ;;  %v5263_v13 = vld [vmem:[#allocation7 + $0x78] sm:$0xf0] }
  0x47   :  { %557 = vmatpush.bf16.msrb.mxu1 %v5350_v36  ;;  %570 = vmatpush.bf16.msrb.mxu2 %v5354_v40  ;;  %v5258_v14 = vor.u32 %v7717_v7, %v5255_v8  ;;  %v5262_v15 = vor.u32 %v7722_v11, %v5261_v9  ;;  %v5221_v16 = vld [vmem:[#allocation7 + $0x10] sm:$0xf]  ;;  %v7709_v18 = vld [vmem:[#allocation7 + $0x14] sm:$0xf]  ;;  %v5266_v19 = vor.u32 %v7718_v12, %v5263_v13  ;;  %v5229_v21 = vld [vmem:[#allocation7 + $0x18] sm:$0xf] }
  0x48   :  { %583 = vmatpush.bf16.msrb.mxu3 %v5358_v41  ;;  %v7713_v17 = vld [vmem:[#allocation7 + $0x2c] sm:$0xf0]  ;;  %v5223_v20 = vld [vmem:[#allocation7 + $0x30] sm:$0xf0]  ;;  %v7714_v22 = vld [vmem:[#allocation7 + $0x34] sm:$0xf0] }
  0x49   :  { %v5231_v24 = vld [vmem:[#allocation7 + $0x38] sm:$0xf0]  ;;  %v5222_v25 = vor.u32 %v7713_v17, %v5221_v16  ;;  %v5230_v27 = vor.u32 %v7714_v22, %v5229_v21  ;;  %v5629_v30 = vld [vmem:[#allocation10 + $0x1c0] sm:$0xf] }
  0x4a   :  { %546 = vmatpush.bf16.msrb.mxu0 %v5282_v23  ;;  %v7710_v23 = vld [vmem:[#allocation7 + $0x1c] sm:$0xf]  ;;  %v6397_v33 = vld [vmem:[#allocation10 + $0x7c0] sm:$0xf] }
  0x4b   :  { %558 = vmatpush.bf16.msrb.mxu1 %v5318_v48  ;;  %571 = vmatpush.bf16.msrb.mxu2 %v5322_v52  ;;  %v5234_v28 = vor.u32 %v7710_v23, %v5231_v24  ;;  %v8346_v29 = vld [vmem:[#allocation5] ss:$0 sm:$0xff]  ;;  %v8007_v34 = vld [vmem:[#allocation10 + $0x7dc] sm:$0xf0] }
  0x4c   :  { %584 = vmatpush.bf16.msrb.mxu3 %v5326_v53  ;;  %v5885_v35 = vld [vmem:[#allocation10 + $0x3c0] sm:$0xf]  ;;  %v6398_v42 = vor.u32 %v8007_v34, %v6397_v33 }
  0x4d   :  { %v7879_v37 = vld [vmem:[#allocation10 + $0x3dc] sm:$0xf0] }
  0x4e   :  { %547 = vmatpush.bf16.msrb.mxu0 %v5250_v26  ;;  %v5226_v26 = vor.u32 %v7709_v18, %v5223_v20  ;;  %v6141_v38 = vld [vmem:[#allocation10 + $0x5c0] sm:$0xf]  ;;  %v5886_v47 = vor.u32 %v7879_v37, %v5885_v35 }
  0x4f   :  { %559 = vmatpush.bf16.msrb.mxu1 %v5286_v61  ;;  %572 = vmatpush.bf16.msrb.mxu2 %v5290_v62  ;;  %v7943_v39 = vld [vmem:[#allocation10 + $0x5dc] sm:$0xf0] }
  0x50   :  { %585 = vmatpush.bf16.msrb.mxu3 %v5294_v2  ;;  %v5597_v43 = vld [vmem:[#allocation10 + $0x180] sm:$0xf]  ;;  %v6142_v48 = vor.u32 %v7943_v39, %v6141_v38 }
  0x51   :  { %v6365_v45 = vld [vmem:[#allocation10 + $0x780] sm:$0xf] }
  0x52   :  { %548 = vmatpush.bf16.msrb.mxu0 %v5218_v31  ;;  %v7815_v31 = vld [vmem:[#allocation10 + $0x1dc] sm:$0xf0] }
  0x53   :  { %560 = vmatpush.bf16.msrb.mxu1 %v5254_v10  ;;  %573 = vmatpush.bf16.msrb.mxu2 %v5258_v14  ;;  %v5630_v41 = vor.u32 %v7815_v31, %v5629_v30  ;;  %v7999_v46 = vld [vmem:[#allocation10 + $0x79c] sm:$0xf0] }
  0x54   :  { %586 = vmatpush.bf16.msrb.mxu3 %v5262_v15  ;;  %v5853_v49 = vld [vmem:[#allocation10 + $0x380] sm:$0xf]  ;;  %v6366_v54 = vor.u32 %v7999_v46, %v6365_v45 }
  0x55   :  { %v7871_v50 = vld [vmem:[#allocation10 + $0x39c] sm:$0xf0] }
  0x56   :  { %595 = vmatpush.bf16.msra.mxu0 %v5394_v32  ;;  %v6109_v51 = vld [vmem:[#allocation10 + $0x580] sm:$0xf]  ;;  %v5854_v59 = vor.u32 %v7871_v50, %v5853_v49 }
  0x57   :  { %561 = vmatpush.bf16.msrb.mxu1 %v5222_v25  ;;  %574 = vmatpush.bf16.msrb.mxu2 %v5226_v26  ;;  %v7935_v52 = vld [vmem:[#allocation10 + $0x59c] sm:$0xf0] }
  0x58   :  { %587 = vmatpush.bf16.msrb.mxu3 %v5230_v27  ;;  %v5565_v55 = vld [vmem:[#allocation10 + $0x140] sm:$0xf]  ;;  %v6110_v60 = vor.u32 %v7935_v52, %v6109_v51 }
  0x59   :  { %v7799_v56 = vld [vmem:[#allocation10 + $0x15c] sm:$0xf0] }
  0x5a   :  { %596 = vmatpush.bf16.msra.mxu0 %v5362_v44  ;;  %v7807_v44 = vld [vmem:[#allocation10 + $0x19c] sm:$0xf0]  ;;  %v5566_v1 = vor.u32 %v7799_v56, %v5565_v55 }
  0x5b   :  { %v5598_v53 = vor.u32 %v7807_v44, %v5597_v43  ;;  %v7991_v58 = vld [vmem:[#allocation10 + $0x75c] sm:$0xf0] }
  0x5c   :  { %v5821_v61 = vld [vmem:[#allocation10 + $0x340] sm:$0xf] }
  0x5d   :  { %v7863_v62 = vld [vmem:[#allocation10 + $0x35c] sm:$0xf0] }
  0x5e   :  { %597 = vmatpush.bf16.msra.mxu0 %v5330_v57  ;;  %v6333_v57 = vld [vmem:[#allocation10 + $0x740] sm:$0xf]  ;;  %v5822_v7 = vor.u32 %v7863_v62, %v5821_v61 }
  0x5f   :  { %v6077_v63 = vld [vmem:[#allocation10 + $0x540] sm:$0xf]  ;;  %v6334_v2 = vor.u32 %v7991_v58, %v6333_v57 }
  0x60   :  { %v7927_v0 = vld [vmem:[#allocation10 + $0x55c] sm:$0xf0] }
  0x61   :  { %v5533_v3 = vld [vmem:[#allocation10 + $0x100] sm:$0xf]  ;;  %v6078_v8 = vor.u32 %v7927_v0, %v6077_v63 }
  0x62   :  { %598 = vmatpush.bf16.msra.mxu0 %v5298_v6  ;;  %v7791_v4 = vld [vmem:[#allocation10 + $0x11c] sm:$0xf0] }
  0x63   :  { %v6301_v5 = vld [vmem:[#allocation10 + $0x700] sm:$0xf]  ;;  %v5534_v13 = vor.u32 %v7791_v4, %v5533_v3 }
  0x64   :  { %v7983_v6 = vld [vmem:[#allocation10 + $0x71c] sm:$0xf0] }
  0x65   :  { %v5789_v9 = vld [vmem:[#allocation10 + $0x300] sm:$0xf]  ;;  %v6302_v14 = vor.u32 %v7983_v6, %v6301_v5 }
  0x66   :  { %599 = vmatpush.bf16.msra.mxu0 %v5266_v19  ;;  %v7855_v10 = vld [vmem:[#allocation10 + $0x31c] sm:$0xf0] }
  0x67   :  { %v6045_v11 = vld [vmem:[#allocation10 + $0x500] sm:$0xf]  ;;  %v5790_v19 = vor.u32 %v7855_v10, %v5789_v9 }
  0x68   :  { %v7919_v12 = vld [vmem:[#allocation10 + $0x51c] sm:$0xf0] }
  0x69   :  { %v5501_v15 = vld [vmem:[#allocation10 + $0xc0] sm:$0xf]  ;;  %v6046_v20 = vor.u32 %v7919_v12, %v6045_v11 }
  0x6a   :  { %600 = vmatpush.bf16.msra.mxu0 %v5234_v28  ;;  %v7783_v16 = vld [vmem:[#allocation10 + $0xdc] sm:$0xf0] }
  0x6b   :  { %v6269_v17 = vld [vmem:[#allocation10 + $0x6c0] sm:$0xf]  ;;  %v5502_v25 = vor.u32 %v7783_v16, %v5501_v15 }
  0x6c   :  { %v7975_v18 = vld [vmem:[#allocation10 + $0x6dc] sm:$0xf0] }
  0x6d   :  { %v5757_v21 = vld [vmem:[#allocation10 + $0x2c0] sm:$0xf]  ;;  %v6270_v26 = vor.u32 %v7975_v18, %v6269_v17 }
  0x6e   :  { %v7847_v22 = vld [vmem:[#allocation10 + $0x2dc] sm:$0xf0] }
  0x6f   :  { %v6013_v23 = vld [vmem:[#allocation10 + $0x4c0] sm:$0xf]  ;;  %v5758_v31 = vor.u32 %v7847_v22, %v5757_v21 }
  0x70   :  { %v7911_v24 = vld [vmem:[#allocation10 + $0x4dc] sm:$0xf0] }
  0x71   :  { %v5469_v27 = vld [vmem:[#allocation10 + $0x80] sm:$0xf] }
  0x72   :  { %v7775_v28 = vld [vmem:[#allocation10 + $0x9c] sm:$0xf0] }
  0x73   :  { %v7967_v30 = vld [vmem:[#allocation10 + $0x69c] sm:$0xf0]  ;;  %v5470_v37 = vor.u32 %v7775_v28, %v5469_v27 }
  0x74   :  { %v5725_v33 = vld [vmem:[#allocation10 + $0x280] sm:$0xf] }
  0x75   :  { %v7839_v34 = vld [vmem:[#allocation10 + $0x29c] sm:$0xf0] }
  0x76   :  { %v5981_v35 = vld [vmem:[#allocation10 + $0x480] sm:$0xf]  ;;  %v5726_v44 = vor.u32 %v7839_v34, %v5725_v33 }
  0x77   :  { %v5437_v39 = vld [vmem:[#allocation10 + $0x40] sm:$0xf] }
  0x78   :  { %v7959_v43 = vld [vmem:[#allocation10 + $0x65c] sm:$0xf0] }
  0x79   :  { %v5693_v46 = vld [vmem:[#allocation10 + $0x240] sm:$0xf] }
  0x7a   :  { %v7895_v49 = vld [vmem:[#allocation10 + $0x45c] sm:$0xf0] }
  0x7b   :  { %v5405_v50 = vld [vmem:[#allocation10] sm:$0xf] }
  0x7c   :  { %v7759_v52 = vld [vmem:[#allocation10 + $0x1c] sm:$0xf0] }
  0x7d   :  { %v6653_v55 = vld [vmem:[#allocation10 + $0x9c0] sm:$0xf] }
  0x7e   :  { %v8071_v56 = vld [vmem:[#allocation10 + $0x9dc] sm:$0xf0] }
  0x7f   :  { %v7421_v57 = vld [vmem:[#allocation10 + $0xfc0] sm:$0xf] }
  0x80   :  { %v5661_v61 = vld [vmem:[#allocation10 + $0x200] sm:$0xf] }
  0x81   :  { %v7823_v62 = vld [vmem:[#allocation10 + $0x21c] sm:$0xf0] }
  0x82   :  { %v5917_v63 = vld [vmem:[#allocation10 + $0x400] sm:$0xf] }
  0x83   :  { %v7887_v0 = vld [vmem:[#allocation10 + $0x41c] sm:$0xf0] }
  0x84   :  { %v8135_v4 = vld [vmem:[#allocation10 + $0xbdc] sm:$0xf0] }
  0x85   :  { %v7165_v5 = vld [vmem:[#allocation10 + $0xdc0] sm:$0xf] }
  0x86   :  { %v8199_v6 = vld [vmem:[#allocation10 + $0xddc] sm:$0xf0] }
  0x87   :  { %v6621_v9 = vld [vmem:[#allocation10 + $0x980] sm:$0xf]  ;;  %v7166_v16 = vor.u32 %v8199_v6, %v7165_v5 }
  0x88   :  { %v8063_v10 = vld [vmem:[#allocation10 + $0x99c] sm:$0xf0] }
  0x89   :  { %v7389_v11 = vld [vmem:[#allocation10 + $0xf80] sm:$0xf]  ;;  %v6622_v21 = vor.u32 %v8063_v10, %v6621_v9 }
  0x8a   :  { %v8255_v12 = vld [vmem:[#allocation10 + $0xf9c] sm:$0xf0] }
  0x8b   :  { %v6877_v17 = vld [vmem:[#allocation10 + $0xb80] sm:$0xf]  ;;  %v7390_v22 = vor.u32 %v8255_v12, %v7389_v11 }
  0x8c   :  { %v8127_v18 = vld [vmem:[#allocation10 + $0xb9c] sm:$0xf0] }
  0x8d   :  { %v6878_v27 = vor.u32 %v8127_v18, %v6877_v17  ;;  %v7229_v5 = vld [vmem:[#allocation10 + $0xe40] sm:$0xf] }
  0x8e   :  { %v6749_v9 = vld [vmem:[#allocation10 + $0xa80] sm:$0xf] }
  0x8f   :  { %v8095_v10 = vld [vmem:[#allocation10 + $0xa9c] sm:$0xf0] }
  0x90   :  { %v7005_v11 = vld [vmem:[#allocation10 + $0xc80] sm:$0xf]  ;;  %v6750_v12 = vor.u32 %v8095_v10, %v6749_v9 }
  0x91   :  { %v7197_v17 = vld [vmem:[#allocation10 + $0xe00] sm:$0xf] }
  0xba   :  { %v189_v32 = vpop.f32.mrf.mxu0 }
  0xbb   :  { %v190_v36 = vadd.f32 %v8346_v29, %v189_v32  ;;  %v6237_v29 = vld [vmem:[#allocation10 + $0x680] sm:$0xf]  ;;  %v6014_v32 = vor.u32 %v7911_v24, %v6013_v23 }
  0xbc   :  { %v6238_v38 = vor.u32 %v7967_v30, %v6237_v29  ;;  %v6589_v23 = vld [vmem:[#allocation10 + $0x940] sm:$0xf] }
  0xbd   :  { %v8703_v40 = vpack.c.bf16 %v190_v36, %v190_v36  ;;  %v7903_v36 = vld [vmem:[#allocation10 + $0x49c] sm:$0xf0] }
  0xbe   :  { %v5982_v45 = vor.u32 %v7903_v36, %v5981_v35  ;;  %v8055_v24 = vld [vmem:[#allocation10 + $0x95c] sm:$0xf0] }
  0xbf   :  { %5395 = vmatmul.msk.bf16.vlgmr.msra.gmra.mxu1 %vm168_vm0, %v8703_v40  ;;  %5396 = vmatmul.msk.bf16.vlgmr.msra.gmra.mxu2 %vm168_vm0, %v8703_v40  ;;  %v6845_v29 = vld [vmem:[#allocation10 + $0xb40] sm:$0xf]  ;;  %v6590_v33 = vor.u32 %v8055_v24, %v6589_v23 }
  0xc0   :  { %5397 = vmatmul.msk.bf16.vlgmr.msra.gmra.mxu3 %vm168_vm0, %v8703_v40  ;;  %5398 = vmatmul.msk.bf16.vlgmr.msrb.gmra.mxu0 %vm168_vm0, %v8703_v40  ;;  %v8119_v30 = vld [vmem:[#allocation10 + $0xb5c] sm:$0xf0] }
  0xc1   :  { %3712 = vmatpush.bf16.msra.mxu1 %v5630_v41  ;;  %3751 = vmatpush.bf16.msrb.mxu0 %v6398_v42  ;;  %v7767_v41 = vld [vmem:[#allocation10 + $0x5c] sm:$0xf0] }
  0xc2   :  { %3725 = vmatpush.bf16.msra.mxu2 %v5886_v47  ;;  %3738 = vmatpush.bf16.msra.mxu3 %v6142_v48  ;;  %v6205_v42 = vld [vmem:[#allocation10 + $0x640] sm:$0xf] }
  0xc3   :  { %v7831_v47 = vld [vmem:[#allocation10 + $0x25c] sm:$0xf0]  ;;  %v6206_v51 = vor.u32 %v7959_v43, %v6205_v42 }
  0xc4   :  { %v5949_v48 = vld [vmem:[#allocation10 + $0x440] sm:$0xf]  ;;  %v5694_v58 = vor.u32 %v7831_v47, %v5693_v46 }
  0xc5   :  { %3713 = vmatpush.bf16.msra.mxu1 %v5598_v53  ;;  %3752 = vmatpush.bf16.msrb.mxu0 %v6366_v54  ;;  %v6173_v53 = vld [vmem:[#allocation10 + $0x600] sm:$0xf] }
  0xc6   :  { %3726 = vmatpush.bf16.msra.mxu2 %v5854_v59  ;;  %3739 = vmatpush.bf16.msra.mxu3 %v6110_v60  ;;  %v7951_v54 = vld [vmem:[#allocation10 + $0x61c] sm:$0xf0]  ;;  %v5950_v59 = vor.u32 %v7895_v49, %v5949_v48 }
  0xc7   :  { %v8263_v60 = vld [vmem:[#allocation10 + $0xfdc] sm:$0xf0]  ;;  %v6174_v3 = vor.u32 %v7951_v54, %v6173_v53 }
  0xc8   :  { %v6557_v35 = vld [vmem:[#allocation10 + $0x900] sm:$0xf] }
  0xc9   :  { %3714 = vmatpush.bf16.msra.mxu1 %v5566_v1  ;;  %3753 = vmatpush.bf16.msrb.mxu0 %v6334_v2  ;;  %v6909_v1 = vld [vmem:[#allocation10 + $0xbc0] sm:$0xf]  ;;  %v5406_v2 = vor.u32 %v7759_v52, %v5405_v50 }
  0xca   :  { %3727 = vmatpush.bf16.msra.mxu2 %v5822_v7  ;;  %3740 = vmatpush.bf16.msra.mxu3 %v6078_v8  ;;  %v6654_v7 = vor.u32 %v8071_v56, %v6653_v55  ;;  %v7422_v8 = vor.u32 %v8263_v60, %v7421_v57  ;;  %v6910_v15 = vor.u32 %v8135_v4, %v6909_v1  ;;  %v8047_v36 = vld [vmem:[#allocation10 + $0x91c] sm:$0xf0] }
  0xcb   :  { %v6558_v42 = vor.u32 %v8047_v36, %v6557_v35  ;;  %v7293_v46 = vld [vmem:[#allocation10 + $0xec0] sm:$0xf] }
  0xcc   :  { %v8231_v47 = vld [vmem:[#allocation10 + $0xedc] sm:$0xf0] }
  0xcd   :  { %3715 = vmatpush.bf16.msra.mxu1 %v5534_v13  ;;  %3754 = vmatpush.bf16.msrb.mxu0 %v6302_v14  ;;  %v5662_v13 = vor.u32 %v7823_v62, %v5661_v61  ;;  %v5918_v14 = vor.u32 %v7887_v0, %v5917_v63  ;;  %v7294_v49 = vor.u32 %v8231_v47, %v7293_v46  ;;  %v6813_v50 = vld [vmem:[#allocation10 + $0xb00] sm:$0xf] }
  0xce   :  { %3728 = vmatpush.bf16.msra.mxu2 %v5790_v19  ;;  %3741 = vmatpush.bf16.msra.mxu3 %v6046_v20  ;;  %v7133_v19 = vld [vmem:[#allocation10 + $0xd80] sm:$0xf] }
  0xcf   :  { %5399 = vmatmul.msk.bf16.vlgmr.msrb.gmra.mxu1 %vm168_vm0, %v8703_v40  ;;  %5400 = vmatmul.msk.bf16.vlgmr.msrb.gmra.mxu2 %vm168_vm0, %v8703_v40  ;;  %v8191_v20 = vld [vmem:[#allocation10 + $0xd9c] sm:$0xf0] }
  0xd0   :  { %5401 = vmatmul.msk.bf16.vlgmr.msrb.gmra.mxu3 %vm168_vm0, %v8703_v40  ;;  %5402 = vmatmul.msk.bf16.vlgmr.msra.gmra.mxu0 %vm168_vm0, %v8703_v40  ;;  %v5438_v40 = vor.u32 %v7767_v41, %v5437_v39  ;;  %v7134_v28 = vor.u32 %v8191_v20, %v7133_v19  ;;  %v6846_v39 = vor.u32 %v8119_v30, %v6845_v29  ;;  %v8175_v53 = vld [vmem:[#allocation10 + $0xd1c] sm:$0xf0] }
  0xd1   :  { %3716 = vmatpush.bf16.msra.mxu1 %v5502_v25  ;;  %3755 = vmatpush.bf16.msrb.mxu0 %v6270_v26  ;;  %v7357_v25 = vld [vmem:[#allocation10 + $0xf40] sm:$0xf] }
  0xd2   :  { %3729 = vmatpush.bf16.msra.mxu2 %v5758_v31  ;;  %3742 = vmatpush.bf16.msra.mxu3 %v6014_v32  ;;  %v8247_v26 = vld [vmem:[#allocation10 + $0xf5c] sm:$0xf0] }
  0xd3   :  { %v7101_v31 = vld [vmem:[#allocation10 + $0xd40] sm:$0xf]  ;;  %v7358_v34 = vor.u32 %v8247_v26, %v7357_v25 }
  0xd4   :  { %v8183_v32 = vld [vmem:[#allocation10 + $0xd5c] sm:$0xf0] }
  0xd5   :  { %3717 = vmatpush.bf16.msra.mxu1 %v5470_v37  ;;  %3756 = vmatpush.bf16.msrb.mxu0 %v6238_v38  ;;  %v7325_v37 = vld [vmem:[#allocation10 + $0xf00] sm:$0xf]  ;;  %v7102_v41 = vor.u32 %v8183_v32, %v7101_v31 }
  0xd6   :  { %3730 = vmatpush.bf16.msra.mxu2 %v5726_v44  ;;  %3743 = vmatpush.bf16.msra.mxu3 %v5982_v45  ;;  %v8239_v38 = vld [vmem:[#allocation10 + $0xf1c] sm:$0xf0] }
  0xd7   :  { %v7326_v43 = vor.u32 %v8239_v38, %v7325_v37  ;;  %v6525_v44 = vld [vmem:[#allocation10 + $0x8c0] sm:$0xf] }
  0xd8   :  { %v8039_v45 = vld [vmem:[#allocation10 + $0x8dc] sm:$0xf0] }
  0xd9   :  { %3718 = vmatpush.bf16.msra.mxu1 %v5438_v40  ;;  %3757 = vmatpush.bf16.msrb.mxu0 %v6206_v51  ;;  %v6526_v48 = vor.u32 %v8039_v45, %v6525_v44  ;;  %v8111_v40 = vld [vmem:[#allocation10 + $0xb1c] sm:$0xf0]  ;;  %v7811_v44 = vld [vmem:[#allocation10 + $0x1c4] sm:$0xf] }
  0xda   :  { %3731 = vmatpush.bf16.msra.mxu2 %v5694_v58  ;;  %3744 = vmatpush.bf16.msra.mxu3 %v5950_v59  ;;  %v7069_v51 = vld [vmem:[#allocation10 + $0xd00] sm:$0xf]  ;;  %v6814_v52 = vor.u32 %v8111_v40, %v6813_v50  ;;  %v5631_v45 = vld [vmem:[#allocation10 + $0x1e0] sm:$0xf0] }
  0xdb   :  { %v7070_v54 = vor.u32 %v8175_v53, %v7069_v51  ;;  %v6493_v55 = vld [vmem:[#allocation10 + $0x880] sm:$0xf]  ;;  %v5634_v53 = vor.u32 %v7811_v44, %v5631_v45  ;;  %v7779_v45 = vld [vmem:[#allocation10 + $0xc4] sm:$0xf] }
  0xdc   :  { %v8031_v56 = vld [vmem:[#allocation10 + $0x89c] sm:$0xf0] }
  0xdd   :  { %3719 = vmatpush.bf16.msra.mxu1 %v5406_v2  ;;  %3758 = vmatpush.bf16.msrb.mxu0 %v6174_v3  ;;  %v7261_v57 = vld [vmem:[#allocation10 + $0xe80] sm:$0xf]  ;;  %v6494_v58 = vor.u32 %v8031_v56, %v6493_v55 }
  0xde   :  { %3732 = vmatpush.bf16.msra.mxu2 %v5662_v13  ;;  %3745 = vmatpush.bf16.msra.mxu3 %v5918_v14  ;;  %v8223_v59 = vld [vmem:[#allocation10 + $0xe9c] sm:$0xf0] }
  0xdf   :  { %v7262_v60 = vor.u32 %v8223_v59, %v7261_v57  ;;  %v6781_v61 = vld [vmem:[#allocation10 + $0xac0] sm:$0xf]  ;;  %v7803_v57 = vld [vmem:[#allocation10 + $0x184] sm:$0xf] }
  0xe0   :  { %v8103_v62 = vld [vmem:[#allocation10 + $0xadc] sm:$0xf0] }
  0xe1   :  { %3764 = vmatpush.bf16.msrb.mxu1 %v6654_v7  ;;  %3803 = vmatpush.bf16.msra.mxu0 %v7422_v8  ;;  %v7037_v63 = vld [vmem:[#allocation10 + $0xcc0] sm:$0xf]  ;;  %v6782_v0 = vor.u32 %v8103_v62, %v6781_v61  ;;  %v6367_v61 = vld [vmem:[#allocation10 + $0x7a0] sm:$0xf0] }
  0xe2   :  { %3777 = vmatpush.bf16.msrb.mxu2 %v6910_v15  ;;  %3790 = vmatpush.bf16.msrb.mxu3 %v7166_v16  ;;  %v8167_v1 = vld [vmem:[#allocation10 + $0xcdc] sm:$0xf0]  ;;  %v7875_v62 = vld [vmem:[#allocation10 + $0x3c4] sm:$0xf] }
  0xe3   :  { %v7038_v2 = vor.u32 %v8167_v1, %v7037_v63  ;;  %v6461_v3 = vld [vmem:[#allocation10 + $0x840] sm:$0xf]  ;;  %v5887_v63 = vld [vmem:[#allocation10 + $0x3e0] sm:$0xf0] }
  0xe4   :  { %v8023_v4 = vld [vmem:[#allocation10 + $0x85c] sm:$0xf0] }
  0xe5   :  { %3765 = vmatpush.bf16.msrb.mxu1 %v6622_v21  ;;  %3804 = vmatpush.bf16.msra.mxu0 %v7390_v22  ;;  %v6462_v6 = vor.u32 %v8023_v4, %v6461_v3  ;;  %v8215_v7 = vld [vmem:[#allocation10 + $0xe5c] sm:$0xf0]  ;;  %v6143_v3 = vld [vmem:[#allocation10 + $0x5e0] sm:$0xf0] }
  0xe6   :  { %3778 = vmatpush.bf16.msrb.mxu2 %v6878_v27  ;;  %3791 = vmatpush.bf16.msrb.mxu3 %v7134_v28  ;;  %v7230_v8 = vor.u32 %v8215_v7, %v7229_v5  ;;  %v8159_v13 = vld [vmem:[#allocation10 + $0xc9c] sm:$0xf0]  ;;  %v7795_v7 = vld [vmem:[#allocation10 + $0x144] sm:$0xf] }
  0xe7   :  { %v7006_v14 = vor.u32 %v8159_v13, %v7005_v11  ;;  %v6429_v15 = vld [vmem:[#allocation10 + $0x800] sm:$0xf]  ;;  %v5890_v11 = vor.u32 %v7875_v62, %v5887_v63  ;;  %v6335_v13 = vld [vmem:[#allocation10 + $0x760] sm:$0xf0] }
  0xe8   :  { %v8015_v16 = vld [vmem:[#allocation10 + $0x81c] sm:$0xf0] }
  0xe9   :  { %3766 = vmatpush.bf16.msrb.mxu1 %v6590_v33  ;;  %3805 = vmatpush.bf16.msra.mxu0 %v7358_v34  ;;  %v6430_v18 = vor.u32 %v8015_v16, %v6429_v15  ;;  %v8207_v19 = vld [vmem:[#allocation10 + $0xe1c] sm:$0xf0]  ;;  %v8721_v33 = vld [vmem:[#allocation8] sm:$0xff] }
  0xea   :  { %3779 = vmatpush.bf16.msrb.mxu2 %v6846_v39  ;;  %3792 = vmatpush.bf16.msrb.mxu3 %v7102_v41  ;;  %v7198_v20 = vor.u32 %v8207_v19, %v7197_v17  ;;  %v6717_v21 = vld [vmem:[#allocation10 + $0xa40] sm:$0xf]  ;;  %v243_v34 = vperm.slane %v8721_v33, 0  ;;  %v246_v35 = vperm.slane %v8721_v33, 3  ;;  %v244_v41 = vperm.slane %v8721_v33, 1 }
  0xeb   :  { %v8087_v22 = vld [vmem:[#allocation10 + $0xa5c] sm:$0xf0]  ;;  %v250_v5 = vperm.slane %v8721_v33, 7  ;;  %v5855_v19 = vld [vmem:[#allocation10 + $0x3a0] sm:$0xf0] }
  0xec   :  { %v6973_v23 = vld [vmem:[#allocation10 + $0xc40] sm:$0xf]  ;;  %v6718_v24 = vor.u32 %v8087_v22, %v6717_v21 }
  0xed   :  { %3767 = vmatpush.bf16.msrb.mxu1 %v6558_v42  ;;  %3806 = vmatpush.bf16.msra.mxu0 %v7326_v43  ;;  %v8151_v25 = vld [vmem:[#allocation10 + $0xc5c] sm:$0xf0]  ;;  %v245_v42 = vperm.slane %v8721_v33, 2 }
  0xee   :  { %3780 = vmatpush.bf16.msrb.mxu2 %v6814_v52  ;;  %3793 = vmatpush.bf16.msrb.mxu3 %v7070_v54  ;;  %v6974_v26 = vor.u32 %v8151_v25, %v6973_v23  ;;  %v6685_v27 = vld [vmem:[#allocation10 + $0xa00] sm:$0xf]  ;;  %v6111_v25 = vld [vmem:[#allocation10 + $0x5a0] sm:$0xf0] }
  0xef   :  { %v8079_v28 = vld [vmem:[#allocation10 + $0xa1c] sm:$0xf0] }
  0xf0   :  { %v6686_v29 = vor.u32 %v8079_v28, %v6685_v27  ;;  %v6941_v30 = vld [vmem:[#allocation10 + $0xc00] sm:$0xf]  ;;  %v7787_v28 = vld [vmem:[#allocation10 + $0x104] sm:$0xf] }
  0xf1   :  { %3768 = vmatpush.bf16.msrb.mxu1 %v6526_v48  ;;  %3807 = vmatpush.bf16.msra.mxu0 %v7294_v49  ;;  %v8143_v31 = vld [vmem:[#allocation10 + $0xc1c] sm:$0xf0]  ;;  %v8003_v48 = vld [vmem:[#allocation10 + $0x7c4] sm:$0xf] }
  0xf2   :  { %3781 = vmatpush.bf16.msrb.mxu2 %v6782_v0  ;;  %3794 = vmatpush.bf16.msrb.mxu3 %v7038_v2  ;;  %v6942_v32 = vor.u32 %v8143_v31, %v6941_v30  ;;  %v6399_v49 = vld [vmem:[#allocation10 + $0x7e0] sm:$0xf0]  ;;  %v247_v0 = vperm.slane %v8721_v33, 4  ;;  %v248_v30 = vperm.slane %v8721_v33, 5 }
  0xf3   :  { %v6402_v56 = vor.u32 %v8003_v48, %v6399_v49  ;;  %v7939_v2 = vld [vmem:[#allocation10 + $0x5c4] sm:$0xf] }
  0xf4   :  { %v6146_v17 = vor.u32 %v7939_v2, %v6143_v3  ;;  %v5471_v2 = vld [vmem:[#allocation10 + $0xa0] sm:$0xf0] }
  0xf5   :  { %3769 = vmatpush.bf16.msrb.mxu1 %v6494_v58  ;;  %3808 = vmatpush.bf16.msra.mxu0 %v7262_v60  ;;  %v5599_v58 = vld [vmem:[#allocation10 + $0x1a0] sm:$0xf0] }
  0xf6   :  { %3782 = vmatpush.bf16.msrb.mxu2 %v6750_v12  ;;  %3795 = vmatpush.bf16.msrb.mxu3 %v7006_v14  ;;  %v7995_v60 = vld [vmem:[#allocation10 + $0x784] sm:$0xf]  ;;  %v5602_v1 = vor.u32 %v7803_v57, %v5599_v58 }
  0xf7   :  { %v7987_v12 = vld [vmem:[#allocation10 + $0x744] sm:$0xf] }
  0xf8   :  { %v6338_v27 = vor.u32 %v7987_v12, %v6335_v13  ;;  %v6015_v12 = vld [vmem:[#allocation10 + $0x4e0] sm:$0xf0] }
  0xf9   :  { %3770 = vmatpush.bf16.msrb.mxu1 %v6462_v6  ;;  %3809 = vmatpush.bf16.msra.mxu0 %v7230_v8  ;;  %v6370_v6 = vor.u32 %v7995_v60, %v6367_v61  ;;  %v5567_v8 = vld [vmem:[#allocation10 + $0x160] sm:$0xf0] }
  0xfa   :  { %3783 = vmatpush.bf16.msrb.mxu2 %v6718_v24  ;;  %3796 = vmatpush.bf16.msrb.mxu3 %v6974_v26  ;;  %v5570_v23 = vor.u32 %v7795_v7, %v5567_v8  ;;  %v7931_v24 = vld [vmem:[#allocation10 + $0x584] sm:$0xf] }
  0xfb   :  { %v7915_v60 = vld [vmem:[#allocation10 + $0x504] sm:$0xf] }
  0xfc   :  { %v6047_v61 = vld [vmem:[#allocation10 + $0x520] sm:$0xf0] }
  0xfd   :  { %3771 = vmatpush.bf16.msrb.mxu1 %v6430_v18  ;;  %3810 = vmatpush.bf16.msra.mxu0 %v7198_v20  ;;  %v7867_v18 = vld [vmem:[#allocation10 + $0x384] sm:$0xf]  ;;  %v6050_v7 = vor.u32 %v7915_v60, %v6047_v61 }
  0xfe   :  { %3784 = vmatpush.bf16.msrb.mxu2 %v6686_v29  ;;  %3797 = vmatpush.bf16.msrb.mxu3 %v6942_v32  ;;  %v5535_v29 = vld [vmem:[#allocation10 + $0x120] sm:$0xf0]  ;;  %v5858_v31 = vor.u32 %v7867_v18, %v5855_v19 }
  0xff   :  { %v7979_v32 = vld [vmem:[#allocation10 + $0x704] sm:$0xf] }
 0x100   :  { %v7843_v8 = vld [vmem:[#allocation10 + $0x2c4] sm:$0xf] }
 0x101   :  { %v7819_v60 = vld [vmem:[#allocation10 + $0x204] sm:$0xf] }
 0x102   :  { %v5663_v61 = vld [vmem:[#allocation10 + $0x220] sm:$0xf0] }
 0x13c   :  { %v511_v36 = vpop.f32.mrf.mxu1 }
 0x13d   :  { %v512_v37 = vadd.f32 %v511_v36, %v243_v34  ;;  %v550_v38 = vpop.f32.mrf.mxu0  ;;  %v6303_v34 = vld [vmem:[#allocation10 + $0x720] sm:$0xf0]  ;;  %v6114_v36 = vor.u32 %v7931_v24, %v6111_v25 }
 0x13e   :  { %v551_v39 = vadd.f32 %v550_v38, %v246_v35  ;;  %v249_v35 = vperm.slane %v8721_v33, 6  ;;  %v5823_v38 = vld [vmem:[#allocation10 + $0x360] sm:$0xf0]  ;;  %v6306_v44 = vor.u32 %v7979_v32, %v6303_v34 }
 0x13f   :  { %8348 = vtanh.f32 %v512_v37  ;;  %v7859_v37 = vld [vmem:[#allocation10 + $0x344] sm:$0xf] }
 0x140   :  { %8350 = vtanh.f32 %v551_v39  ;;  %v5538_v39 = vor.u32 %v7787_v28, %v5535_v29  ;;  %v5826_v49 = vor.u32 %v7859_v37, %v5823_v38  ;;  %v5727_v28 = vld [vmem:[#allocation10 + $0x2a0] sm:$0xf0] }
 0x141   :  { %v5983_v32 = vld [vmem:[#allocation10 + $0x4a0] sm:$0xf0] }
 0x142   :  { %v524_v43 = vpop.f32.mrf.mxu2  ;;  %v7755_v34 = vld [vmem:[#allocation10 + $0x4] sm:$0xf] }
 0x143   :  { %v525_v46 = vadd.f32 %v524_v43, %v244_v41  ;;  %v537_v47 = vpop.f32.mrf.mxu3  ;;  %v7923_v41 = vld [vmem:[#allocation10 + $0x544] sm:$0xf] }
 0x144   :  { %v538_v50 = vadd.f32 %v537_v47, %v245_v42  ;;  %v513_v40 = vpop.f32.mrf.mxu1  ;;  %v6079_v42 = vld [vmem:[#allocation10 + $0x560] sm:$0xf0] }
 0x145   :  { %v8349_v51 = vpop.eup %8348  ;;  %8352 = vtanh.f32 %v525_v46  ;;  %v552_v52 = vpop.f32.mrf.mxu0  ;;  %v5503_v46 = vld [vmem:[#allocation10 + $0xe0] sm:$0xf0] }
 0x146   :  { %v8351_v54 = vpop.eup %8350  ;;  %v8727_v55 = vpack.c.bf16 %v8349_v51, %v8349_v51  ;;  %8354 = vtanh.f32 %v538_v50  ;;  %v7971_v50 = vld [vmem:[#allocation10 + $0x6c4] sm:$0xf]  ;;  %v6082_v52 = vor.u32 %v7923_v41, %v6079_v42  ;;  %v5506_v58 = vor.u32 %v7779_v45, %v5503_v46 }
 0x147   :  { %v8729_v59 = vpack.c.bf16 %v8351_v54, %v8351_v54  ;;  %v6271_v40 = vld [vmem:[#allocation10 + $0x6e0] sm:$0xf0] }
 0x148   :  { %3720 = vmatmul.bf16.vlgmr.msra.gmra.mxu1 %v8727_v55  ;;  %v5791_v54 = vld [vmem:[#allocation10 + $0x320] sm:$0xf0] }
 0x149   :  { %3759 = vmatmul.bf16.vlgmr.msrb.gmra.mxu0 %v8729_v59  ;;  %3816 = vmatpush.bf16.msra.mxu1 %v5634_v53  ;;  %v7851_v53 = vld [vmem:[#allocation10 + $0x304] sm:$0xf] }
 0x14a   :  { %3855 = vmatpush.bf16.msrb.mxu0 %v6402_v56  ;;  %v526_v4 = vpop.f32.mrf.mxu2  ;;  %v7947_v37 = vld [vmem:[#allocation10 + $0x604] sm:$0xf] }
 0x14b   :  { %v8353_v9 = vpop.eup %8352  ;;  %v539_v10 = vpop.f32.mrf.mxu3  ;;  %v5794_v4 = vor.u32 %v7851_v53, %v5791_v54  ;;  %v6175_v38 = vld [vmem:[#allocation10 + $0x620] sm:$0xf0] }
 0x14c   :  { %v8355_v14 = vpop.eup %8354  ;;  %v8735_v15 = vpack.c.bf16 %v8353_v9, %v8353_v9  ;;  %v563_v16 = vpop.f32.mrf.mxu1  ;;  %v5759_v9 = vld [vmem:[#allocation10 + $0x2e0] sm:$0xf0] }
 0x14d   :  { %v8737_v20 = vpack.c.bf16 %v8355_v14, %v8355_v14  ;;  %v564_v21 = vadd.f32 %v563_v16, %v247_v0  ;;  %v602_v22 = vpop.f32.mrf.mxu0  ;;  %3817 = vmatpush.bf16.msra.mxu1 %v5602_v1  ;;  %v6274_v0 = vor.u32 %v7971_v50, %v6271_v40  ;;  %v7771_v1 = vld [vmem:[#allocation10 + $0x84] sm:$0xf]  ;;  %v6178_v40 = vor.u32 %v7947_v37, %v6175_v38 }
 0x14e   :  { %v603_v26 = vadd.f32 %v602_v22, %v250_v5  ;;  %3856 = vmatpush.bf16.msrb.mxu0 %v6370_v6  ;;  %3733 = vmatmul.bf16.vlgmr.msra.gmra.mxu2 %v8735_v15  ;;  %v7963_v5 = vld [vmem:[#allocation10 + $0x684] sm:$0xf]  ;;  %v5474_v10 = vor.u32 %v7771_v1, %v5471_v2 }
 0x14f   :  { %8356 = vtanh.f32 %v564_v21  ;;  %3746 = vmatmul.bf16.vlgmr.msra.gmra.mxu3 %v8737_v20  ;;  %3829 = vmatpush.bf16.msra.mxu2 %v5890_v11  ;;  %v6239_v6 = vld [vmem:[#allocation10 + $0x6a0] sm:$0xf0]  ;;  %v5762_v21 = vor.u32 %v7843_v8, %v5759_v9  ;;  %v5666_v8 = vor.u32 %v7819_v60, %v5663_v61 }
 0x150   :  { %8358 = vtanh.f32 %v603_v26  ;;  %3842 = vmatpush.bf16.msra.mxu3 %v6146_v17  ;;  %v7907_v11 = vld [vmem:[#allocation10 + $0x4c4] sm:$0xf]  ;;  %v6242_v14 = vor.u32 %v7963_v5, %v6239_v6 }
 0x151   :  { %3818 = vmatpush.bf16.msra.mxu1 %v5570_v23  ;;  %v7763_v16 = vld [vmem:[#allocation10 + $0x44] sm:$0xf]  ;;  %v6018_v26 = vor.u32 %v7907_v11, %v6015_v12 }
 0x152   :  { %3857 = vmatpush.bf16.msrb.mxu0 %v6338_v27  ;;  %v576_v43 = vpop.f32.mrf.mxu2  ;;  %v5439_v17 = vld [vmem:[#allocation10 + $0x60] sm:$0xf0] }
 0x153   :  { %v577_v47 = vadd.f32 %v576_v43, %v248_v30  ;;  %v589_v48 = vpop.f32.mrf.mxu3  ;;  %3830 = vmatpush.bf16.msra.mxu2 %v5858_v31  ;;  %v7955_v22 = vld [vmem:[#allocation10 + $0x644] sm:$0xf]  ;;  %v5442_v30 = vor.u32 %v7763_v16, %v5439_v17 }
 0x154   :  { %v590_v51 = vadd.f32 %v589_v48, %v249_v35  ;;  %3843 = vmatpush.bf16.msra.mxu3 %v6114_v36  ;;  %v565_v33 = vpop.f32.mrf.mxu1  ;;  %v6207_v23 = vld [vmem:[#allocation10 + $0x660] sm:$0xf0] }
 0x155   :  { %v8357_v56 = vpop.eup %8356  ;;  %8360 = vtanh.f32 %v577_v47  ;;  %v604_v57 = vpop.f32.mrf.mxu0  ;;  %3819 = vmatpush.bf16.msra.mxu1 %v5538_v39  ;;  %v7835_v27 = vld [vmem:[#allocation10 + $0x284] sm:$0xf]  ;;  %v6210_v35 = vor.u32 %v7955_v22, %v6207_v23 }
 0x156   :  { %v8359_v62 = vpop.eup %8358  ;;  %v8743_v63 = vpack.c.bf16 %v8357_v56, %v8357_v56  ;;  %8362 = vtanh.f32 %v590_v51  ;;  %3858 = vmatpush.bf16.msrb.mxu0 %v6306_v44  ;;  %v7899_v31 = vld [vmem:[#allocation10 + $0x484] sm:$0xf]  ;;  %v5730_v39 = vor.u32 %v7835_v27, %v5727_v28 }
 0x157   :  { %v8745_v3 = vpack.c.bf16 %v8359_v62, %v8359_v62  ;;  %3831 = vmatpush.bf16.msra.mxu2 %v5826_v49  ;;  %v5407_v36 = vld [vmem:[#allocation10 + $0x20] sm:$0xf0]  ;;  %v5986_v44 = vor.u32 %v7899_v31, %v5983_v32 }
 0x158   :  { %3844 = vmatpush.bf16.msra.mxu3 %v6082_v52  ;;  %3772 = vmatmul.bf16.vlgmr.msrb.gmra.mxu1 %v8743_v63  ;;  %v8067_v41 = vld [vmem:[#allocation10 + $0x9c4] sm:$0xf]  ;;  %v5410_v48 = vor.u32 %v7755_v34, %v5407_v36 }
 0x159   :  { %3811 = vmatmul.bf16.vlgmr.msra.gmra.mxu0 %v8745_v3  ;;  %3820 = vmatpush.bf16.msra.mxu1 %v5506_v58  ;;  %v6655_v42 = vld [vmem:[#allocation10 + $0x9e0] sm:$0xf0] }
 0x15a   :  { %3859 = vmatpush.bf16.msrb.mxu0 %v6274_v0  ;;  %v578_v13 = vpop.f32.mrf.mxu2  ;;  %v8259_v43 = vld [vmem:[#allocation10 + $0xfc4] sm:$0xf]  ;;  %v6658_v51 = vor.u32 %v8067_v41, %v6655_v42 }
 0x15b   :  { %v8361_v18 = vpop.eup %8360  ;;  %v591_v19 = vpop.f32.mrf.mxu3  ;;  %3832 = vmatpush.bf16.msra.mxu2 %v5794_v4  ;;  %v7423_v45 = vld [vmem:[#allocation10 + $0xfe0] sm:$0xf0] }
 0x15c   :  { %v8363_v24 = vpop.eup %8362  ;;  %v8749_v25 = vpack.c.bf16 %v8361_v18, %v8361_v18  ;;  %3845 = vmatpush.bf16.msra.mxu3 %v6050_v7  ;;  %v7827_v46 = vld [vmem:[#allocation10 + $0x244] sm:$0xf]  ;;  %v7426_v52 = vor.u32 %v8259_v43, %v7423_v45 }
 0x15d   :  { %v8751_v29 = vpack.c.bf16 %v8363_v24, %v8363_v24  ;;  %3821 = vmatpush.bf16.msra.mxu1 %v5474_v10  ;;  %v5695_v47 = vld [vmem:[#allocation10 + $0x260] sm:$0xf0] }
 0x15e   :  { %3860 = vmatpush.bf16.msrb.mxu0 %v6242_v14  ;;  %3785 = vmatmul.bf16.vlgmr.msrb.gmra.mxu2 %v8749_v25  ;;  %v7891_v49 = vld [vmem:[#allocation10 + $0x444] sm:$0xf]  ;;  %v5698_v53 = vor.u32 %v7827_v46, %v5695_v47 }
 0x15f   :  { %3798 = vmatmul.bf16.vlgmr.msrb.gmra.mxu3 %v8751_v29  ;;  %3833 = vmatpush.bf16.msra.mxu2 %v5762_v21  ;;  %v5951_v50 = vld [vmem:[#allocation10 + $0x460] sm:$0xf0] }
 0x160   :  { %3846 = vmatpush.bf16.msra.mxu3 %v6018_v26  ;;  %v8059_v33 = vld [vmem:[#allocation10 + $0x984] sm:$0xf]  ;;  %v5954_v58 = vor.u32 %v7891_v49, %v5951_v50 }
 0x161   :  { %3822 = vmatpush.bf16.msra.mxu1 %v5442_v30  ;;  %v6623_v54 = vld [vmem:[#allocation10 + $0x9a0] sm:$0xf0] }
 0x162   :  { %3861 = vmatpush.bf16.msrb.mxu0 %v6210_v35  ;;  %v8251_v56 = vld [vmem:[#allocation10 + $0xf84] sm:$0xf]  ;;  %v6626_v4 = vor.u32 %v8059_v33, %v6623_v54 }
 0x163   :  { %3834 = vmatpush.bf16.msra.mxu2 %v5730_v39  ;;  %v7391_v57 = vld [vmem:[#allocation10 + $0xfa0] sm:$0xf0] }
 0x164   :  { %3847 = vmatpush.bf16.msra.mxu3 %v5986_v44  ;;  %v7883_v62 = vld [vmem:[#allocation10 + $0x404] sm:$0xf]  ;;  %v7394_v7 = vor.u32 %v8251_v56, %v7391_v57 }
 0x165   :  { %3823 = vmatpush.bf16.msra.mxu1 %v5410_v48  ;;  %v5919_v0 = vld [vmem:[#allocation10 + $0x420] sm:$0xf0] }
 0x166   :  { %v8131_v1 = vld [vmem:[#allocation10 + $0xbc4] sm:$0xf]  ;;  %3862 = vmatpush.bf16.msrb.mxu0 %v6178_v40  ;;  %v5922_v11 = vor.u32 %v7883_v62, %v5919_v0 }
 0x167   :  { %v6911_v2 = vld [vmem:[#allocation10 + $0xbe0] sm:$0xf0]  ;;  %3835 = vmatpush.bf16.msra.mxu2 %v5698_v53 }
 0x168   :  { %v8195_v5 = vld [vmem:[#allocation10 + $0xdc4] sm:$0xf]  ;;  %3848 = vmatpush.bf16.msra.mxu3 %v5954_v58  ;;  %3824 = vmatmul.bf16.vlgmr.msra.gmra.mxu1 %v8727_v55  ;;  %v6914_v12 = vor.u32 %v8131_v1, %v6911_v2 }
 0x169   :  { %3868 = vmatpush.bf16.msrb.mxu1 %v6658_v51  ;;  %v7167_v6 = vld [vmem:[#allocation10 + $0xde0] sm:$0xf0]  ;;  %3863 = vmatmul.bf16.vlgmr.msrb.gmra.mxu0 %v8729_v59 }
 0x16a   :  { %3907 = vmatpush.bf16.msra.mxu0 %v7426_v52  ;;  %v8051_v9 = vld [vmem:[#allocation10 + $0x944] sm:$0xf]  ;;  %v7170_v16 = vor.u32 %v8195_v5, %v7167_v6 }
 0x16b   :  { %v6591_v10 = vld [vmem:[#allocation10 + $0x960] sm:$0xf0]  ;;  %3836 = vmatpush.bf16.msra.mxu2 %v5666_v8 }
 0x16c   :  { %v8243_v13 = vld [vmem:[#allocation10 + $0xf44] sm:$0xf]  ;;  %v6594_v19 = vor.u32 %v8051_v9, %v6591_v10  ;;  %3849 = vmatpush.bf16.msra.mxu3 %v5922_v11 }
 0x16d   :  { %v7359_v14 = vld [vmem:[#allocation10 + $0xf60] sm:$0xf0]  ;;  %3869 = vmatpush.bf16.msrb.mxu1 %v6626_v4 }
 0x16e   :  { %v8123_v17 = vld [vmem:[#allocation10 + $0xb84] sm:$0xf]  ;;  %3908 = vmatpush.bf16.msra.mxu0 %v7394_v7  ;;  %v7362_v23 = vor.u32 %v8243_v13, %v7359_v14  ;;  %3837 = vmatmul.bf16.vlgmr.msra.gmra.mxu2 %v8735_v15 }
 0x16f   :  { %v6879_v18 = vld [vmem:[#allocation10 + $0xba0] sm:$0xf0]  ;;  %3881 = vmatpush.bf16.msrb.mxu2 %v6914_v12  ;;  %3850 = vmatmul.bf16.vlgmr.msra.gmra.mxu3 %v8737_v20 }
 0x170   :  { %v8187_v21 = vld [vmem:[#allocation10 + $0xd84] sm:$0xf]  ;;  %v6882_v27 = vor.u32 %v8123_v17, %v6879_v18  ;;  %3894 = vmatpush.bf16.msrb.mxu3 %v7170_v16 }
 0x171   :  { %v7135_v22 = vld [vmem:[#allocation10 + $0xda0] sm:$0xf0]  ;;  %3870 = vmatpush.bf16.msrb.mxu1 %v6594_v19 }
 0x172   :  { %v8043_v24 = vld [vmem:[#allocation10 + $0x904] sm:$0xf]  ;;  %v7138_v31 = vor.u32 %v8187_v21, %v7135_v22  ;;  %3909 = vmatpush.bf16.msra.mxu0 %v7362_v23  ;;  %v5637_v21 = vld [vmem:[#allocation10 + $0x1c8] sm:$0xf] }
 0x173   :  { %v6559_v26 = vld [vmem:[#allocation10 + $0x920] sm:$0xf0]  ;;  %3882 = vmatpush.bf16.msrb.mxu2 %v6882_v27  ;;  %v7816_v22 = vld [vmem:[#allocation10 + $0x1e4] sm:$0xf0] }
 0x174   :  { %v8235_v28 = vld [vmem:[#allocation10 + $0xf04] sm:$0xf]  ;;  %v6562_v35 = vor.u32 %v8043_v24, %v6559_v26  ;;  %3895 = vmatpush.bf16.msrb.mxu3 %v7138_v31  ;;  %v6405_v23 = vld [vmem:[#allocation10 + $0x7c8] sm:$0xf] }
 0x175   :  { %v7327_v30 = vld [vmem:[#allocation10 + $0xf20] sm:$0xf0]  ;;  %v8008_v26 = vld [vmem:[#allocation10 + $0x7e4] sm:$0xf0] }
 0x176   :  { %v8115_v32 = vld [vmem:[#allocation10 + $0xb44] sm:$0xf]  ;;  %v7330_v38 = vor.u32 %v8235_v28, %v7327_v30  ;;  %3871 = vmatpush.bf16.msrb.mxu1 %v6562_v35  ;;  %v5638_v35 = vor.u32 %v7816_v22, %v5637_v21  ;;  %v7784_v21 = vld [vmem:[#allocation10 + $0xe4] sm:$0xf0] }
 0x177   :  { %v6847_v34 = vld [vmem:[#allocation10 + $0xb60] sm:$0xf0] }
 0x178   :  { %v8179_v36 = vld [vmem:[#allocation10 + $0xd44] sm:$0xf]  ;;  %v6850_v42 = vor.u32 %v8115_v32, %v6847_v34  ;;  %3910 = vmatpush.bf16.msra.mxu0 %v7330_v38 }
 0x179   :  { %v7103_v37 = vld [vmem:[#allocation10 + $0xd60] sm:$0xf0] }
 0x17a   :  { %v8035_v39 = vld [vmem:[#allocation10 + $0x8c4] sm:$0xf]  ;;  %v7106_v45 = vor.u32 %v8179_v36, %v7103_v37  ;;  %3883 = vmatpush.bf16.msrb.mxu2 %v6850_v42  ;;  %v5605_v36 = vld [vmem:[#allocation10 + $0x188] sm:$0xf]  ;;  %v6406_v37 = vor.u32 %v8008_v26, %v6405_v23 }
 0x17b   :  { %v6527_v41 = vld [vmem:[#allocation10 + $0x8e0] sm:$0xf0]  ;;  %v8000_v42 = vld [vmem:[#allocation10 + $0x7a4] sm:$0xf0] }
 0x17c   :  { %v8227_v43 = vld [vmem:[#allocation10 + $0xec4] sm:$0xf]  ;;  %v6530_v48 = vor.u32 %v8035_v39, %v6527_v41  ;;  %3896 = vmatpush.bf16.msrb.mxu3 %v7106_v45  ;;  %v7808_v39 = vld [vmem:[#allocation10 + $0x1a4] sm:$0xf0] }
 0x17d   :  { %v7295_v44 = vld [vmem:[#allocation10 + $0xee0] sm:$0xf0]  ;;  %v6373_v41 = vld [vmem:[#allocation10 + $0x788] sm:$0xf] }
 0x17e   :  { %v8107_v46 = vld [vmem:[#allocation10 + $0xb04] sm:$0xf]  ;;  %v7298_v40 = vor.u32 %v8227_v43, %v7295_v44  ;;  %3872 = vmatpush.bf16.msrb.mxu1 %v6530_v48  ;;  %v5893_v48 = vld [vmem:[#allocation10 + $0x3c8] sm:$0xf] }
 0x17f   :  { %v6815_v47 = vld [vmem:[#allocation10 + $0xb20] sm:$0xf0]  ;;  %v6277_v23 = vld [vmem:[#allocation10 + $0x6c8] sm:$0xf] }
 0x180   :  { %v8171_v49 = vld [vmem:[#allocation10 + $0xd04] sm:$0xf]  ;;  %v6818_v52 = vor.u32 %v8107_v46, %v6815_v47  ;;  %3911 = vmatpush.bf16.msra.mxu0 %v7298_v40  ;;  %v6149_v40 = vld [vmem:[#allocation10 + $0x5c8] sm:$0xf] }
 0x181   :  { %v7071_v50 = vld [vmem:[#allocation10 + $0xd20] sm:$0xf0] }
 0x182   :  { %v8027_v51 = vld [vmem:[#allocation10 + $0x884] sm:$0xf]  ;;  %v7074_v56 = vor.u32 %v8171_v49, %v7071_v50  ;;  %3884 = vmatpush.bf16.msrb.mxu2 %v6818_v52  ;;  %v7880_v49 = vld [vmem:[#allocation10 + $0x3e4] sm:$0xf0]  ;;  %v5606_v50 = vor.u32 %v7808_v39, %v5605_v36 }
 0x183   :  { %v6495_v33 = vld [vmem:[#allocation10 + $0x8a0] sm:$0xf0]  ;;  %v7776_v36 = vld [vmem:[#allocation10 + $0xa4] sm:$0xf0] }
 0x184   :  { %v8219_v53 = vld [vmem:[#allocation10 + $0xe84] sm:$0xf]  ;;  %v6498_v60 = vor.u32 %v8027_v51, %v6495_v33  ;;  %3897 = vmatpush.bf16.msrb.mxu3 %v7074_v56  ;;  %v7944_v51 = vld [vmem:[#allocation10 + $0x5e4] sm:$0xf0]  ;;  %v6374_v33 = vor.u32 %v8000_v42, %v6373_v41 }
 0x185   :  { %v7263_v54 = vld [vmem:[#allocation10 + $0xea0] sm:$0xf0]  ;;  %v7968_v39 = vld [vmem:[#allocation10 + $0x6a4] sm:$0xf0] }
 0x186   :  { %v8099_v57 = vld [vmem:[#allocation10 + $0xac4] sm:$0xf]  ;;  %v7266_v0 = vor.u32 %v8219_v53, %v7263_v54  ;;  %3873 = vmatpush.bf16.msrb.mxu1 %v6498_v60  ;;  %v5573_v53 = vld [vmem:[#allocation10 + $0x148] sm:$0xf] }
 0x187   :  { %v6783_v58 = vld [vmem:[#allocation10 + $0xae0] sm:$0xf0]  ;;  %v7800_v54 = vld [vmem:[#allocation10 + $0x164] sm:$0xf0] }
 0x188   :  { %v8163_v61 = vld [vmem:[#allocation10 + $0xcc4] sm:$0xf]  ;;  %v6786_v4 = vor.u32 %v8099_v57, %v6783_v58  ;;  %3912 = vmatpush.bf16.msra.mxu0 %v7266_v0  ;;  %v5894_v57 = vor.u32 %v7880_v49, %v5893_v48  ;;  %v6341_v58 = vld [vmem:[#allocation10 + $0x748] sm:$0xf] }
 0x189   :  { %v7039_v62 = vld [vmem:[#allocation10 + $0xce0] sm:$0xf0]  ;;  %v7992_v60 = vld [vmem:[#allocation10 + $0x764] sm:$0xf0] }
 0x18a   :  { %v8019_v1 = vld [vmem:[#allocation10 + $0x844] sm:$0xf]  ;;  %v7042_v7 = vor.u32 %v8163_v61, %v7039_v62  ;;  %3885 = vmatpush.bf16.msrb.mxu2 %v6786_v4  ;;  %v6150_v61 = vor.u32 %v7944_v51, %v6149_v40  ;;  %v5861_v62 = vld [vmem:[#allocation10 + $0x388] sm:$0xf] }
 0x18b   :  { %v6463_v2 = vld [vmem:[#allocation10 + $0x860] sm:$0xf0]  ;;  %v7872_v0 = vld [vmem:[#allocation10 + $0x3a4] sm:$0xf0] }
 0x18c   :  { %v8211_v5 = vld [vmem:[#allocation10 + $0xe44] sm:$0xf]  ;;  %v6466_v10 = vor.u32 %v8019_v1, %v6463_v2  ;;  %3898 = vmatpush.bf16.msrb.mxu3 %v7042_v7  ;;  %v5574_v1 = vor.u32 %v7800_v54, %v5573_v53  ;;  %v6117_v2 = vld [vmem:[#allocation10 + $0x588] sm:$0xf] }
 0x18d   :  { %v7231_v6 = vld [vmem:[#allocation10 + $0xe60] sm:$0xf0]  ;;  %v7936_v4 = vld [vmem:[#allocation10 + $0x5a4] sm:$0xf0] }
 0x18e   :  { %v8091_v8 = vld [vmem:[#allocation10 + $0xa84] sm:$0xf]  ;;  %v7234_v14 = vor.u32 %v8211_v5, %v7231_v6  ;;  %3874 = vmatpush.bf16.msrb.mxu1 %v6466_v10  ;;  %v6342_v5 = vor.u32 %v7992_v60, %v6341_v58  ;;  %v5541_v6 = vld [vmem:[#allocation10 + $0x108] sm:$0xf] }
 0x18f   :  { %v6751_v9 = vld [vmem:[#allocation10 + $0xaa0] sm:$0xf0]  ;;  %v7792_v7 = vld [vmem:[#allocation10 + $0x124] sm:$0xf0] }
 0x190   :  { %v8155_v11 = vld [vmem:[#allocation10 + $0xc84] sm:$0xf]  ;;  %v6754_v19 = vor.u32 %v8091_v8, %v6751_v9  ;;  %3913 = vmatpush.bf16.msra.mxu0 %v7234_v14  ;;  %v5862_v8 = vor.u32 %v7872_v0, %v5861_v62  ;;  %v6309_v9 = vld [vmem:[#allocation10 + $0x708] sm:$0xf]  ;;  %v5542_v14 = vor.u32 %v7792_v7, %v5541_v6 }
 0x191   :  { %v7007_v12 = vld [vmem:[#allocation10 + $0xca0] sm:$0xf0]  ;;  %v7984_v10 = vld [vmem:[#allocation10 + $0x724] sm:$0xf0] }
 0x192   :  { %v8011_v13 = vld [vmem:[#allocation10 + $0x804] sm:$0xf]  ;;  %v7010_v24 = vor.u32 %v8155_v11, %v7007_v12  ;;  %3886 = vmatpush.bf16.msrb.mxu2 %v6754_v19  ;;  %v6118_v11 = vor.u32 %v7936_v4, %v6117_v2  ;;  %v5829_v12 = vld [vmem:[#allocation10 + $0x348] sm:$0xf] }
 0x193   :  { %v6431_v16 = vld [vmem:[#allocation10 + $0x820] sm:$0xf0]  ;;  %v5509_v19 = vld [vmem:[#allocation10 + $0xc8] sm:$0xf] }
 0x194   :  { %v8203_v17 = vld [vmem:[#allocation10 + $0xe04] sm:$0xf]  ;;  %v6434_v30 = vor.u32 %v8011_v13, %v6431_v16  ;;  %3899 = vmatpush.bf16.msrb.mxu3 %v7010_v24  ;;  %v7864_v13 = vld [vmem:[#allocation10 + $0x364] sm:$0xf0] }
 0x195   :  { %v7199_v18 = vld [vmem:[#allocation10 + $0xe20] sm:$0xf0]  ;;  %v6085_v16 = vld [vmem:[#allocation10 + $0x548] sm:$0xf]  ;;  %v5830_v22 = vor.u32 %v7864_v13, %v5829_v12 }
 0x196   :  { %v8083_v27 = vld [vmem:[#allocation10 + $0xa44] sm:$0xf]  ;;  %v7202_v34 = vor.u32 %v8203_v17, %v7199_v18  ;;  %3875 = vmatpush.bf16.msrb.mxu1 %v6434_v30  ;;  %v7928_v17 = vld [vmem:[#allocation10 + $0x564] sm:$0xf0]  ;;  %v6310_v18 = vor.u32 %v7984_v10, %v6309_v9  ;;  %v5510_v30 = vor.u32 %v7784_v21, %v5509_v19 }
 0x197   :  { %v6719_v28 = vld [vmem:[#allocation10 + $0xa60] sm:$0xf0]  ;;  %v7976_v24 = vld [vmem:[#allocation10 + $0x6e4] sm:$0xf0]  ;;  %v6086_v26 = vor.u32 %v7928_v17, %v6085_v16 }
 0x198   :  { %v8147_v31 = vld [vmem:[#allocation10 + $0xc44] sm:$0xf]  ;;  %v6722_v38 = vor.u32 %v8083_v27, %v6719_v28  ;;  %3914 = vmatpush.bf16.msra.mxu0 %v7202_v34  ;;  %v5797_v27 = vld [vmem:[#allocation10 + $0x308] sm:$0xf]  ;;  %v6278_v34 = vor.u32 %v7976_v24, %v6277_v23 }
 0x199   :  { %v6975_v32 = vld [vmem:[#allocation10 + $0xc60] sm:$0xf0]  ;;  %3876 = vmatmul.bf16.vlgmr.msrb.gmra.mxu1 %v8743_v63  ;;  %v7856_v28 = vld [vmem:[#allocation10 + $0x324] sm:$0xf0] }
 0x19a   :  { %v6978_v43 = vor.u32 %v8147_v31, %v6975_v32  ;;  %v8075_v44 = vld [vmem:[#allocation10 + $0xa04] sm:$0xf]  ;;  %3920 = vmatpush.bf16.msra.mxu1 %v5638_v35  ;;  %3887 = vmatpush.bf16.msrb.mxu2 %v6722_v38  ;;  %v6053_v31 = vld [vmem:[#allocation10 + $0x508] sm:$0xf] }
 0x19b   :  { %v6687_v45 = vld [vmem:[#allocation10 + $0xa20] sm:$0xf0]  ;;  %3915 = vmatmul.bf16.vlgmr.msra.gmra.mxu0 %v8745_v3  ;;  %v7920_v32 = vld [vmem:[#allocation10 + $0x524] sm:$0xf0] }
 0x19c   :  { %v8139_v46 = vld [vmem:[#allocation10 + $0xc04] sm:$0xf]  ;;  %3959 = vmatpush.bf16.msrb.mxu0 %v6406_v37  ;;  %v6690_v52 = vor.u32 %v8075_v44, %v6687_v45  ;;  %3900 = vmatpush.bf16.msrb.mxu3 %v6978_v43  ;;  %v5477_v35 = vld [vmem:[#allocation10 + $0x88] sm:$0xf]  ;;  %v5798_v37 = vor.u32 %v7856_v28, %v5797_v27  ;;  %v6054_v41 = vor.u32 %v7920_v32, %v6053_v31 }
 0x19d   :  { %v6943_v47 = vld [vmem:[#allocation10 + $0xc20] sm:$0xf0]  ;;  %v6245_v38 = vld [vmem:[#allocation10 + $0x688] sm:$0xf]  ;;  %v5478_v44 = vor.u32 %v7776_v36, %v5477_v35 }
 0x19e   :  { %v6946_v56 = vor.u32 %v8139_v46, %v6943_v47  ;;  %3921 = vmatpush.bf16.msra.mxu1 %v5606_v50  ;;  %3888 = vmatpush.bf16.msrb.mxu2 %v6690_v52  ;;  %v5765_v42 = vld [vmem:[#allocation10 + $0x2c8] sm:$0xf]  ;;  %v6246_v47 = vor.u32 %v7968_v39, %v6245_v38 }
 0x19f   :  { %v7848_v43 = vld [vmem:[#allocation10 + $0x2e4] sm:$0xf0] }
 0x1a0   :  { %3960 = vmatpush.bf16.msrb.mxu0 %v6374_v33  ;;  %3901 = vmatpush.bf16.msrb.mxu3 %v6946_v56  ;;  %v6021_v45 = vld [vmem:[#allocation10 + $0x4c8] sm:$0xf]  ;;  %v5766_v50 = vor.u32 %v7848_v43, %v5765_v42 }
 0x1a1   :  { %3889 = vmatmul.bf16.vlgmr.msrb.gmra.mxu2 %v8749_v25  ;;  %v7912_v46 = vld [vmem:[#allocation10 + $0x4e4] sm:$0xf0] }
 0x1a2   :  { %3933 = vmatpush.bf16.msra.mxu2 %v5894_v57  ;;  %3922 = vmatpush.bf16.msra.mxu1 %v5574_v1  ;;  %v5445_v48 = vld [vmem:[#allocation10 + $0x48] sm:$0xf]  ;;  %v6022_v33 = vor.u32 %v7912_v46, %v6021_v45 }
 0x1a3   :  { %3902 = vmatmul.bf16.vlgmr.msrb.gmra.mxu3 %v8751_v29  ;;  %v7768_v49 = vld [vmem:[#allocation10 + $0x64] sm:$0xf0] }
 0x1a4   :  { %3946 = vmatpush.bf16.msra.mxu3 %v6150_v61  ;;  %3961 = vmatpush.bf16.msrb.mxu0 %v6342_v5  ;;  %v6213_v40 = vld [vmem:[#allocation10 + $0x648] sm:$0xf]  ;;  %v5446_v54 = vor.u32 %v7768_v49, %v5445_v48 }
 0x1a5   :  { %v7960_v51 = vld [vmem:[#allocation10 + $0x664] sm:$0xf0] }
 0x1a6   :  { %3934 = vmatpush.bf16.msra.mxu2 %v5862_v8  ;;  %3923 = vmatpush.bf16.msra.mxu1 %v5542_v14  ;;  %v5733_v52 = vld [vmem:[#allocation10 + $0x288] sm:$0xf]  ;;  %v6214_v60 = vor.u32 %v7960_v51, %v6213_v40 }
 0x1a7   :  { %v7840_v53 = vld [vmem:[#allocation10 + $0x2a4] sm:$0xf0] }
 0x1a8   :  { %3947 = vmatpush.bf16.msra.mxu3 %v6118_v11  ;;  %3962 = vmatpush.bf16.msrb.mxu0 %v6310_v18  ;;  %v5989_v56 = vld [vmem:[#allocation10 + $0x488] sm:$0xf]  ;;  %v5734_v1 = vor.u32 %v7840_v53, %v5733_v52 }
 0x1a9   :  { %v7904_v57 = vld [vmem:[#allocation10 + $0x4a4] sm:$0xf0] }
 0x1aa   :  { %3935 = vmatpush.bf16.msra.mxu2 %v5830_v22  ;;  %3924 = vmatpush.bf16.msra.mxu1 %v5510_v30  ;;  %v5413_v58 = vld [vmem:[#allocation10 + $0x8] sm:$0xf]  ;;  %v5990_v6 = vor.u32 %v7904_v57, %v5989_v56 }
 0x1ab   :  { %v7760_v61 = vld [vmem:[#allocation10 + $0x24] sm:$0xf0] }
 0x1ac   :  { %3948 = vmatpush.bf16.msra.mxu3 %v6086_v26  ;;  %3963 = vmatpush.bf16.msrb.mxu0 %v6278_v34  ;;  %v6181_v62 = vld [vmem:[#allocation10 + $0x608] sm:$0xf]  ;;  %v5414_v10 = vor.u32 %v7760_v61, %v5413_v58 }
 0x1ad   :  { %v7952_v0 = vld [vmem:[#allocation10 + $0x624] sm:$0xf0] }
 0x1ae   :  { %3936 = vmatpush.bf16.msra.mxu2 %v5798_v37  ;;  %3925 = vmatpush.bf16.msra.mxu1 %v5478_v44  ;;  %v6661_v2 = vld [vmem:[#allocation10 + $0x9c8] sm:$0xf]  ;;  %v6182_v13 = vor.u32 %v7952_v0, %v6181_v62 }
 0x1af   :  { %v8072_v4 = vld [vmem:[#allocation10 + $0x9e4] sm:$0xf0] }
 0x1b0   :  { %3949 = vmatpush.bf16.msra.mxu3 %v6054_v41  ;;  %3964 = vmatpush.bf16.msrb.mxu0 %v6246_v47  ;;  %v7429_v5 = vld [vmem:[#allocation10 + $0xfc8] sm:$0xf]  ;;  %v6662_v14 = vor.u32 %v8072_v4, %v6661_v2 }
 0x1b1   :  { %v8264_v7 = vld [vmem:[#allocation10 + $0xfe4] sm:$0xf0] }
 0x1b2   :  { %3937 = vmatpush.bf16.msra.mxu2 %v5766_v50  ;;  %v5701_v8 = vld [vmem:[#allocation10 + $0x248] sm:$0xf]  ;;  %3926 = vmatpush.bf16.msra.mxu1 %v5446_v54  ;;  %v7430_v17 = vor.u32 %v8264_v7, %v7429_v5 }
 0x1b3   :  { %v7832_v9 = vld [vmem:[#allocation10 + $0x264] sm:$0xf0] }
 0x1b4   :  { %3950 = vmatpush.bf16.msra.mxu3 %v6022_v33  ;;  %v5957_v11 = vld [vmem:[#allocation10 + $0x448] sm:$0xf]  ;;  %3965 = vmatpush.bf16.msrb.mxu0 %v6214_v60  ;;  %v5702_v18 = vor.u32 %v7832_v9, %v5701_v8 }
 0x1b5   :  { %v7896_v12 = vld [vmem:[#allocation10 + $0x464] sm:$0xf0] }
 0x1b6   :  { %v6629_v16 = vld [vmem:[#allocation10 + $0x988] sm:$0xf]  ;;  %3938 = vmatpush.bf16.msra.mxu2 %v5734_v1  ;;  %v5958_v23 = vor.u32 %v7896_v12, %v5957_v11  ;;  %3927 = vmatpush.bf16.msra.mxu1 %v5414_v10 }
 0x1b7   :  { %v8064_v19 = vld [vmem:[#allocation10 + $0x9a4] sm:$0xf0] }
 0x1b8   :  { %v7397_v21 = vld [vmem:[#allocation10 + $0xf88] sm:$0xf]  ;;  %3951 = vmatpush.bf16.msra.mxu3 %v5990_v6  ;;  %3966 = vmatpush.bf16.msrb.mxu0 %v6182_v13  ;;  %v6630_v32 = vor.u32 %v8064_v19, %v6629_v16 }
 0x1b9   :  { %v8256_v22 = vld [vmem:[#allocation10 + $0xfa4] sm:$0xf0]  ;;  %3928 = vmatmul.bf16.vlgmr.msra.gmra.mxu1 %v8727_v55 }
 0x1ba   :  { %v5669_v24 = vld [vmem:[#allocation10 + $0x208] sm:$0xf]  ;;  %3972 = vmatpush.bf16.msrb.mxu1 %v6662_v14  ;;  %3939 = vmatpush.bf16.msra.mxu2 %v5702_v18  ;;  %v7398_v36 = vor.u32 %v8256_v22, %v7397_v21 }
 0x1bb   :  { %v7824_v26 = vld [vmem:[#allocation10 + $0x224] sm:$0xf0]  ;;  %3967 = vmatmul.bf16.vlgmr.msrb.gmra.mxu0 %v8729_v59 }
 0x1bc   :  { %v5925_v27 = vld [vmem:[#allocation10 + $0x408] sm:$0xf]  ;;  %4011 = vmatpush.bf16.msra.mxu0 %v7430_v17  ;;  %v5670_v37 = vor.u32 %v7824_v26, %v5669_v24  ;;  %3952 = vmatpush.bf16.msra.mxu3 %v5958_v23 }
 0x1bd   :  { %v7888_v28 = vld [vmem:[#allocation10 + $0x424] sm:$0xf0] }
 0x1be   :  { %v6917_v30 = vld [vmem:[#allocation10 + $0xbc8] sm:$0xf]  ;;  %v5926_v41 = vor.u32 %v7888_v28, %v5925_v27  ;;  %3973 = vmatpush.bf16.msrb.mxu1 %v6630_v32  ;;  %3940 = vmatpush.bf16.msra.mxu2 %v5670_v37 }
 0x1bf   :  { %v8136_v31 = vld [vmem:[#allocation10 + $0xbe4] sm:$0xf0] }
 0x1c0   :  { %v7173_v34 = vld [vmem:[#allocation10 + $0xdc8] sm:$0xf]  ;;  %v6918_v42 = vor.u32 %v8136_v31, %v6917_v30  ;;  %4012 = vmatpush.bf16.msra.mxu0 %v7398_v36  ;;  %3953 = vmatpush.bf16.msra.mxu3 %v5926_v41 }
 0x1c1   :  { %v8200_v35 = vld [vmem:[#allocation10 + $0xde4] sm:$0xf0]  ;;  %3941 = vmatmul.bf16.vlgmr.msra.gmra.mxu2 %v8735_v15 }
 0x1c2   :  { %v6597_v38 = vld [vmem:[#allocation10 + $0x948] sm:$0xf]  ;;  %v7174_v45 = vor.u32 %v8200_v35, %v7173_v34  ;;  %3985 = vmatpush.bf16.msrb.mxu2 %v6918_v42 }
 0x1c3   :  { %v8056_v39 = vld [vmem:[#allocation10 + $0x964] sm:$0xf0]  ;;  %3954 = vmatmul.bf16.vlgmr.msra.gmra.mxu3 %v8737_v20 }
 0x1c4   :  { %v7365_v43 = vld [vmem:[#allocation10 + $0xf48] sm:$0xf]  ;;  %v6598_v48 = vor.u32 %v8056_v39, %v6597_v38  ;;  %3998 = vmatpush.bf16.msrb.mxu3 %v7174_v45 }
 0x1c5   :  { %v8248_v44 = vld [vmem:[#allocation10 + $0xf64] sm:$0xf0] }
 0x1c6   :  { %v6885_v46 = vld [vmem:[#allocation10 + $0xb88] sm:$0xf]  ;;  %v7366_v40 = vor.u32 %v8248_v44, %v7365_v43  ;;  %3974 = vmatpush.bf16.msrb.mxu1 %v6598_v48 }
 0x1c7   :  { %v8128_v47 = vld [vmem:[#allocation10 + $0xba4] sm:$0xf0] }
 0x1c8   :  { %v7141_v49 = vld [vmem:[#allocation10 + $0xd88] sm:$0xf]  ;;  %v6886_v52 = vor.u32 %v8128_v47, %v6885_v46  ;;  %4013 = vmatpush.bf16.msra.mxu0 %v7366_v40  ;;  %v8004_v40 = vld [vmem:[#allocation10 + $0x7cc] sm:$0xf] }
 0x1c9   :  { %v8192_v50 = vld [vmem:[#allocation10 + $0xda4] sm:$0xf0] }
 0x1ca   :  { %v6565_v51 = vld [vmem:[#allocation10 + $0x908] sm:$0xf]  ;;  %v7142_v56 = vor.u32 %v8192_v50, %v7141_v49  ;;  %3986 = vmatpush.bf16.msrb.mxu2 %v6886_v52  ;;  %v7812_v49 = vld [vmem:[#allocation10 + $0x1cc] sm:$0xf] }
 0x1cb   :  { %v8048_v33 = vld [vmem:[#allocation10 + $0x924] sm:$0xf0]  ;;  %v5639_v50 = vld [vmem:[#allocation10 + $0x1e8] sm:$0xf0] }
 0x1cc   :  { %v7333_v53 = vld [vmem:[#allocation10 + $0xf08] sm:$0xf]  ;;  %v6566_v60 = vor.u32 %v8048_v33, %v6565_v51  ;;  %3999 = vmatpush.bf16.msrb.mxu3 %v7142_v56  ;;  %v6407_v33 = vld [vmem:[#allocation10 + $0x7e8] sm:$0xf0] }
 0x1cd   :  { %v8240_v54 = vld [vmem:[#allocation10 + $0xf24] sm:$0xf0] }
 0x1ce   :  { %v6853_v57 = vld [vmem:[#allocation10 + $0xb48] sm:$0xf]  ;;  %v7334_v0 = vor.u32 %v8240_v54, %v7333_v53  ;;  %3975 = vmatpush.bf16.msrb.mxu1 %v6566_v60  ;;  %v5642_v60 = vor.u32 %v7812_v49, %v5639_v50  ;;  %v7780_v50 = vld [vmem:[#allocation10 + $0xcc] sm:$0xf] }
 0x1cf   :  { %v8120_v58 = vld [vmem:[#allocation10 + $0xb64] sm:$0xf0] }
 0x1d0   :  { %v7109_v61 = vld [vmem:[#allocation10 + $0xd48] sm:$0xf]  ;;  %v6854_v4 = vor.u32 %v8120_v58, %v6853_v57  ;;  %4014 = vmatpush.bf16.msra.mxu0 %v7334_v0 }
 0x1d1   :  { %v8184_v62 = vld [vmem:[#allocation10 + $0xd64] sm:$0xf0] }
 0x1d2   :  { %v6533_v1 = vld [vmem:[#allocation10 + $0x8c8] sm:$0xf]  ;;  %v7110_v7 = vor.u32 %v8184_v62, %v7109_v61  ;;  %3987 = vmatpush.bf16.msrb.mxu2 %v6854_v4  ;;  %v7804_v61 = vld [vmem:[#allocation10 + $0x18c] sm:$0xf]  ;;  %v6410_v62 = vor.u32 %v8004_v40, %v6407_v33 }
 0x1d3   :  { %v8040_v2 = vld [vmem:[#allocation10 + $0x8e4] sm:$0xf0]  ;;  %v6375_v4 = vld [vmem:[#allocation10 + $0x7a8] sm:$0xf0] }
 0x1d4   :  { %v7301_v5 = vld [vmem:[#allocation10 + $0xec8] sm:$0xf]  ;;  %v6534_v10 = vor.u32 %v8040_v2, %v6533_v1  ;;  %4000 = vmatpush.bf16.msrb.mxu3 %v7110_v7  ;;  %v5607_v1 = vld [vmem:[#allocation10 + $0x1a8] sm:$0xf0] }
 0x1d5   :  { %v8232_v6 = vld [vmem:[#allocation10 + $0xee4] sm:$0xf0]  ;;  %v7996_v2 = vld [vmem:[#allocation10 + $0x78c] sm:$0xf] }
 0x1d6   :  { %v6821_v8 = vld [vmem:[#allocation10 + $0xb08] sm:$0xf]  ;;  %v7302_v13 = vor.u32 %v8232_v6, %v7301_v5  ;;  %3976 = vmatpush.bf16.msrb.mxu1 %v6534_v10  ;;  %v7876_v10 = vld [vmem:[#allocation10 + $0x3cc] sm:$0xf] }
 0x1d7   :  { %v8112_v9 = vld [vmem:[#allocation10 + $0xb24] sm:$0xf0]  ;;  %v5511_v40 = vld [vmem:[#allocation10 + $0xe8] sm:$0xf0] }
 0x1d8   :  { %v7077_v11 = vld [vmem:[#allocation10 + $0xd08] sm:$0xf]  ;;  %v6822_v17 = vor.u32 %v8112_v9, %v6821_v8  ;;  %4015 = vmatpush.bf16.msra.mxu0 %v7302_v13  ;;  %v7940_v13 = vld [vmem:[#allocation10 + $0x5cc] sm:$0xf] }
 0x1d9   :  { %v8176_v12 = vld [vmem:[#allocation10 + $0xd24] sm:$0xf0]  ;;  %v7972_v33 = vld [vmem:[#allocation10 + $0x6cc] sm:$0xf] }
 0x1da   :  { %v6501_v14 = vld [vmem:[#allocation10 + $0x888] sm:$0xf]  ;;  %v7078_v21 = vor.u32 %v8176_v12, %v7077_v11  ;;  %3988 = vmatpush.bf16.msrb.mxu2 %v6822_v17  ;;  %v5895_v11 = vld [vmem:[#allocation10 + $0x3e8] sm:$0xf0]  ;;  %v5610_v12 = vor.u32 %v7804_v61, %v5607_v1 }
 0x1db   :  { %v8032_v16 = vld [vmem:[#allocation10 + $0x8a4] sm:$0xf0]  ;;  %v6055_v61 = vld [vmem:[#allocation10 + $0x528] sm:$0xf0] }
 0x1dc   :  { %v7269_v18 = vld [vmem:[#allocation10 + $0xe88] sm:$0xf]  ;;  %v6502_v24 = vor.u32 %v8032_v16, %v6501_v14  ;;  %4001 = vmatpush.bf16.msrb.mxu3 %v7078_v21  ;;  %v6151_v14 = vld [vmem:[#allocation10 + $0x5e8] sm:$0xf0]  ;;  %v6378_v16 = vor.u32 %v7996_v2, %v6375_v4 }
 0x1dd   :  { %v8224_v19 = vld [vmem:[#allocation10 + $0xea4] sm:$0xf0]  ;;  %v5479_v1 = vld [vmem:[#allocation10 + $0xa8] sm:$0xf0] }
 0x1de   :  { %v6789_v22 = vld [vmem:[#allocation10 + $0xac8] sm:$0xf]  ;;  %v7270_v28 = vor.u32 %v8224_v19, %v7269_v18  ;;  %3977 = vmatpush.bf16.msrb.mxu1 %v6502_v24  ;;  %v7796_v18 = vld [vmem:[#allocation10 + $0x14c] sm:$0xf] }
 0x1df   :  { %v8104_v23 = vld [vmem:[#allocation10 + $0xae4] sm:$0xf0]  ;;  %v5575_v19 = vld [vmem:[#allocation10 + $0x168] sm:$0xf0] }
 0x1e0   :  { %v7045_v26 = vld [vmem:[#allocation10 + $0xcc8] sm:$0xf]  ;;  %v6790_v32 = vor.u32 %v8104_v23, %v6789_v22  ;;  %4016 = vmatpush.bf16.msra.mxu0 %v7270_v28  ;;  %v5898_v22 = vor.u32 %v7876_v10, %v5895_v11  ;;  %v7988_v23 = vld [vmem:[#allocation10 + $0x74c] sm:$0xf] }
 0x1e1   :  { %v8168_v27 = vld [vmem:[#allocation10 + $0xce4] sm:$0xf0]  ;;  %v6343_v24 = vld [vmem:[#allocation10 + $0x768] sm:$0xf0] }
 0x1e2   :  { %v6469_v30 = vld [vmem:[#allocation10 + $0x848] sm:$0xf]  ;;  %v7046_v36 = vor.u32 %v8168_v27, %v7045_v26  ;;  %3989 = vmatpush.bf16.msrb.mxu2 %v6790_v32  ;;  %v6154_v26 = vor.u32 %v7940_v13, %v6151_v14  ;;  %v7868_v27 = vld [vmem:[#allocation10 + $0x38c] sm:$0xf] }
 0x1e3   :  { %v8024_v31 = vld [vmem:[#allocation10 + $0x864] sm:$0xf0]  ;;  %v5863_v28 = vld [vmem:[#allocation10 + $0x3a8] sm:$0xf0] }
 0x1e4   :  { %v7237_v34 = vld [vmem:[#allocation10 + $0xe48] sm:$0xf]  ;;  %v6470_v39 = vor.u32 %v8024_v31, %v6469_v30  ;;  %4002 = vmatpush.bf16.msrb.mxu3 %v7046_v36  ;;  %v5578_v30 = vor.u32 %v7796_v18, %v5575_v19  ;;  %v7932_v31 = vld [vmem:[#allocation10 + $0x58c] sm:$0xf] }
 0x1e5   :  { %v8216_v35 = vld [vmem:[#allocation10 + $0xe64] sm:$0xf0]  ;;  %v6119_v32 = vld [vmem:[#allocation10 + $0x5a8] sm:$0xf0] }
 0x1e6   :  { %v6757_v37 = vld [vmem:[#allocation10 + $0xa88] sm:$0xf]  ;;  %v7238_v44 = vor.u32 %v8216_v35, %v7237_v34  ;;  %3978 = vmatpush.bf16.msrb.mxu1 %v6470_v39  ;;  %v6346_v34 = vor.u32 %v7988_v23, %v6343_v24  ;;  %v7788_v35 = vld [vmem:[#allocation10 + $0x10c] sm:$0xf] }
 0x1e7   :  { %v8096_v38 = vld [vmem:[#allocation10 + $0xaa4] sm:$0xf0]  ;;  %v5543_v36 = vld [vmem:[#allocation10 + $0x128] sm:$0xf0] }
 0x1e8   :  { %v7013_v41 = vld [vmem:[#allocation10 + $0xc88] sm:$0xf]  ;;  %v6758_v48 = vor.u32 %v8096_v38, %v6757_v37  ;;  %4017 = vmatpush.bf16.msra.mxu0 %v7238_v44  ;;  %v5866_v37 = vor.u32 %v7868_v27, %v5863_v28  ;;  %v7980_v38 = vld [vmem:[#allocation10 + $0x70c] sm:$0xf]  ;;  %v3721_v44 = vpop.f32.mrf.mxu1  ;;  %v3734_v28 = vpop.f32.mrf.mxu2 }
 0x1e9   :  { %v8160_v42 = vld [vmem:[#allocation10 + $0xca4] sm:$0xf0]  ;;  %v6311_v39 = vld [vmem:[#allocation10 + $0x728] sm:$0xf0] }
 0x1ea   :  { %v6437_v43 = vld [vmem:[#allocation10 + $0x808] sm:$0xf]  ;;  %v7014_v51 = vor.u32 %v8160_v42, %v7013_v41  ;;  %3990 = vmatpush.bf16.msrb.mxu2 %v6758_v48  ;;  %v6122_v41 = vor.u32 %v7932_v31, %v6119_v32  ;;  %v7860_v42 = vld [vmem:[#allocation10 + $0x34c] sm:$0xf]  ;;  %v8771_v48 = vpop.f32.mrf.mxu0  ;;  %v6314_v49 = vor.u32 %v7980_v38, %v6311_v39 }
 0x1eb   :  { %v8016_v45 = vld [vmem:[#allocation10 + $0x824] sm:$0xf0]  ;;  %v7964_v4 = vld [vmem:[#allocation10 + $0x68c] sm:$0xf] }
 0x1ec   :  { %v7205_v46 = vld [vmem:[#allocation10 + $0xe08] sm:$0xf]  ;;  %v6438_v54 = vor.u32 %v8016_v45, %v6437_v43  ;;  %4003 = vmatpush.bf16.msrb.mxu3 %v7014_v51  ;;  %v5831_v43 = vld [vmem:[#allocation10 + $0x368] sm:$0xf0]  ;;  %v5546_v45 = vor.u32 %v7788_v35, %v5543_v36  ;;  %v3747_v36 = vpop.f32.mrf.mxu3 }
 0x1ed   :  { %v8208_v47 = vld [vmem:[#allocation10 + $0xe24] sm:$0xf0]  ;;  %v5834_v51 = vor.u32 %v7860_v42, %v5831_v43  ;;  %v6023_v13 = vld [vmem:[#allocation10 + $0x4e8] sm:$0xf0] }
 0x1ee   :  { %v6725_v52 = vld [vmem:[#allocation10 + $0xa48] sm:$0xf]  ;;  %v7206_v58 = vor.u32 %v8208_v47, %v7205_v46  ;;  %3979 = vmatpush.bf16.msrb.mxu1 %v6438_v54  ;;  %v7924_v46 = vld [vmem:[#allocation10 + $0x54c] sm:$0xf] }
 0x1ef   :  { %v8088_v53 = vld [vmem:[#allocation10 + $0xa64] sm:$0xf0]  ;;  %v6087_v47 = vld [vmem:[#allocation10 + $0x568] sm:$0xf0] }
 0x1f0   :  { %v6981_v56 = vld [vmem:[#allocation10 + $0xc48] sm:$0xf]  ;;  %v6726_v0 = vor.u32 %v8088_v53, %v6725_v52  ;;  %4018 = vmatpush.bf16.msra.mxu0 %v7206_v58  ;;  %v6279_v52 = vld [vmem:[#allocation10 + $0x6e8] sm:$0xf0]  ;;  %v6090_v53 = vor.u32 %v7924_v46, %v6087_v47  ;;  %v5514_v58 = vor.u32 %v7780_v50, %v5511_v40  ;;  %v3723_v10 = vpop.f32.mrf.mxu1 }
 0x1f1   :  { %v8152_v57 = vld [vmem:[#allocation10 + $0xc64] sm:$0xf0]  ;;  %3980 = vmatmul.bf16.vlgmr.msrb.gmra.mxu1 %v8743_v63  ;;  %v7852_v54 = vld [vmem:[#allocation10 + $0x30c] sm:$0xf]  ;;  %v3736_v10 = vpop.f32.mrf.mxu2 }
 0x1f2   :  { %v6982_v5 = vor.u32 %v8152_v57, %v6981_v56  ;;  %v6693_v6 = vld [vmem:[#allocation10 + $0xa08] sm:$0xf]  ;;  %4024 = vmatpush.bf16.msra.mxu1 %v5642_v60  ;;  %3991 = vmatpush.bf16.msrb.mxu2 %v6726_v0  ;;  %v5799_v56 = vld [vmem:[#allocation10 + $0x328] sm:$0xf0]  ;;  %v8773_v57 = vld [vmem:[#allocation11] sm:$0xff]  ;;  %v3762_v14 = vpop.f32.mrf.mxu0 }
 0x1f3   :  { %v8080_v7 = vld [vmem:[#allocation10 + $0xa24] sm:$0xf0]  ;;  %4019 = vmatmul.bf16.vlgmr.msra.gmra.mxu0 %v8745_v3  ;;  %v7916_v60 = vld [vmem:[#allocation10 + $0x50c] sm:$0xf]  ;;  %v5802_v2 = vor.u32 %v7852_v54, %v5799_v56 }
 0x1f4   :  { %v6949_v8 = vld [vmem:[#allocation10 + $0xc08] sm:$0xf]  ;;  %4063 = vmatpush.bf16.msrb.mxu0 %v6410_v62  ;;  %v6694_v17 = vor.u32 %v8080_v7, %v6693_v6  ;;  %4004 = vmatpush.bf16.msrb.mxu3 %v6982_v5  ;;  %v6282_v62 = vor.u32 %v7972_v33, %v6279_v52  ;;  %v7772_v0 = vld [vmem:[#allocation10 + $0x8c] sm:$0xf]  ;;  %v1136_v6 = vperm.slane %v8773_v57, 0  ;;  %v6058_v7 = vor.u32 %v7916_v60, %v6055_v61 }
 0x1f5   :  { %v8144_v9 = vld [vmem:[#allocation10 + $0xc24] sm:$0xf0]  ;;  %v6247_v5 = vld [vmem:[#allocation10 + $0x6a8] sm:$0xf0]  ;;  %v5482_v11 = vor.u32 %v7772_v0, %v5479_v1 }
 0x1f6   :  { %v6950_v21 = vor.u32 %v8144_v9, %v6949_v8  ;;  %4025 = vmatpush.bf16.msra.mxu1 %v5610_v12  ;;  %3992 = vmatpush.bf16.msrb.mxu2 %v6694_v17  ;;  %v7844_v8 = vld [vmem:[#allocation10 + $0x2cc] sm:$0xf]  ;;  %v3722_v23 = vadd.f32 %v3721_v44, %v1136_v6 }
 0x1f7   :  { %v5767_v9 = vld [vmem:[#allocation10 + $0x2e8] sm:$0xf0] }
 0x1f8   :  { %4064 = vmatpush.bf16.msrb.mxu0 %v6378_v16  ;;  %4005 = vmatpush.bf16.msrb.mxu3 %v6950_v21  ;;  %v7908_v12 = vld [vmem:[#allocation10 + $0x4cc] sm:$0xf]  ;;  %v6250_v16 = vor.u32 %v7964_v4, %v6247_v5  ;;  %v5770_v19 = vor.u32 %v7844_v8, %v5767_v9  ;;  %v3735_v35 = vadd.f32 %v3734_v28, %v3722_v23 }
 0x1f9   :  { %3993 = vmatmul.bf16.vlgmr.msrb.gmra.mxu2 %v8749_v25  ;;  %v7764_v17 = vld [vmem:[#allocation10 + $0x4c] sm:$0xf]  ;;  %v6026_v24 = vor.u32 %v7908_v12, %v6023_v13  ;;  %v3749_v13 = vpop.f32.mrf.mxu3 }
 0x1fa   :  { %4037 = vmatpush.bf16.msra.mxu2 %v5898_v22  ;;  %4026 = vmatpush.bf16.msra.mxu1 %v5578_v30  ;;  %v5447_v18 = vld [vmem:[#allocation10 + $0x68] sm:$0xf0]  ;;  %v3748_v46 = vadd.f32 %v3747_v36, %v3735_v35  ;;  %v8777_v56 = vpop.f32.mrf.mxu0 }
 0x1fb   :  { %4006 = vmatmul.bf16.vlgmr.msrb.gmra.mxu3 %v8751_v29  ;;  %v7956_v21 = vld [vmem:[#allocation10 + $0x64c] sm:$0xf]  ;;  %v5450_v30 = vor.u32 %v7764_v17, %v5447_v18 }
 0x1fc   :  { %4050 = vmatpush.bf16.msra.mxu3 %v6154_v26  ;;  %4065 = vmatpush.bf16.msrb.mxu0 %v6346_v34  ;;  %v6215_v22 = vld [vmem:[#allocation10 + $0x668] sm:$0xf0]  ;;  %v3761_v54 = vadd.f32 %v8771_v48, %v3748_v46 }
 0x1fd   :  { %v7836_v26 = vld [vmem:[#allocation10 + $0x28c] sm:$0xf] }
 0x1fe   :  { %4038 = vmatpush.bf16.msra.mxu2 %v5866_v37  ;;  %4027 = vmatpush.bf16.msra.mxu1 %v5546_v45  ;;  %v5735_v27 = vld [vmem:[#allocation10 + $0x2a8] sm:$0xf0]  ;;  %v6218_v37 = vor.u32 %v7956_v21, %v6215_v22 }
 0x1ff   :  { %v7900_v31 = vld [vmem:[#allocation10 + $0x48c] sm:$0xf]  ;;  %v5738_v42 = vor.u32 %v7836_v26, %v5735_v27 }
 0x200   :  { %4051 = vmatpush.bf16.msra.mxu3 %v6122_v41  ;;  %4066 = vmatpush.bf16.msrb.mxu0 %v6314_v49  ;;  %v5991_v32 = vld [vmem:[#allocation10 + $0x4a8] sm:$0xf0] }
 0x201   :  { %v7756_v34 = vld [vmem:[#allocation10 + $0xc] sm:$0xf]  ;;  %v5994_v47 = vor.u32 %v7900_v31, %v5991_v32 }
 0x202   :  { %4039 = vmatpush.bf16.msra.mxu2 %v5834_v51  ;;  %4028 = vmatpush.bf16.msra.mxu1 %v5514_v58  ;;  %v5415_v38 = vld [vmem:[#allocation10 + $0x28] sm:$0xf0]  ;;  %v3773_v51 = vpop.f32.mrf.mxu1 }
 0x203   :  { %v7948_v39 = vld [vmem:[#allocation10 + $0x60c] sm:$0xf]  ;;  %v5418_v33 = vor.u32 %v7756_v34, %v5415_v38  ;;  %v3774_v5 = vadd.f32 %v3773_v51, %v3761_v54  ;;  %v3814_v34 = vpop.f32.mrf.mxu0 }
 0x204   :  { %4052 = vmatpush.bf16.msra.mxu3 %v6090_v53  ;;  %4067 = vmatpush.bf16.msrb.mxu0 %v6282_v62  ;;  %v6183_v41 = vld [vmem:[#allocation10 + $0x628] sm:$0xf0] }
 0x205   :  { %v8068_v43 = vld [vmem:[#allocation10 + $0x9cc] sm:$0xf]  ;;  %v6186_v58 = vor.u32 %v7948_v39, %v6183_v41 }
 0x206   :  { %4040 = vmatpush.bf16.msra.mxu2 %v5802_v2  ;;  %4029 = vmatpush.bf16.msra.mxu1 %v5482_v11  ;;  %v6663_v44 = vld [vmem:[#allocation10 + $0x9e8] sm:$0xf0] }
 0x207   :  { %v8260_v45 = vld [vmem:[#allocation10 + $0xfcc] sm:$0xf]  ;;  %v6666_v60 = vor.u32 %v8068_v43, %v6663_v44 }
 0x208   :  { %4053 = vmatpush.bf16.msra.mxu3 %v6058_v7  ;;  %4068 = vmatpush.bf16.msrb.mxu0 %v6250_v16  ;;  %v7431_v49 = vld [vmem:[#allocation10 + $0xfe8] sm:$0xf0] }
 0x209   :  { %v7828_v50 = vld [vmem:[#allocation10 + $0x24c] sm:$0xf]  ;;  %v7434_v62 = vor.u32 %v8260_v45, %v7431_v49  ;;  %v3786_v45 = vpop.f32.mrf.mxu2 }
 0x20a   :  { %4041 = vmatpush.bf16.msra.mxu2 %v5770_v19  ;;  %v5703_v40 = vld [vmem:[#allocation10 + $0x268] sm:$0xf0]  ;;  %4030 = vmatpush.bf16.msra.mxu1 %v5450_v30  ;;  %v3775_v28 = vpop.f32.mrf.mxu1 }
 0x20b   :  { %v7892_v52 = vld [vmem:[#allocation10 + $0x44c] sm:$0xf]  ;;  %v5706_v0 = vor.u32 %v7828_v50, %v5703_v40  ;;  %v3787_v50 = vadd.f32 %v3786_v45, %v3774_v5  ;;  %v3799_v40 = vpop.f32.mrf.mxu3 }
 0x20c   :  { %4054 = vmatpush.bf16.msra.mxu3 %v6026_v24  ;;  %v5959_v53 = vld [vmem:[#allocation10 + $0x468] sm:$0xf0]  ;;  %4069 = vmatpush.bf16.msrb.mxu0 %v6218_v37 }
 0x20d   :  { %v8060_v61 = vld [vmem:[#allocation10 + $0x98c] sm:$0xf]  ;;  %v5962_v6 = vor.u32 %v7892_v52, %v5959_v53 }
 0x20e   :  { %4042 = vmatpush.bf16.msra.mxu2 %v5738_v42  ;;  %v6631_v1 = vld [vmem:[#allocation10 + $0x9a8] sm:$0xf0]  ;;  %4031 = vmatpush.bf16.msra.mxu1 %v5418_v33 }
 0x20f   :  { %v8252_v2 = vld [vmem:[#allocation10 + $0xf8c] sm:$0xf]  ;;  %v6634_v14 = vor.u32 %v8060_v61, %v6631_v1 }
 0x210   :  { %v7399_v4 = vld [vmem:[#allocation10 + $0xfa8] sm:$0xf0]  ;;  %4055 = vmatpush.bf16.msra.mxu3 %v5994_v47  ;;  %4070 = vmatpush.bf16.msrb.mxu0 %v6186_v58 }
 0x211   :  { %v7820_v7 = vld [vmem:[#allocation10 + $0x20c] sm:$0xf]  ;;  %v7402_v18 = vor.u32 %v8252_v2, %v7399_v4  ;;  %4032 = vmatmul.bf16.vlgmr.msra.gmra.mxu1 %v8727_v55 }
 0x212   :  { %v5671_v8 = vld [vmem:[#allocation10 + $0x228] sm:$0xf0]  ;;  %4076 = vmatpush.bf16.msrb.mxu1 %v6666_v60  ;;  %4043 = vmatpush.bf16.msra.mxu2 %v5706_v0  ;;  %v3800_v60 = vadd.f32 %v3799_v40, %v3787_v50  ;;  %v3825_v1 = vpop.f32.mrf.mxu1 }
 0x213   :  { %v7884_v9 = vld [vmem:[#allocation10 + $0x40c] sm:$0xf]  ;;  %v5674_v19 = vor.u32 %v7820_v7, %v5671_v8  ;;  %4071 = vmatmul.bf16.vlgmr.msrb.gmra.mxu0 %v8729_v59  ;;  %v8786_v7 = vpop.f32.mrf.mxu0 }
 0x214   :  { %v5927_v48 = vld [vmem:[#allocation10 + $0x428] sm:$0xf0]  ;;  %4115 = vmatpush.bf16.msra.mxu0 %v7434_v62  ;;  %4056 = vmatpush.bf16.msra.mxu3 %v5962_v6  ;;  %v8784_v6 = vadd.f32 %v8777_v56, %v3800_v60 }
 0x215   :  { %v8132_v11 = vld [vmem:[#allocation10 + $0xbcc] sm:$0xf]  ;;  %v5930_v23 = vor.u32 %v7884_v9, %v5927_v48 }
 0x216   :  { %v6919_v12 = vld [vmem:[#allocation10 + $0xbe8] sm:$0xf0]  ;;  %4077 = vmatpush.bf16.msrb.mxu1 %v6634_v14  ;;  %4044 = vmatpush.bf16.msra.mxu2 %v5674_v19  ;;  %8364 = vtanh.f32 %v8784_v6 }
 0x217   :  { %v8196_v16 = vld [vmem:[#allocation10 + $0xdcc] sm:$0xf]  ;;  %v6922_v24 = vor.u32 %v8132_v11, %v6919_v12 }
 0x218   :  { %v7175_v17 = vld [vmem:[#allocation10 + $0xde8] sm:$0xf0]  ;;  %4116 = vmatpush.bf16.msra.mxu0 %v7402_v18  ;;  %4057 = vmatpush.bf16.msra.mxu3 %v5930_v23 }
 0x219   :  { %v8052_v21 = vld [vmem:[#allocation10 + $0x94c] sm:$0xf]  ;;  %v7178_v30 = vor.u32 %v8196_v16, %v7175_v17  ;;  %4045 = vmatmul.bf16.vlgmr.msra.gmra.mxu2 %v8735_v15  ;;  %v3788_v17 = vpop.f32.mrf.mxu2 }
 0x21a   :  { %v6599_v22 = vld [vmem:[#allocation10 + $0x968] sm:$0xf0]  ;;  %4089 = vmatpush.bf16.msrb.mxu2 %v6922_v24 }
 0x21b   :  { %v8244_v26 = vld [vmem:[#allocation10 + $0xf4c] sm:$0xf]  ;;  %v6602_v35 = vor.u32 %v8052_v21, %v6599_v22  ;;  %4058 = vmatmul.bf16.vlgmr.msra.gmra.mxu3 %v8737_v20  ;;  %v3801_v21 = vpop.f32.mrf.mxu3 }
 0x21c   :  { %v7367_v27 = vld [vmem:[#allocation10 + $0xf68] sm:$0xf0]  ;;  %4102 = vmatpush.bf16.msrb.mxu3 %v7178_v30  ;;  %v1137_v30 = vperm.slane %v8773_v57, 1  ;;  %v5901_v21 = vld [vmem:[#allocation10 + $0x3d0] sm:$0xf] }
 0x21d   :  { %v8124_v31 = vld [vmem:[#allocation10 + $0xb8c] sm:$0xf]  ;;  %v7370_v38 = vor.u32 %v8244_v26, %v7367_v27  ;;  %4078 = vmatpush.bf16.msrb.mxu1 %v6602_v35  ;;  %v3827_v35 = vpop.f32.mrf.mxu1 }
 0x21e   :  { %v6887_v32 = vld [vmem:[#allocation10 + $0xba8] sm:$0xf0]  ;;  %v3826_v50 = vadd.f32 %v3825_v1, %v1137_v30 }
 0x21f   :  { %v8188_v36 = vld [vmem:[#allocation10 + $0xd8c] sm:$0xf]  ;;  %v6890_v42 = vor.u32 %v8124_v31, %v6887_v32  ;;  %4117 = vmatpush.bf16.msra.mxu0 %v7370_v38 }
 0x220   :  { %v7143_v37 = vld [vmem:[#allocation10 + $0xda8] sm:$0xf0] }
 0x221   :  { %v8044_v39 = vld [vmem:[#allocation10 + $0x90c] sm:$0xf]  ;;  %v7146_v46 = vor.u32 %v8188_v36, %v7143_v37  ;;  %4090 = vmatpush.bf16.msrb.mxu2 %v6890_v42 }
 0x222   :  { %v6567_v41 = vld [vmem:[#allocation10 + $0x928] sm:$0xf0] }
 0x223   :  { %v8236_v43 = vld [vmem:[#allocation10 + $0xf0c] sm:$0xf]  ;;  %v6570_v51 = vor.u32 %v8044_v39, %v6567_v41  ;;  %4103 = vmatpush.bf16.msrb.mxu3 %v7146_v46  ;;  %v3866_v39 = vpop.f32.mrf.mxu0 }
 0x224   :  { %v7335_v44 = vld [vmem:[#allocation10 + $0xf28] sm:$0xf0] }
 0x225   :  { %v8116_v47 = vld [vmem:[#allocation10 + $0xb4c] sm:$0xf]  ;;  %v7338_v53 = vor.u32 %v8236_v43, %v7335_v44  ;;  %4079 = vmatpush.bf16.msrb.mxu1 %v6570_v51  ;;  %v5645_v51 = vld [vmem:[#allocation10 + $0x1d0] sm:$0xf] }
 0x226   :  { %v6855_v49 = vld [vmem:[#allocation10 + $0xb68] sm:$0xf0] }
 0x227   :  { %v8180_v33 = vld [vmem:[#allocation10 + $0xd4c] sm:$0xf]  ;;  %v6858_v61 = vor.u32 %v8116_v47, %v6855_v49  ;;  %4118 = vmatpush.bf16.msra.mxu0 %v7338_v53  ;;  %v3838_v53 = vpop.f32.mrf.mxu2 }
 0x228   :  { %v7111_v52 = vld [vmem:[#allocation10 + $0xd68] sm:$0xf0] }
 0x229   :  { %v8036_v54 = vld [vmem:[#allocation10 + $0x8cc] sm:$0xf]  ;;  %v7114_v2 = vor.u32 %v8180_v33, %v7111_v52  ;;  %4091 = vmatpush.bf16.msrb.mxu2 %v6858_v61  ;;  %v7817_v33 = vld [vmem:[#allocation10 + $0x1ec] sm:$0xf0] }
 0x22a   :  { %v6535_v58 = vld [vmem:[#allocation10 + $0x8e8] sm:$0xf0]  ;;  %v6413_v52 = vld [vmem:[#allocation10 + $0x7d0] sm:$0xf]  ;;  %v5646_v1 = vor.u32 %v7817_v33, %v5645_v51 }
 0x22b   :  { %v8228_v62 = vld [vmem:[#allocation10 + $0xecc] sm:$0xf]  ;;  %v6538_v8 = vor.u32 %v8036_v54, %v6535_v58  ;;  %4104 = vmatpush.bf16.msrb.mxu3 %v7114_v2  ;;  %v8009_v58 = vld [vmem:[#allocation10 + $0x7ec] sm:$0xf0] }
 0x22c   :  { %v7303_v0 = vld [vmem:[#allocation10 + $0xee8] sm:$0xf0]  ;;  %v7985_v51 = vld [vmem:[#allocation10 + $0x72c] sm:$0xf0] }
 0x22d   :  { %v8108_v4 = vld [vmem:[#allocation10 + $0xb0c] sm:$0xf]  ;;  %v7306_v48 = vor.u32 %v8228_v62, %v7303_v0  ;;  %4080 = vmatpush.bf16.msrb.mxu1 %v6538_v8  ;;  %v3839_v62 = vadd.f32 %v3838_v53, %v3826_v50  ;;  %v3851_v0 = vpop.f32.mrf.mxu3  ;;  %v7865_v53 = vld [vmem:[#allocation10 + $0x36c] sm:$0xf0] }
 0x22e   :  { %v6823_v5 = vld [vmem:[#allocation10 + $0xb28] sm:$0xf0] }
 0x22f   :  { %v8172_v9 = vld [vmem:[#allocation10 + $0xd0c] sm:$0xf]  ;;  %v6826_v13 = vor.u32 %v8108_v4, %v6823_v5  ;;  %4119 = vmatpush.bf16.msra.mxu0 %v7306_v48  ;;  %v6414_v48 = vor.u32 %v8009_v58, %v6413_v52  ;;  %v5837_v52 = vld [vmem:[#allocation10 + $0x350] sm:$0xf] }
 0x230   :  { %v7079_v10 = vld [vmem:[#allocation10 + $0xd28] sm:$0xf0]  ;;  %v6093_v58 = vld [vmem:[#allocation10 + $0x550] sm:$0xf] }
 0x231   :  { %v8028_v11 = vld [vmem:[#allocation10 + $0x88c] sm:$0xf]  ;;  %v7082_v18 = vor.u32 %v8172_v9, %v7079_v10  ;;  %4092 = vmatpush.bf16.msrb.mxu2 %v6826_v13  ;;  %v5613_v9 = vld [vmem:[#allocation10 + $0x190] sm:$0xf]  ;;  %v3852_v10 = vadd.f32 %v3851_v0, %v3839_v62 }
 0x232   :  { %v6503_v12 = vld [vmem:[#allocation10 + $0x8a8] sm:$0xf0]  ;;  %v6381_v13 = vld [vmem:[#allocation10 + $0x790] sm:$0xf] }
 0x233   :  { %v8220_v14 = vld [vmem:[#allocation10 + $0xe8c] sm:$0xf]  ;;  %v6506_v22 = vor.u32 %v8028_v11, %v6503_v12  ;;  %4105 = vmatpush.bf16.msrb.mxu3 %v7082_v18  ;;  %v7809_v12 = vld [vmem:[#allocation10 + $0x1ac] sm:$0xf0] }
 0x234   :  { %v7271_v16 = vld [vmem:[#allocation10 + $0xea8] sm:$0xf0]  ;;  %v5517_v62 = vld [vmem:[#allocation10 + $0xd0] sm:$0xf] }
 0x235   :  { %v8100_v19 = vld [vmem:[#allocation10 + $0xacc] sm:$0xf]  ;;  %v7274_v26 = vor.u32 %v8220_v14, %v7271_v16  ;;  %4081 = vmatpush.bf16.msrb.mxu1 %v6506_v22  ;;  %v8001_v14 = vld [vmem:[#allocation10 + $0x7ac] sm:$0xf0] }
 0x236   :  { %v6791_v56 = vld [vmem:[#allocation10 + $0xae8] sm:$0xf0]  ;;  %v7881_v22 = vld [vmem:[#allocation10 + $0x3ec] sm:$0xf0] }
 0x237   :  { %v8164_v23 = vld [vmem:[#allocation10 + $0xccc] sm:$0xf]  ;;  %v6794_v31 = vor.u32 %v8100_v19, %v6791_v56  ;;  %4120 = vmatpush.bf16.msra.mxu0 %v7274_v26  ;;  %v6157_v26 = vld [vmem:[#allocation10 + $0x5d0] sm:$0xf] }
 0x238   :  { %v7047_v24 = vld [vmem:[#allocation10 + $0xce8] sm:$0xf0]  ;;  %v7785_v0 = vld [vmem:[#allocation10 + $0xec] sm:$0xf0] }
 0x239   :  { %v8020_v27 = vld [vmem:[#allocation10 + $0x84c] sm:$0xf]  ;;  %v7050_v36 = vor.u32 %v8164_v23, %v7047_v24  ;;  %4093 = vmatpush.bf16.msrb.mxu2 %v6794_v31  ;;  %v3865_v23 = vadd.f32 %v8786_v7, %v3852_v10  ;;  %v5614_v24 = vor.u32 %v7809_v12, %v5613_v9  ;;  %v5581_v31 = vld [vmem:[#allocation10 + $0x150] sm:$0xf]  ;;  %v3853_v7 = vpop.f32.mrf.mxu3  ;;  %v5518_v12 = vor.u32 %v7785_v0, %v5517_v62 }
 0x23a   :  { %v6471_v28 = vld [vmem:[#allocation10 + $0x868] sm:$0xf0]  ;;  %v5805_v9 = vld [vmem:[#allocation10 + $0x310] sm:$0xf] }
 0x23b   :  { %v8212_v32 = vld [vmem:[#allocation10 + $0xe4c] sm:$0xf]  ;;  %v6474_v41 = vor.u32 %v8020_v27, %v6471_v28  ;;  %4106 = vmatpush.bf16.msrb.mxu3 %v7050_v36  ;;  %v7945_v27 = vld [vmem:[#allocation10 + $0x5ec] sm:$0xf0]  ;;  %v6382_v28 = vor.u32 %v8001_v14, %v6381_v13  ;;  %v5902_v36 = vor.u32 %v7881_v22, %v5901_v21 }
 0x23c   :  { %v7239_v34 = vld [vmem:[#allocation10 + $0xe68] sm:$0xf0]  ;;  %v6158_v39 = vor.u32 %v7945_v27, %v6157_v26  ;;  %v7857_v10 = vld [vmem:[#allocation10 + $0x32c] sm:$0xf0] }
 0x23d   :  { %v8092_v37 = vld [vmem:[#allocation10 + $0xa8c] sm:$0xf]  ;;  %v7242_v45 = vor.u32 %v8212_v32, %v7239_v34  ;;  %4082 = vmatpush.bf16.msrb.mxu1 %v6474_v41  ;;  %v7801_v32 = vld [vmem:[#allocation10 + $0x16c] sm:$0xf0]  ;;  %v3840_v34 = vpop.f32.mrf.mxu2 }
 0x23e   :  { %v6759_v38 = vld [vmem:[#allocation10 + $0xaa8] sm:$0xf0]  ;;  %v5869_v41 = vld [vmem:[#allocation10 + $0x390] sm:$0xf] }
 0x23f   :  { %v8156_v42 = vld [vmem:[#allocation10 + $0xc8c] sm:$0xf]  ;;  %v6762_v40 = vor.u32 %v8092_v37, %v6759_v38  ;;  %4121 = vmatpush.bf16.msra.mxu0 %v7242_v45  ;;  %v6349_v37 = vld [vmem:[#allocation10 + $0x750] sm:$0xf] }
 0x240   :  { %v7015_v43 = vld [vmem:[#allocation10 + $0xca8] sm:$0xf0]  ;;  %v7993_v38 = vld [vmem:[#allocation10 + $0x76c] sm:$0xf0] }
 0x241   :  { %v8012_v44 = vld [vmem:[#allocation10 + $0x80c] sm:$0xf]  ;;  %v7018_v54 = vor.u32 %v8156_v42, %v7015_v43  ;;  %4094 = vmatpush.bf16.msrb.mxu2 %v6762_v40  ;;  %v7873_v42 = vld [vmem:[#allocation10 + $0x3ac] sm:$0xf0]  ;;  %v5582_v43 = vor.u32 %v7801_v32, %v5581_v31  ;;  %v3903_v0 = vpop.f32.mrf.mxu3 }
 0x242   :  { %v6439_v46 = vld [vmem:[#allocation10 + $0x828] sm:$0xf0]  ;;  %v7937_v45 = vld [vmem:[#allocation10 + $0x5ac] sm:$0xf0]  ;;  %v5870_v50 = vor.u32 %v7873_v42, %v5869_v41 }
 0x243   :  { %v8204_v47 = vld [vmem:[#allocation10 + $0xe0c] sm:$0xf]  ;;  %v6442_v2 = vor.u32 %v8012_v44, %v6439_v46  ;;  %4107 = vmatpush.bf16.msrb.mxu3 %v7018_v54  ;;  %v6125_v44 = vld [vmem:[#allocation10 + $0x590] sm:$0xf]  ;;  %v6350_v46 = vor.u32 %v7993_v38, %v6349_v37 }
 0x244   :  { %v7207_v49 = vld [vmem:[#allocation10 + $0xe28] sm:$0xf0]  ;;  %v6317_v40 = vld [vmem:[#allocation10 + $0x710] sm:$0xf]  ;;  %v6126_v33 = vor.u32 %v7937_v45, %v6125_v44 }
 0x245   :  { %v8084_v60 = vld [vmem:[#allocation10 + $0xa4c] sm:$0xf]  ;;  %v7210_v8 = vor.u32 %v8204_v47, %v7207_v49  ;;  %4083 = vmatpush.bf16.msrb.mxu1 %v6442_v2  ;;  %v5549_v47 = vld [vmem:[#allocation10 + $0x110] sm:$0xf]  ;;  %v5838_v2 = vor.u32 %v7865_v53, %v5837_v52  ;;  %v3890_v53 = vpop.f32.mrf.mxu2 }
 0x246   :  { %v6727_v61 = vld [vmem:[#allocation10 + $0xa68] sm:$0xf0]  ;;  %v7793_v49 = vld [vmem:[#allocation10 + $0x12c] sm:$0xf0] }
 0x247   :  { %v8148_v4 = vld [vmem:[#allocation10 + $0xc4c] sm:$0xf]  ;;  %v6730_v11 = vor.u32 %v8084_v60, %v6727_v61  ;;  %4122 = vmatpush.bf16.msra.mxu0 %v7210_v8  ;;  %v5550_v54 = vor.u32 %v7793_v49, %v5549_v47  ;;  %v7929_v60 = vld [vmem:[#allocation10 + $0x56c] sm:$0xf0]  ;;  %v6318_v61 = vor.u32 %v7985_v51, %v6317_v40  ;;  %v3877_v8 = vpop.f32.mrf.mxu1 }
 0x248   :  { %v6983_v5 = vld [vmem:[#allocation10 + $0xc68] sm:$0xf0]  ;;  %4084 = vmatmul.bf16.vlgmr.msrb.gmra.mxu1 %v8743_v63  ;;  %v6061_v13 = vld [vmem:[#allocation10 + $0x510] sm:$0xf] }
 0x249   :  { %v6986_v16 = vor.u32 %v8148_v4, %v6983_v5  ;;  %v8076_v17 = vld [vmem:[#allocation10 + $0xa0c] sm:$0xf]  ;;  %4128 = vmatpush.bf16.msra.mxu1 %v5646_v1  ;;  %4095 = vmatpush.bf16.msrb.mxu2 %v6730_v11  ;;  %v6285_v4 = vld [vmem:[#allocation10 + $0x6d0] sm:$0xf]  ;;  %v6094_v1 = vor.u32 %v7929_v60, %v6093_v58  ;;  %v8794_v11 = vpop.f32.mrf.mxu0 }
 0x24a   :  { %v6695_v18 = vld [vmem:[#allocation10 + $0xa28] sm:$0xf0]  ;;  %4123 = vmatmul.bf16.vlgmr.msra.gmra.mxu0 %v8745_v3  ;;  %v7977_v5 = vld [vmem:[#allocation10 + $0x6ec] sm:$0xf0] }
 0x24b   :  { %v8140_v19 = vld [vmem:[#allocation10 + $0xc0c] sm:$0xf]  ;;  %4167 = vmatpush.bf16.msrb.mxu0 %v6414_v48  ;;  %v6698_v30 = vor.u32 %v8076_v17, %v6695_v18  ;;  %4108 = vmatpush.bf16.msrb.mxu3 %v6986_v16  ;;  %v3878_v48 = vadd.f32 %v3877_v8, %v3865_v23  ;;  %v7921_v14 = vld [vmem:[#allocation10 + $0x52c] sm:$0xf0]  ;;  %v6286_v16 = vor.u32 %v7977_v5, %v6285_v4 }
 0x24c   :  { %v6951_v56 = vld [vmem:[#allocation10 + $0xc28] sm:$0xf0]  ;;  %v5485_v17 = vld [vmem:[#allocation10 + $0x90] sm:$0xf]  ;;  %v6062_v22 = vor.u32 %v7921_v14, %v6061_v13 }
 0x24d   :  { %v6954_v35 = vor.u32 %v8140_v19, %v6951_v56  ;;  %4129 = vmatpush.bf16.msra.mxu1 %v5614_v24  ;;  %4096 = vmatpush.bf16.msrb.mxu2 %v6698_v30  ;;  %v7777_v18 = vld [vmem:[#allocation10 + $0xac] sm:$0xf0]  ;;  %v5806_v19 = vor.u32 %v7857_v10, %v5805_v9  ;;  %v3891_v62 = vadd.f32 %v3890_v53, %v3878_v48 }
 0x24e   :  { %v6253_v56 = vld [vmem:[#allocation10 + $0x690] sm:$0xf]  ;;  %v5486_v23 = vor.u32 %v7777_v18, %v5485_v17 }
 0x24f   :  { %4168 = vmatpush.bf16.msrb.mxu0 %v6382_v28  ;;  %4109 = vmatpush.bf16.msrb.mxu3 %v6954_v35  ;;  %v7969_v21 = vld [vmem:[#allocation10 + $0x6ac] sm:$0xf0]  ;;  %v3879_v37 = vpop.f32.mrf.mxu1  ;;  %v3904_v10 = vadd.f32 %v3903_v0, %v3891_v62 }
 0x250   :  { %4097 = vmatmul.bf16.vlgmr.msrb.gmra.mxu2 %v8749_v25  ;;  %v5773_v24 = vld [vmem:[#allocation10 + $0x2d0] sm:$0xf]  ;;  %v6254_v30 = vor.u32 %v7969_v21, %v6253_v56 }
 0x251   :  { %4141 = vmatpush.bf16.msra.mxu2 %v5902_v36  ;;  %4130 = vmatpush.bf16.msra.mxu1 %v5582_v43  ;;  %v7849_v26 = vld [vmem:[#allocation10 + $0x2ec] sm:$0xf0]  ;;  %v3918_v41 = vpop.f32.mrf.mxu0  ;;  %v8797_v21 = vadd.f32 %v8794_v11, %v3904_v10 }
 0x252   :  { %4110 = vmatmul.bf16.vlgmr.msrb.gmra.mxu3 %v8751_v29  ;;  %v6029_v27 = vld [vmem:[#allocation10 + $0x4d0] sm:$0xf]  ;;  %v5774_v34 = vor.u32 %v7849_v26, %v5773_v24 }
 0x253   :  { %4154 = vmatpush.bf16.msra.mxu3 %v6158_v39  ;;  %4169 = vmatpush.bf16.msrb.mxu0 %v6350_v46  ;;  %v7913_v28 = vld [vmem:[#allocation10 + $0x4ec] sm:$0xf0] }
 0x254   :  { %v5453_v31 = vld [vmem:[#allocation10 + $0x50] sm:$0xf]  ;;  %v6030_v38 = vor.u32 %v7913_v28, %v6029_v27 }
 0x255   :  { %4142 = vmatpush.bf16.msra.mxu2 %v5870_v50  ;;  %4131 = vmatpush.bf16.msra.mxu1 %v5550_v54  ;;  %v7769_v32 = vld [vmem:[#allocation10 + $0x6c] sm:$0xf0] }
 0x256   :  { %v6221_v35 = vld [vmem:[#allocation10 + $0x650] sm:$0xf]  ;;  %v5454_v42 = vor.u32 %v7769_v32, %v5453_v31 }
 0x257   :  { %4155 = vmatpush.bf16.msra.mxu3 %v6126_v33  ;;  %4170 = vmatpush.bf16.msrb.mxu0 %v6318_v61  ;;  %v7961_v36 = vld [vmem:[#allocation10 + $0x66c] sm:$0xf0] }
 0x258   :  { %v5741_v7 = vld [vmem:[#allocation10 + $0x290] sm:$0xf]  ;;  %v6222_v46 = vor.u32 %v7961_v36, %v6221_v35  ;;  %v3892_v35 = vpop.f32.mrf.mxu2 }
 0x259   :  { %4143 = vmatpush.bf16.msra.mxu2 %v5838_v2  ;;  %4132 = vmatpush.bf16.msra.mxu1 %v5518_v12  ;;  %v7841_v39 = vld [vmem:[#allocation10 + $0x2ac] sm:$0xf0]  ;;  %v1138_v35 = vperm.slane %v8773_v57, 2 }
 0x25a   :  { %v5997_v43 = vld [vmem:[#allocation10 + $0x490] sm:$0xf]  ;;  %v5742_v40 = vor.u32 %v7841_v39, %v5741_v7  ;;  %v3905_v7 = vpop.f32.mrf.mxu3 }
 0x25b   :  { %4156 = vmatpush.bf16.msra.mxu3 %v6094_v1  ;;  %4171 = vmatpush.bf16.msrb.mxu0 %v6286_v16  ;;  %v7905_v44 = vld [vmem:[#allocation10 + $0x4ac] sm:$0xf0] }
 0x25c   :  { %v5421_v45 = vld [vmem:[#allocation10 + $0x10] sm:$0xf]  ;;  %v5998_v54 = vor.u32 %v7905_v44, %v5997_v43 }
 0x25d   :  { %4144 = vmatpush.bf16.msra.mxu2 %v5806_v19  ;;  %4133 = vmatpush.bf16.msra.mxu1 %v5486_v23  ;;  %v7761_v47 = vld [vmem:[#allocation10 + $0x2c] sm:$0xf0] }
 0x25e   :  { %v6189_v49 = vld [vmem:[#allocation10 + $0x610] sm:$0xf]  ;;  %v5422_v2 = vor.u32 %v7761_v47, %v5421_v45 }
 0x25f   :  { %4157 = vmatpush.bf16.msra.mxu3 %v6062_v22  ;;  %4172 = vmatpush.bf16.msrb.mxu0 %v6254_v30  ;;  %v7953_v50 = vld [vmem:[#allocation10 + $0x62c] sm:$0xf0] }
 0x260   :  { %v6669_v51 = vld [vmem:[#allocation10 + $0x9d0] sm:$0xf]  ;;  %v6190_v8 = vor.u32 %v7953_v50, %v6189_v49 }
 0x261   :  { %4145 = vmatpush.bf16.msra.mxu2 %v5774_v34  ;;  %v8073_v33 = vld [vmem:[#allocation10 + $0x9ec] sm:$0xf0]  ;;  %4134 = vmatpush.bf16.msra.mxu1 %v5454_v42 }
 0x262   :  { %v7437_v52 = vld [vmem:[#allocation10 + $0xfd0] sm:$0xf]  ;;  %v6670_v1 = vor.u32 %v8073_v33, %v6669_v51 }
 0x263   :  { %4158 = vmatpush.bf16.msra.mxu3 %v6030_v38  ;;  %v8265_v58 = vld [vmem:[#allocation10 + $0xfec] sm:$0xf0]  ;;  %4173 = vmatpush.bf16.msrb.mxu0 %v6222_v46 }
 0x264   :  { %v5709_v60 = vld [vmem:[#allocation10 + $0x250] sm:$0xf]  ;;  %v7438_v12 = vor.u32 %v8265_v58, %v7437_v52 }
 0x265   :  { %v7833_v61 = vld [vmem:[#allocation10 + $0x26c] sm:$0xf0]  ;;  %4146 = vmatpush.bf16.msra.mxu2 %v5742_v40  ;;  %4135 = vmatpush.bf16.msra.mxu1 %v5422_v2 }
 0x266   :  { %v5965_v4 = vld [vmem:[#allocation10 + $0x450] sm:$0xf]  ;;  %v5710_v13 = vor.u32 %v7833_v61, %v5709_v60 }
 0x267   :  { %v7897_v5 = vld [vmem:[#allocation10 + $0x46c] sm:$0xf0]  ;;  %4159 = vmatpush.bf16.msra.mxu3 %v5998_v54  ;;  %4174 = vmatpush.bf16.msrb.mxu0 %v6190_v8  ;;  %v3929_v8 = vpop.f32.mrf.mxu1 }
 0x268   :  { %v6637_v9 = vld [vmem:[#allocation10 + $0x990] sm:$0xf]  ;;  %v5966_v18 = vor.u32 %v7897_v5, %v5965_v4  ;;  %4136 = vmatmul.bf16.vlgmr.msra.gmra.mxu1 %v8727_v55 }
 0x269   :  { %v8065_v14 = vld [vmem:[#allocation10 + $0x9ac] sm:$0xf0]  ;;  %4180 = vmatpush.bf16.msrb.mxu1 %v6670_v1  ;;  %4147 = vmatpush.bf16.msra.mxu2 %v5710_v13 }
 0x26a   :  { %v7405_v16 = vld [vmem:[#allocation10 + $0xf90] sm:$0xf]  ;;  %v6638_v23 = vor.u32 %v8065_v14, %v6637_v9  ;;  %4175 = vmatmul.bf16.vlgmr.msrb.gmra.mxu0 %v8729_v59 }
 0x26b   :  { %v8257_v17 = vld [vmem:[#allocation10 + $0xfac] sm:$0xf0]  ;;  %4219 = vmatpush.bf16.msra.mxu0 %v7438_v12  ;;  %4160 = vmatpush.bf16.msra.mxu3 %v5966_v18  ;;  %v8803_v12 = vpop.f32.mrf.mxu0 }
 0x26c   :  { %v5677_v19 = vld [vmem:[#allocation10 + $0x210] sm:$0xf]  ;;  %v7406_v30 = vor.u32 %v8257_v17, %v7405_v16 }
 0x26d   :  { %v7825_v48 = vld [vmem:[#allocation10 + $0x22c] sm:$0xf0]  ;;  %4181 = vmatpush.bf16.msrb.mxu1 %v6638_v23 }
 0x26e   :  { %v5933_v56 = vld [vmem:[#allocation10 + $0x410] sm:$0xf]  ;;  %v5678_v31 = vor.u32 %v7825_v48, %v5677_v19 }
 0x26f   :  { %v7889_v22 = vld [vmem:[#allocation10 + $0x42c] sm:$0xf0]  ;;  %4220 = vmatpush.bf16.msra.mxu0 %v7406_v30 }
 0x270   :  { %v6925_v24 = vld [vmem:[#allocation10 + $0xbd0] sm:$0xf]  ;;  %v5934_v11 = vor.u32 %v7889_v22, %v5933_v56  ;;  %4148 = vmatpush.bf16.msra.mxu2 %v5678_v31 }
 0x271   :  { %v8137_v26 = vld [vmem:[#allocation10 + $0xbec] sm:$0xf0] }
 0x272   :  { %v7181_v27 = vld [vmem:[#allocation10 + $0xdd0] sm:$0xf]  ;;  %v6926_v36 = vor.u32 %v8137_v26, %v6925_v24  ;;  %4161 = vmatpush.bf16.msra.mxu3 %v5934_v11 }
 0x273   :  { %v8201_v28 = vld [vmem:[#allocation10 + $0xdec] sm:$0xf0]  ;;  %4149 = vmatmul.bf16.vlgmr.msra.gmra.mxu2 %v8735_v15 }
 0x274   :  { %v6605_v32 = vld [vmem:[#allocation10 + $0x950] sm:$0xf]  ;;  %v7182_v39 = vor.u32 %v8201_v28, %v7181_v27  ;;  %4193 = vmatpush.bf16.msrb.mxu2 %v6926_v36 }
 0x275   :  { %v8057_v34 = vld [vmem:[#allocation10 + $0x96c] sm:$0xf0]  ;;  %4162 = vmatmul.bf16.vlgmr.msra.gmra.mxu3 %v8737_v20 }
 0x276   :  { %v7373_v37 = vld [vmem:[#allocation10 + $0xf50] sm:$0xf]  ;;  %v6606_v43 = vor.u32 %v8057_v34, %v6605_v32  ;;  %4206 = vmatpush.bf16.msrb.mxu3 %v7182_v39 }
 0x277   :  { %v8249_v38 = vld [vmem:[#allocation10 + $0xf6c] sm:$0xf0] }
 0x278   :  { %v6893_v41 = vld [vmem:[#allocation10 + $0xb90] sm:$0xf]  ;;  %v7374_v46 = vor.u32 %v8249_v38, %v7373_v37  ;;  %4182 = vmatpush.bf16.msrb.mxu1 %v6606_v43  ;;  %v3931_v38 = vpop.f32.mrf.mxu1 }
 0x279   :  { %v8129_v42 = vld [vmem:[#allocation10 + $0xbac] sm:$0xf0] }
 0x27a   :  { %v7149_v44 = vld [vmem:[#allocation10 + $0xd90] sm:$0xf]  ;;  %v6894_v50 = vor.u32 %v8129_v42, %v6893_v41  ;;  %4221 = vmatpush.bf16.msra.mxu0 %v7374_v46  ;;  %v3970_v42 = vpop.f32.mrf.mxu0 }
 0x27b   :  { %v8193_v45 = vld [vmem:[#allocation10 + $0xdac] sm:$0xf0] }
 0x27c   :  { %v6573_v47 = vld [vmem:[#allocation10 + $0x910] sm:$0xf]  ;;  %v7150_v33 = vor.u32 %v8193_v45, %v7149_v44  ;;  %4194 = vmatpush.bf16.msrb.mxu2 %v6894_v50 }
 0x27d   :  { %v8049_v49 = vld [vmem:[#allocation10 + $0x92c] sm:$0xf0] }
 0x27e   :  { %v7341_v40 = vld [vmem:[#allocation10 + $0xf10] sm:$0xf]  ;;  %v6574_v54 = vor.u32 %v8049_v49, %v6573_v47  ;;  %4207 = vmatpush.bf16.msrb.mxu3 %v7150_v33  ;;  %v7813_v33 = vld [vmem:[#allocation10 + $0x1d4] sm:$0xf] }
 0x27f   :  { %v8241_v51 = vld [vmem:[#allocation10 + $0xf2c] sm:$0xf0] }
 0x280   :  { %v6861_v52 = vld [vmem:[#allocation10 + $0xb50] sm:$0xf]  ;;  %v7342_v61 = vor.u32 %v8241_v51, %v7341_v40  ;;  %4183 = vmatpush.bf16.msrb.mxu1 %v6574_v54  ;;  %v3930_v40 = vadd.f32 %v3929_v8, %v1138_v35  ;;  %v3942_v54 = vpop.f32.mrf.mxu2 }
 0x281   :  { %v8121_v53 = vld [vmem:[#allocation10 + $0xb6c] sm:$0xf0] }
 0x282   :  { %v7117_v58 = vld [vmem:[#allocation10 + $0xd50] sm:$0xf]  ;;  %v6862_v2 = vor.u32 %v8121_v53, %v6861_v52  ;;  %4222 = vmatpush.bf16.msra.mxu0 %v7342_v61  ;;  %v5647_v52 = vld [vmem:[#allocation10 + $0x1f0] sm:$0xf0] }
 0x283   :  { %v8185_v60 = vld [vmem:[#allocation10 + $0xd6c] sm:$0xf0]  ;;  %v8005_v53 = vld [vmem:[#allocation10 + $0x7d4] sm:$0xf]  ;;  %v5650_v8 = vor.u32 %v7813_v33, %v5647_v52 }
 0x284   :  { %v6541_v62 = vld [vmem:[#allocation10 + $0x8d0] sm:$0xf]  ;;  %v7118_v1 = vor.u32 %v8185_v60, %v7117_v58  ;;  %4195 = vmatpush.bf16.msrb.mxu2 %v6862_v2  ;;  %v6415_v60 = vld [vmem:[#allocation10 + $0x7f0] sm:$0xf0]  ;;  %v3955_v2 = vpop.f32.mrf.mxu3 }
 0x285   :  { %v8041_v0 = vld [vmem:[#allocation10 + $0x8ec] sm:$0xf0]  ;;  %v6319_v33 = vld [vmem:[#allocation10 + $0x730] sm:$0xf0] }
 0x286   :  { %v7309_v4 = vld [vmem:[#allocation10 + $0xed0] sm:$0xf]  ;;  %v6542_v13 = vor.u32 %v8041_v0, %v6541_v62  ;;  %4208 = vmatpush.bf16.msrb.mxu3 %v7118_v1  ;;  %v3943_v0 = vadd.f32 %v3942_v54, %v3930_v40  ;;  %v5839_v54 = vld [vmem:[#allocation10 + $0x370] sm:$0xf0] }
 0x287   :  { %v8233_v5 = vld [vmem:[#allocation10 + $0xeec] sm:$0xf0] }
 0x288   :  { %v6829_v9 = vld [vmem:[#allocation10 + $0xb10] sm:$0xf]  ;;  %v7310_v17 = vor.u32 %v8233_v5, %v7309_v4  ;;  %4184 = vmatpush.bf16.msrb.mxu1 %v6542_v13  ;;  %v3956_v13 = vadd.f32 %v3955_v2, %v3943_v0  ;;  %v7781_v0 = vld [vmem:[#allocation10 + $0xd4] sm:$0xf] }
 0x289   :  { %v8113_v10 = vld [vmem:[#allocation10 + $0xb2c] sm:$0xf0]  ;;  %v5519_v2 = vld [vmem:[#allocation10 + $0xf0] sm:$0xf0] }
 0x28a   :  { %v7085_v14 = vld [vmem:[#allocation10 + $0xd10] sm:$0xf]  ;;  %v6830_v48 = vor.u32 %v8113_v10, %v6829_v9  ;;  %4223 = vmatpush.bf16.msra.mxu0 %v7310_v17  ;;  %v7805_v10 = vld [vmem:[#allocation10 + $0x194] sm:$0xf] }
 0x28b   :  { %v8177_v16 = vld [vmem:[#allocation10 + $0xd2c] sm:$0xf0]  ;;  %v5615_v17 = vld [vmem:[#allocation10 + $0x1b0] sm:$0xf0] }
 0x28c   :  { %v6509_v18 = vld [vmem:[#allocation10 + $0x890] sm:$0xf]  ;;  %v7086_v24 = vor.u32 %v8177_v16, %v7085_v14  ;;  %4196 = vmatpush.bf16.msrb.mxu2 %v6830_v48  ;;  %v6418_v14 = vor.u32 %v8005_v53, %v6415_v60  ;;  %v7861_v53 = vld [vmem:[#allocation10 + $0x354] sm:$0xf] }
 0x28d   :  { %v8033_v19 = vld [vmem:[#allocation10 + $0x8ac] sm:$0xf0]  ;;  %v7925_v60 = vld [vmem:[#allocation10 + $0x554] sm:$0xf] }
 0x28e   :  { %v7277_v56 = vld [vmem:[#allocation10 + $0xe90] sm:$0xf]  ;;  %v6510_v27 = vor.u32 %v8033_v19, %v6509_v18  ;;  %4209 = vmatpush.bf16.msrb.mxu3 %v7086_v24  ;;  %v7997_v18 = vld [vmem:[#allocation10 + $0x794] sm:$0xf] }
 0x28f   :  { %v8225_v22 = vld [vmem:[#allocation10 + $0xeac] sm:$0xf0]  ;;  %v6383_v19 = vld [vmem:[#allocation10 + $0x7b0] sm:$0xf0] }
 0x290   :  { %v6797_v26 = vld [vmem:[#allocation10 + $0xad0] sm:$0xf]  ;;  %v7278_v31 = vor.u32 %v8225_v22, %v7277_v56  ;;  %4185 = vmatpush.bf16.msrb.mxu1 %v6510_v27  ;;  %v5903_v27 = vld [vmem:[#allocation10 + $0x3f0] sm:$0xf0] }
 0x291   :  { %v8105_v23 = vld [vmem:[#allocation10 + $0xaec] sm:$0xf0] }
 0x292   :  { %v7053_v28 = vld [vmem:[#allocation10 + $0xcd0] sm:$0xf]  ;;  %v6798_v11 = vor.u32 %v8105_v23, %v6797_v26  ;;  %4224 = vmatpush.bf16.msra.mxu0 %v7278_v31  ;;  %v7877_v23 = vld [vmem:[#allocation10 + $0x3d4] sm:$0xf] }
 0x293   :  { %v8169_v30 = vld [vmem:[#allocation10 + $0xcec] sm:$0xf0]  ;;  %v7941_v31 = vld [vmem:[#allocation10 + $0x5d4] sm:$0xf] }
 0x294   :  { %v6477_v32 = vld [vmem:[#allocation10 + $0x850] sm:$0xf]  ;;  %v7054_v7 = vor.u32 %v8169_v30, %v7053_v28  ;;  %4197 = vmatpush.bf16.msrb.mxu2 %v6798_v11  ;;  %v3969_v28 = vadd.f32 %v8803_v12, %v3956_v13  ;;  %v5618_v30 = vor.u32 %v7805_v10, %v5615_v17  ;;  %v7797_v11 = vld [vmem:[#allocation10 + $0x154] sm:$0xf]  ;;  %v3957_v12 = vpop.f32.mrf.mxu3  ;;  %v5522_v17 = vor.u32 %v7781_v0, %v5519_v2 }
 0x295   :  { %v8025_v34 = vld [vmem:[#allocation10 + $0x86c] sm:$0xf0]  ;;  %v7853_v10 = vld [vmem:[#allocation10 + $0x314] sm:$0xf] }
 0x296   :  { %v7245_v36 = vld [vmem:[#allocation10 + $0xe50] sm:$0xf]  ;;  %v6478_v43 = vor.u32 %v8025_v34, %v6477_v32  ;;  %4210 = vmatpush.bf16.msrb.mxu3 %v7054_v7  ;;  %v6159_v32 = vld [vmem:[#allocation10 + $0x5f0] sm:$0xf0]  ;;  %v6386_v34 = vor.u32 %v7997_v18, %v6383_v19  ;;  %v5906_v7 = vor.u32 %v7877_v23, %v5903_v27 }
 0x297   :  { %v8217_v37 = vld [vmem:[#allocation10 + $0xe6c] sm:$0xf0]  ;;  %v6162_v42 = vor.u32 %v7941_v31, %v6159_v32  ;;  %v5807_v13 = vld [vmem:[#allocation10 + $0x330] sm:$0xf0] }
 0x298   :  { %v6765_v39 = vld [vmem:[#allocation10 + $0xa90] sm:$0xf]  ;;  %v7246_v47 = vor.u32 %v8217_v37, %v7245_v36  ;;  %4186 = vmatpush.bf16.msrb.mxu1 %v6478_v43  ;;  %v5583_v36 = vld [vmem:[#allocation10 + $0x170] sm:$0xf0]  ;;  %v3944_v37 = vpop.f32.mrf.mxu2 }
 0x299   :  { %v8097_v41 = vld [vmem:[#allocation10 + $0xaac] sm:$0xf0]  ;;  %v7869_v43 = vld [vmem:[#allocation10 + $0x394] sm:$0xf] }
 0x29a   :  { %v7021_v44 = vld [vmem:[#allocation10 + $0xc90] sm:$0xf]  ;;  %v6766_v51 = vor.u32 %v8097_v41, %v6765_v39  ;;  %4225 = vmatpush.bf16.msra.mxu0 %v7246_v47  ;;  %v7989_v39 = vld [vmem:[#allocation10 + $0x754] sm:$0xf] }
 0x29b   :  { %v8161_v45 = vld [vmem:[#allocation10 + $0xcac] sm:$0xf0]  ;;  %v6351_v41 = vld [vmem:[#allocation10 + $0x770] sm:$0xf0] }
 0x29c   :  { %v6445_v46 = vld [vmem:[#allocation10 + $0x810] sm:$0xf]  ;;  %v7022_v58 = vor.u32 %v8161_v45, %v7021_v44  ;;  %4198 = vmatpush.bf16.msrb.mxu2 %v6766_v51  ;;  %v5871_v44 = vld [vmem:[#allocation10 + $0x3b0] sm:$0xf0]  ;;  %v5586_v45 = vor.u32 %v7797_v11, %v5583_v36  ;;  %v4007_v2 = vpop.f32.mrf.mxu3 }
 0x29d   :  { %v8017_v49 = vld [vmem:[#allocation10 + $0x82c] sm:$0xf0]  ;;  %v6127_v47 = vld [vmem:[#allocation10 + $0x5b0] sm:$0xf0]  ;;  %v5874_v40 = vor.u32 %v7869_v43, %v5871_v44 }
 0x29e   :  { %v7213_v50 = vld [vmem:[#allocation10 + $0xe10] sm:$0xf]  ;;  %v6446_v4 = vor.u32 %v8017_v49, %v6445_v46  ;;  %4211 = vmatpush.bf16.msrb.mxu3 %v7022_v58  ;;  %v7933_v46 = vld [vmem:[#allocation10 + $0x594] sm:$0xf]  ;;  %v6354_v49 = vor.u32 %v7989_v39, %v6351_v41 }
 0x29f   :  { %v8209_v57 = vld [vmem:[#allocation10 + $0xe2c] sm:$0xf0]  ;;  %v7981_v51 = vld [vmem:[#allocation10 + $0x714] sm:$0xf]  ;;  %v6130_v52 = vor.u32 %v7933_v46, %v6127_v47 }
 0x2a0   :  { %v6733_v61 = vld [vmem:[#allocation10 + $0xa50] sm:$0xf]  ;;  %v7214_v9 = vor.u32 %v8209_v57, %v7213_v50  ;;  %4187 = vmatpush.bf16.msrb.mxu1 %v6446_v4  ;;  %v7789_v50 = vld [vmem:[#allocation10 + $0x114] sm:$0xf]  ;;  %v5842_v4 = vor.u32 %v7861_v53, %v5839_v54  ;;  %v3994_v54 = vpop.f32.mrf.mxu2 }
 0x2a1   :  { %v8089_v62 = vld [vmem:[#allocation10 + $0xa6c] sm:$0xf0]  ;;  %v5551_v57 = vld [vmem:[#allocation10 + $0x130] sm:$0xf0] }
 0x2a2   :  { %v6989_v5 = vld [vmem:[#allocation10 + $0xc50] sm:$0xf]  ;;  %v6734_v16 = vor.u32 %v8089_v62, %v6733_v61  ;;  %4226 = vmatpush.bf16.msra.mxu0 %v7214_v9  ;;  %v5554_v58 = vor.u32 %v7789_v50, %v5551_v57  ;;  %v6095_v61 = vld [vmem:[#allocation10 + $0x570] sm:$0xf0]  ;;  %v6322_v62 = vor.u32 %v7981_v51, %v6319_v33  ;;  %v3981_v9 = vpop.f32.mrf.mxu1 }
 0x2a3   :  { %v8153_v1 = vld [vmem:[#allocation10 + $0xc6c] sm:$0xf0]  ;;  %4188 = vmatmul.bf16.vlgmr.msrb.gmra.mxu1 %v8743_v63  ;;  %v7917_v18 = vld [vmem:[#allocation10 + $0x514] sm:$0xf] }
 0x2a4   :  { %v6990_v48 = vor.u32 %v8153_v1, %v6989_v5  ;;  %v6701_v56 = vld [vmem:[#allocation10 + $0xa10] sm:$0xf]  ;;  %4232 = vmatpush.bf16.msra.mxu1 %v5650_v8  ;;  %4199 = vmatpush.bf16.msrb.mxu2 %v6734_v16  ;;  %v7973_v5 = vld [vmem:[#allocation10 + $0x6d4] sm:$0xf]  ;;  %v6098_v8 = vor.u32 %v7925_v60, %v6095_v61  ;;  %v8811_v16 = vpop.f32.mrf.mxu0 }
 0x2a5   :  { %v8081_v22 = vld [vmem:[#allocation10 + $0xa2c] sm:$0xf0]  ;;  %4227 = vmatmul.bf16.vlgmr.msra.gmra.mxu0 %v8745_v3  ;;  %v6287_v1 = vld [vmem:[#allocation10 + $0x6f0] sm:$0xf0] }
 0x2a6   :  { %v6957_v24 = vld [vmem:[#allocation10 + $0xc10] sm:$0xf]  ;;  %4271 = vmatpush.bf16.msrb.mxu0 %v6418_v14  ;;  %v6702_v35 = vor.u32 %v8081_v22, %v6701_v56  ;;  %4212 = vmatpush.bf16.msrb.mxu3 %v6990_v48  ;;  %v3982_v14 = vadd.f32 %v3981_v9, %v3969_v28  ;;  %v6063_v19 = vld [vmem:[#allocation10 + $0x530] sm:$0xf0]  ;;  %v6290_v48 = vor.u32 %v7973_v5, %v6287_v1 }
 0x2a7   :  { %v8145_v26 = vld [vmem:[#allocation10 + $0xc2c] sm:$0xf0]  ;;  %v7773_v56 = vld [vmem:[#allocation10 + $0x94] sm:$0xf]  ;;  %v6066_v27 = vor.u32 %v7917_v18, %v6063_v19 }
 0x2a8   :  { %v6958_v38 = vor.u32 %v8145_v26, %v6957_v24  ;;  %4233 = vmatpush.bf16.msra.mxu1 %v5618_v30  ;;  %4200 = vmatpush.bf16.msrb.mxu2 %v6702_v35  ;;  %v5487_v22 = vld [vmem:[#allocation10 + $0xb0] sm:$0xf0]  ;;  %v5810_v24 = vor.u32 %v7853_v10, %v5807_v13  ;;  %v3995_v0 = vadd.f32 %v3994_v54, %v3982_v14 }
 0x2a9   :  { %v7965_v26 = vld [vmem:[#allocation10 + $0x694] sm:$0xf]  ;;  %v5490_v28 = vor.u32 %v7773_v56, %v5487_v22 }
 0x2aa   :  { %4272 = vmatpush.bf16.msrb.mxu0 %v6386_v34  ;;  %4213 = vmatpush.bf16.msrb.mxu3 %v6958_v38  ;;  %v6255_v23 = vld [vmem:[#allocation10 + $0x6b0] sm:$0xf0]  ;;  %v3983_v39 = vpop.f32.mrf.mxu1  ;;  %v4008_v13 = vadd.f32 %v4007_v2, %v3995_v0 }
 0x2ab   :  { %4201 = vmatmul.bf16.vlgmr.msrb.gmra.mxu2 %v8749_v25  ;;  %v7845_v30 = vld [vmem:[#allocation10 + $0x2d4] sm:$0xf]  ;;  %v6258_v35 = vor.u32 %v7965_v26, %v6255_v23 }
 0x2ac   :  { %4245 = vmatpush.bf16.msra.mxu2 %v5906_v7  ;;  %4234 = vmatpush.bf16.msra.mxu1 %v5586_v45  ;;  %v5775_v31 = vld [vmem:[#allocation10 + $0x2f0] sm:$0xf0]  ;;  %v4022_v43 = vpop.f32.mrf.mxu0  ;;  %v8814_v23 = vadd.f32 %v8811_v16, %v4008_v13 }
 0x2ad   :  { %4214 = vmatmul.bf16.vlgmr.msrb.gmra.mxu3 %v8751_v29  ;;  %v7909_v32 = vld [vmem:[#allocation10 + $0x4d4] sm:$0xf]  ;;  %v5778_v37 = vor.u32 %v7845_v30, %v5775_v31 }
 0x2ae   :  { %4258 = vmatpush.bf16.msra.mxu3 %v6162_v42  ;;  %4273 = vmatpush.bf16.msrb.mxu0 %v6354_v49  ;;  %v6031_v34 = vld [vmem:[#allocation10 + $0x4f0] sm:$0xf0] }
 0x2af   :  { %v7765_v11 = vld [vmem:[#allocation10 + $0x54] sm:$0xf]  ;;  %v6034_v41 = vor.u32 %v7909_v32, %v6031_v34 }
 0x2b0   :  { %4246 = vmatpush.bf16.msra.mxu2 %v5874_v40  ;;  %4235 = vmatpush.bf16.msra.mxu1 %v5554_v58  ;;  %v5455_v36 = vld [vmem:[#allocation10 + $0x70] sm:$0xf0] }
 0x2b1   :  { %v7957_v38 = vld [vmem:[#allocation10 + $0x654] sm:$0xf]  ;;  %v5458_v44 = vor.u32 %v7765_v11, %v5455_v36 }
 0x2b2   :  { %4259 = vmatpush.bf16.msra.mxu3 %v6130_v52  ;;  %4274 = vmatpush.bf16.msrb.mxu0 %v6322_v62  ;;  %v6223_v7 = vld [vmem:[#allocation10 + $0x670] sm:$0xf0] }
 0x2b3   :  { %v7837_v12 = vld [vmem:[#allocation10 + $0x294] sm:$0xf]  ;;  %v6226_v49 = vor.u32 %v7957_v38, %v6223_v7  ;;  %v3996_v38 = vpop.f32.mrf.mxu2 }
 0x2b4   :  { %4247 = vmatpush.bf16.msra.mxu2 %v5842_v4  ;;  %4236 = vmatpush.bf16.msra.mxu1 %v5522_v17  ;;  %v5743_v42 = vld [vmem:[#allocation10 + $0x2b0] sm:$0xf0]  ;;  %v8822_v38 = vld [vmem:[#allocation11] sm:$0xff] }
 0x2b5   :  { %v7901_v45 = vld [vmem:[#allocation10 + $0x494] sm:$0xf]  ;;  %v5746_v51 = vor.u32 %v7837_v12, %v5743_v42  ;;  %v4009_v12 = vpop.f32.mrf.mxu3 }
 0x2b6   :  { %4260 = vmatpush.bf16.msra.mxu3 %v6098_v8  ;;  %4275 = vmatpush.bf16.msrb.mxu0 %v6290_v48  ;;  %v5999_v46 = vld [vmem:[#allocation10 + $0x4b0] sm:$0xf0] }
 0x2b7   :  { %v7757_v47 = vld [vmem:[#allocation10 + $0x14] sm:$0xf]  ;;  %v6002_v58 = vor.u32 %v7901_v45, %v5999_v46 }
 0x2b8   :  { %4248 = vmatpush.bf16.msra.mxu2 %v5810_v24  ;;  %4237 = vmatpush.bf16.msra.mxu1 %v5490_v28  ;;  %v5423_v50 = vld [vmem:[#allocation10 + $0x30] sm:$0xf0] }
 0x2b9   :  { %v7949_v57 = vld [vmem:[#allocation10 + $0x614] sm:$0xf]  ;;  %v5426_v4 = vor.u32 %v7757_v47, %v5423_v50 }
 0x2ba   :  { %4261 = vmatpush.bf16.msra.mxu3 %v6066_v27  ;;  %4276 = vmatpush.bf16.msrb.mxu0 %v6258_v35  ;;  %v6191_v40 = vld [vmem:[#allocation10 + $0x630] sm:$0xf0] }
 0x2bb   :  { %v8069_v33 = vld [vmem:[#allocation10 + $0x9d4] sm:$0xf]  ;;  %v6194_v9 = vor.u32 %v7949_v57, %v6191_v40 }
 0x2bc   :  { %4249 = vmatpush.bf16.msra.mxu2 %v5778_v37  ;;  %v6671_v52 = vld [vmem:[#allocation10 + $0x9f0] sm:$0xf0]  ;;  %4238 = vmatpush.bf16.msra.mxu1 %v5458_v44 }
 0x2bd   :  { %v8261_v53 = vld [vmem:[#allocation10 + $0xfd4] sm:$0xf]  ;;  %v6674_v8 = vor.u32 %v8069_v33, %v6671_v52 }
 0x2be   :  { %4262 = vmatpush.bf16.msra.mxu3 %v6034_v41  ;;  %v7439_v60 = vld [vmem:[#allocation10 + $0xff0] sm:$0xf0]  ;;  %4277 = vmatpush.bf16.msrb.mxu0 %v6226_v49 }
 0x2bf   :  { %v7829_v61 = vld [vmem:[#allocation10 + $0x254] sm:$0xf]  ;;  %v7442_v17 = vor.u32 %v8261_v53, %v7439_v60 }
 0x2c0   :  { %v5711_v62 = vld [vmem:[#allocation10 + $0x270] sm:$0xf0]  ;;  %4250 = vmatpush.bf16.msra.mxu2 %v5746_v51  ;;  %4239 = vmatpush.bf16.msra.mxu1 %v5426_v4 }
 0x2c1   :  { %v7893_v5 = vld [vmem:[#allocation10 + $0x454] sm:$0xf]  ;;  %v5714_v18 = vor.u32 %v7829_v61, %v5711_v62 }
 0x2c2   :  { %v5967_v1 = vld [vmem:[#allocation10 + $0x470] sm:$0xf0]  ;;  %4263 = vmatpush.bf16.msra.mxu3 %v6002_v58  ;;  %4278 = vmatpush.bf16.msrb.mxu0 %v6194_v9  ;;  %v4033_v9 = vpop.f32.mrf.mxu1 }
 0x2c3   :  { %v8061_v10 = vld [vmem:[#allocation10 + $0x994] sm:$0xf]  ;;  %v5970_v22 = vor.u32 %v7893_v5, %v5967_v1  ;;  %4240 = vmatmul.bf16.vlgmr.msra.gmra.mxu1 %v8727_v55 }
 0x2c4   :  { %v6639_v19 = vld [vmem:[#allocation10 + $0x9b0] sm:$0xf0]  ;;  %4284 = vmatpush.bf16.msrb.mxu1 %v6674_v8  ;;  %4251 = vmatpush.bf16.msra.mxu2 %v5714_v18 }
 0x2c5   :  { %v8253_v48 = vld [vmem:[#allocation10 + $0xf94] sm:$0xf]  ;;  %v6642_v28 = vor.u32 %v8061_v10, %v6639_v19  ;;  %4279 = vmatmul.bf16.vlgmr.msrb.gmra.mxu0 %v8729_v59 }
 0x2c6   :  { %v7407_v56 = vld [vmem:[#allocation10 + $0xfb0] sm:$0xf0]  ;;  %4323 = vmatpush.bf16.msra.mxu0 %v7442_v17  ;;  %4264 = vmatpush.bf16.msra.mxu3 %v5970_v22  ;;  %v8820_v17 = vpop.f32.mrf.mxu0 }
 0x2c7   :  { %v7821_v24 = vld [vmem:[#allocation10 + $0x214] sm:$0xf]  ;;  %v7410_v35 = vor.u32 %v8253_v48, %v7407_v56 }
 0x2c8   :  { %v5679_v14 = vld [vmem:[#allocation10 + $0x230] sm:$0xf0]  ;;  %4285 = vmatpush.bf16.msrb.mxu1 %v6642_v28 }
 0x2c9   :  { %v7885_v26 = vld [vmem:[#allocation10 + $0x414] sm:$0xf]  ;;  %v5682_v11 = vor.u32 %v7821_v24, %v5679_v14 }
 0x2ca   :  { %v5935_v27 = vld [vmem:[#allocation10 + $0x430] sm:$0xf0]  ;;  %4324 = vmatpush.bf16.msra.mxu0 %v7410_v35  ;;  %v4035_v12 = vpop.f32.mrf.mxu1 }
 0x2cb   :  { %v8133_v30 = vld [vmem:[#allocation10 + $0xbd4] sm:$0xf]  ;;  %v5938_v16 = vor.u32 %v7885_v26, %v5935_v27  ;;  %4252 = vmatpush.bf16.msra.mxu2 %v5682_v11  ;;  %v7802_v12 = vld [vmem:[#allocation10 + $0x174] sm:$0xf0] }
 0x2cc   :  { %v6927_v31 = vld [vmem:[#allocation10 + $0xbf0] sm:$0xf0] }
 0x2cd   :  { %v8197_v32 = vld [vmem:[#allocation10 + $0xdd4] sm:$0xf]  ;;  %v6930_v7 = vor.u32 %v8133_v30, %v6927_v31  ;;  %4265 = vmatpush.bf16.msra.mxu3 %v5938_v16  ;;  %v1139_v16 = vperm.slane %v8822_v38, 3 }
 0x2ce   :  { %v7183_v34 = vld [vmem:[#allocation10 + $0xdf0] sm:$0xf0]  ;;  %4253 = vmatmul.bf16.vlgmr.msra.gmra.mxu2 %v8735_v15 }
 0x2cf   :  { %v8053_v36 = vld [vmem:[#allocation10 + $0x954] sm:$0xf]  ;;  %v7186_v42 = vor.u32 %v8197_v32, %v7183_v34  ;;  %4297 = vmatpush.bf16.msrb.mxu2 %v6930_v7 }
 0x2d0   :  { %v6607_v37 = vld [vmem:[#allocation10 + $0x970] sm:$0xf0]  ;;  %4266 = vmatmul.bf16.vlgmr.msra.gmra.mxu3 %v8737_v20 }
 0x2d1   :  { %v8245_v39 = vld [vmem:[#allocation10 + $0xf54] sm:$0xf]  ;;  %v6610_v45 = vor.u32 %v8053_v36, %v6607_v37  ;;  %4310 = vmatpush.bf16.msrb.mxu3 %v7186_v42 }
 0x2d2   :  { %v7375_v41 = vld [vmem:[#allocation10 + $0xf70] sm:$0xf0] }
 0x2d3   :  { %v8125_v43 = vld [vmem:[#allocation10 + $0xb94] sm:$0xf]  ;;  %v7378_v49 = vor.u32 %v8245_v39, %v7375_v41  ;;  %4286 = vmatpush.bf16.msrb.mxu1 %v6610_v45  ;;  %v4074_v45 = vpop.f32.mrf.mxu0 }
 0x2d4   :  { %v6895_v44 = vld [vmem:[#allocation10 + $0xbb0] sm:$0xf0]  ;;  %v6357_v45 = vld [vmem:[#allocation10 + $0x758] sm:$0xf] }
 0x2d5   :  { %v8189_v46 = vld [vmem:[#allocation10 + $0xd94] sm:$0xf]  ;;  %v6898_v40 = vor.u32 %v8125_v43, %v6895_v44  ;;  %4325 = vmatpush.bf16.msra.mxu0 %v7378_v49 }
 0x2d6   :  { %v7151_v47 = vld [vmem:[#allocation10 + $0xdb0] sm:$0xf0] }
 0x2d7   :  { %v8045_v50 = vld [vmem:[#allocation10 + $0x914] sm:$0xf]  ;;  %v7154_v52 = vor.u32 %v8189_v46, %v7151_v47  ;;  %4298 = vmatpush.bf16.msrb.mxu2 %v6898_v40 }
 0x2d8   :  { %v6575_v57 = vld [vmem:[#allocation10 + $0x930] sm:$0xf0] }
 0x2d9   :  { %v8237_v51 = vld [vmem:[#allocation10 + $0xf14] sm:$0xf]  ;;  %v6578_v58 = vor.u32 %v8045_v50, %v6575_v57  ;;  %4311 = vmatpush.bf16.msrb.mxu3 %v7154_v52  ;;  %v4034_v52 = vadd.f32 %v4033_v9, %v1139_v16  ;;  %v7946_v16 = vld [vmem:[#allocation10 + $0x5f4] sm:$0xf0] }
 0x2da   :  { %v7343_v33 = vld [vmem:[#allocation10 + $0xf30] sm:$0xf0] }
 0x2db   :  { %v8117_v53 = vld [vmem:[#allocation10 + $0xb54] sm:$0xf]  ;;  %v7346_v62 = vor.u32 %v8237_v51, %v7343_v33  ;;  %4287 = vmatpush.bf16.msrb.mxu1 %v6578_v58  ;;  %v7818_v58 = vld [vmem:[#allocation10 + $0x1f4] sm:$0xf0] }
 0x2dc   :  { %v6863_v54 = vld [vmem:[#allocation10 + $0xb70] sm:$0xf0] }
 0x2dd   :  { %v8181_v60 = vld [vmem:[#allocation10 + $0xd54] sm:$0xf]  ;;  %v6866_v4 = vor.u32 %v8117_v53, %v6863_v54  ;;  %4326 = vmatpush.bf16.msra.mxu0 %v7346_v62  ;;  %v5653_v54 = vld [vmem:[#allocation10 + $0x1d8] sm:$0xf] }
 0x2de   :  { %v7119_v61 = vld [vmem:[#allocation10 + $0xd70] sm:$0xf0]  ;;  %v5654_v9 = vor.u32 %v7818_v58, %v5653_v54  ;;  %v6325_v58 = vld [vmem:[#allocation10 + $0x718] sm:$0xf] }
 0x2df   :  { %v8037_v0 = vld [vmem:[#allocation10 + $0x8d4] sm:$0xf]  ;;  %v7122_v8 = vor.u32 %v8181_v60, %v7119_v61  ;;  %4299 = vmatpush.bf16.msrb.mxu2 %v6866_v4  ;;  %v6421_v60 = vld [vmem:[#allocation10 + $0x7d8] sm:$0xf]  ;;  %v4046_v61 = vpop.f32.mrf.mxu2 }
 0x2e0   :  { %v6543_v2 = vld [vmem:[#allocation10 + $0x8f0] sm:$0xf0] }
 0x2e1   :  { %v8229_v5 = vld [vmem:[#allocation10 + $0xed4] sm:$0xf]  ;;  %v6546_v18 = vor.u32 %v8037_v0, %v6543_v2  ;;  %4312 = vmatpush.bf16.msrb.mxu3 %v7122_v8  ;;  %v8010_v0 = vld [vmem:[#allocation10 + $0x7f4] sm:$0xf0] }
 0x2e2   :  { %v7311_v1 = vld [vmem:[#allocation10 + $0xef0] sm:$0xf0] }
 0x2e3   :  { %v8109_v10 = vld [vmem:[#allocation10 + $0xb14] sm:$0xf]  ;;  %v7314_v56 = vor.u32 %v8229_v5, %v7311_v1  ;;  %4288 = vmatpush.bf16.msrb.mxu1 %v6546_v18  ;;  %v4047_v5 = vadd.f32 %v4046_v61, %v4034_v52  ;;  %v4059_v1 = vpop.f32.mrf.mxu3  ;;  %v5557_v52 = vld [vmem:[#allocation10 + $0x118] sm:$0xf] }
 0x2e4   :  { %v6831_v13 = vld [vmem:[#allocation10 + $0xb30] sm:$0xf0] }
 0x2e5   :  { %v8173_v19 = vld [vmem:[#allocation10 + $0xd14] sm:$0xf]  ;;  %v6834_v14 = vor.u32 %v8109_v10, %v6831_v13  ;;  %4327 = vmatpush.bf16.msra.mxu0 %v7314_v56  ;;  %v6422_v56 = vor.u32 %v8010_v0, %v6421_v60  ;;  %v7986_v60 = vld [vmem:[#allocation10 + $0x734] sm:$0xf0] }
 0x2e6   :  { %v7087_v48 = vld [vmem:[#allocation10 + $0xd30] sm:$0xf0]  ;;  %v7866_v0 = vld [vmem:[#allocation10 + $0x374] sm:$0xf0] }
 0x2e7   :  { %v8029_v22 = vld [vmem:[#allocation10 + $0x894] sm:$0xf]  ;;  %v7090_v30 = vor.u32 %v8173_v19, %v7087_v48  ;;  %4300 = vmatpush.bf16.msrb.mxu2 %v6834_v14  ;;  %v5621_v19 = vld [vmem:[#allocation10 + $0x198] sm:$0xf]  ;;  %v4060_v48 = vadd.f32 %v4059_v1, %v4047_v5  ;;  %v6326_v1 = vor.u32 %v7986_v60, %v6325_v58 }
 0x2e8   :  { %v6511_v24 = vld [vmem:[#allocation10 + $0x8b0] sm:$0xf0]  ;;  %v6389_v14 = vld [vmem:[#allocation10 + $0x798] sm:$0xf] }
 0x2e9   :  { %v8221_v26 = vld [vmem:[#allocation10 + $0xe94] sm:$0xf]  ;;  %v6514_v32 = vor.u32 %v8029_v22, %v6511_v24  ;;  %4313 = vmatpush.bf16.msrb.mxu3 %v7090_v30  ;;  %v7810_v24 = vld [vmem:[#allocation10 + $0x1b4] sm:$0xf0] }
 0x2ea   :  { %v7279_v27 = vld [vmem:[#allocation10 + $0xeb0] sm:$0xf0]  ;;  %v7930_v5 = vld [vmem:[#allocation10 + $0x574] sm:$0xf0] }
 0x2eb   :  { %v8101_v31 = vld [vmem:[#allocation10 + $0xad4] sm:$0xf]  ;;  %v7282_v11 = vor.u32 %v8221_v26, %v7279_v27  ;;  %4289 = vmatpush.bf16.msrb.mxu1 %v6514_v32  ;;  %v8002_v26 = vld [vmem:[#allocation10 + $0x7b4] sm:$0xf0] }
 0x2ec   :  { %v6799_v28 = vld [vmem:[#allocation10 + $0xaf0] sm:$0xf0]  ;;  %v6197_v58 = vld [vmem:[#allocation10 + $0x618] sm:$0xf] }
 0x2ed   :  { %v8165_v34 = vld [vmem:[#allocation10 + $0xcd4] sm:$0xf]  ;;  %v6802_v7 = vor.u32 %v8101_v31, %v6799_v28  ;;  %4328 = vmatpush.bf16.msra.mxu0 %v7282_v11  ;;  %v4073_v11 = vadd.f32 %v8820_v17, %v4060_v48  ;;  %v4061_v17 = vpop.f32.mrf.mxu3  ;;  %v7954_v60 = vld [vmem:[#allocation10 + $0x634] sm:$0xf0] }
 0x2ee   :  { %v7055_v35 = vld [vmem:[#allocation10 + $0xcf0] sm:$0xf0] }
 0x2ef   :  { %v8021_v36 = vld [vmem:[#allocation10 + $0x854] sm:$0xf]  ;;  %v7058_v42 = vor.u32 %v8165_v34, %v7055_v35  ;;  %4301 = vmatpush.bf16.msrb.mxu2 %v6802_v7  ;;  %v5909_v34 = vld [vmem:[#allocation10 + $0x3d8] sm:$0xf]  ;;  %v6390_v7 = vor.u32 %v8002_v26, %v6389_v14  ;;  %v8830_v14 = vpop.f32.mrf.mxu0 }
 0x2f0   :  { %v6479_v37 = vld [vmem:[#allocation10 + $0x870] sm:$0xf0]  ;;  %v7882_v35 = vld [vmem:[#allocation10 + $0x3f4] sm:$0xf0] }
 0x2f1   :  { %v8213_v39 = vld [vmem:[#allocation10 + $0xe54] sm:$0xf]  ;;  %v6482_v46 = vor.u32 %v8021_v36, %v6479_v37  ;;  %4314 = vmatpush.bf16.msrb.mxu3 %v7058_v42  ;;  %v5622_v36 = vor.u32 %v7810_v24, %v5621_v19  ;;  %v6165_v37 = vld [vmem:[#allocation10 + $0x5d8] sm:$0xf]  ;;  %v4048_v42 = vpop.f32.mrf.mxu2  ;;  %v4085_v19 = vpop.f32.mrf.mxu1 }
 0x2f2   :  { %v7247_v41 = vld [vmem:[#allocation10 + $0xe70] sm:$0xf0]  ;;  %v4086_v24 = vadd.f32 %v4085_v19, %v4073_v11  ;;  %v5461_v42 = vld [vmem:[#allocation10 + $0x58] sm:$0xf] }
 0x2f3   :  { %v8093_v43 = vld [vmem:[#allocation10 + $0xa94] sm:$0xf]  ;;  %v7250_v57 = vor.u32 %v8213_v39, %v7247_v41  ;;  %4290 = vmatpush.bf16.msrb.mxu1 %v6482_v46  ;;  %v5589_v41 = vld [vmem:[#allocation10 + $0x158] sm:$0xf] }
 0x2f4   :  { %v6767_v44 = vld [vmem:[#allocation10 + $0xab0] sm:$0xf0]  ;;  %v7994_v46 = vld [vmem:[#allocation10 + $0x774] sm:$0xf0] }
 0x2f5   :  { %v8157_v47 = vld [vmem:[#allocation10 + $0xc94] sm:$0xf]  ;;  %v6770_v53 = vor.u32 %v8093_v43, %v6767_v44  ;;  %4329 = vmatpush.bf16.msra.mxu0 %v7250_v57  ;;  %v5910_v44 = vor.u32 %v7882_v35, %v5909_v34  ;;  %v5590_v57 = vor.u32 %v7802_v12, %v5589_v41  ;;  %v6261_v35 = vld [vmem:[#allocation10 + $0x698] sm:$0xf] }
 0x2f6   :  { %v7023_v49 = vld [vmem:[#allocation10 + $0xcb0] sm:$0xf0]  ;;  %v7914_v41 = vld [vmem:[#allocation10 + $0x4f4] sm:$0xf0] }
 0x2f7   :  { %v8013_v50 = vld [vmem:[#allocation10 + $0x814] sm:$0xf]  ;;  %v7026_v62 = vor.u32 %v8157_v47, %v7023_v49  ;;  %4302 = vmatpush.bf16.msrb.mxu2 %v6770_v53  ;;  %v6166_v47 = vor.u32 %v7946_v16, %v6165_v37  ;;  %v5877_v49 = vld [vmem:[#allocation10 + $0x398] sm:$0xf] }
 0x2f8   :  { %v6447_v40 = vld [vmem:[#allocation10 + $0x830] sm:$0xf0]  ;;  %v7794_v53 = vld [vmem:[#allocation10 + $0x134] sm:$0xf0] }
 0x2f9   :  { %v8205_v51 = vld [vmem:[#allocation10 + $0xe14] sm:$0xf]  ;;  %v6450_v8 = vor.u32 %v8013_v50, %v6447_v40  ;;  %4315 = vmatpush.bf16.msrb.mxu3 %v7026_v62  ;;  %v7874_v50 = vld [vmem:[#allocation10 + $0x3b4] sm:$0xf0]  ;;  %v4087_v17 = vpop.f32.mrf.mxu1 }
 0x2fa   :  { %v7215_v33 = vld [vmem:[#allocation10 + $0xe30] sm:$0xf0]  ;;  %v6133_v40 = vld [vmem:[#allocation10 + $0x598] sm:$0xf]  ;;  %v5878_v54 = vor.u32 %v7874_v50, %v5877_v49 }
 0x2fb   :  { %v8085_v2 = vld [vmem:[#allocation10 + $0xa54] sm:$0xf]  ;;  %v7218_v18 = vor.u32 %v8205_v51, %v7215_v33  ;;  %4291 = vmatpush.bf16.msrb.mxu1 %v6450_v8  ;;  %v7938_v51 = vld [vmem:[#allocation10 + $0x5b4] sm:$0xf0]  ;;  %v6358_v33 = vor.u32 %v7994_v46, %v6357_v45 }
 0x2fc   :  { %v6735_v4 = vld [vmem:[#allocation10 + $0xa70] sm:$0xf0]  ;;  %v6134_v61 = vor.u32 %v7938_v51, %v6133_v40  ;;  %v5845_v62 = vld [vmem:[#allocation10 + $0x358] sm:$0xf] }
 0x2fd   :  { %v8149_v10 = vld [vmem:[#allocation10 + $0xc54] sm:$0xf]  ;;  %v6738_v22 = vor.u32 %v8085_v2, %v6735_v4  ;;  %4330 = vmatpush.bf16.msra.mxu0 %v7218_v18  ;;  %v5558_v2 = vor.u32 %v7794_v53, %v5557_v52  ;;  %v6101_v4 = vld [vmem:[#allocation10 + $0x558] sm:$0xf] }
 0x2fe   :  { %v6991_v13 = vld [vmem:[#allocation10 + $0xc70] sm:$0xf0]  ;;  %4292 = vmatmul.bf16.vlgmr.msrb.gmra.mxu1 %v8743_v63  ;;  %v5525_v8 = vld [vmem:[#allocation10 + $0xd8] sm:$0xf]  ;;  %v6102_v48 = vor.u32 %v7930_v5, %v6101_v4  ;;  %v4098_v4 = vpop.f32.mrf.mxu2 }
 0x2ff   :  { %v6994_v27 = vor.u32 %v8149_v10, %v6991_v13  ;;  %v8077_v30 = vld [vmem:[#allocation10 + $0xa14] sm:$0xf]  ;;  %4336 = vmatpush.bf16.msra.mxu1 %v5654_v9  ;;  %4303 = vmatpush.bf16.msrb.mxu2 %v6738_v22  ;;  %v7786_v10 = vld [vmem:[#allocation10 + $0xf4] sm:$0xf0]  ;;  %v5846_v13 = vor.u32 %v7866_v0, %v5845_v62 }
 0x300   :  { %v6703_v31 = vld [vmem:[#allocation10 + $0xa30] sm:$0xf0]  ;;  %4331 = vmatmul.bf16.vlgmr.msra.gmra.mxu0 %v8745_v3  ;;  %v6293_v18 = vld [vmem:[#allocation10 + $0x6d8] sm:$0xf]  ;;  %v5526_v26 = vor.u32 %v7786_v10, %v5525_v8 }
 0x301   :  { %v8141_v28 = vld [vmem:[#allocation10 + $0xc14] sm:$0xf]  ;;  %4375 = vmatpush.bf16.msrb.mxu0 %v6422_v56  ;;  %v6706_v39 = vor.u32 %v8077_v30, %v6703_v31  ;;  %4316 = vmatpush.bf16.msrb.mxu3 %v6994_v27  ;;  %v7978_v9 = vld [vmem:[#allocation10 + $0x6f4] sm:$0xf0] }
 0x302   :  { %v6959_v32 = vld [vmem:[#allocation10 + $0xc30] sm:$0xf0]  ;;  %v5813_v56 = vld [vmem:[#allocation10 + $0x318] sm:$0xf]  ;;  %v6294_v31 = vor.u32 %v7978_v9, %v6293_v18  ;;  %v4111_v18 = vpop.f32.mrf.mxu3 }
 0x303   :  { %v6962_v43 = vor.u32 %v8141_v28, %v6959_v32  ;;  %4337 = vmatpush.bf16.msra.mxu1 %v5622_v36  ;;  %4304 = vmatpush.bf16.msrb.mxu2 %v6706_v39  ;;  %v7858_v22 = vld [vmem:[#allocation10 + $0x334] sm:$0xf0] }
 0x304   :  { %v6069_v27 = vld [vmem:[#allocation10 + $0x518] sm:$0xf]  ;;  %v5814_v34 = vor.u32 %v7858_v22, %v5813_v56  ;;  %v6198_v56 = vor.u32 %v7954_v60, %v6197_v58 }
 0x305   :  { %4376 = vmatpush.bf16.msrb.mxu0 %v6390_v7  ;;  %4317 = vmatpush.bf16.msrb.mxu3 %v6962_v43  ;;  %v7922_v30 = vld [vmem:[#allocation10 + $0x534] sm:$0xf0] }
 0x306   :  { %4305 = vmatmul.bf16.vlgmr.msrb.gmra.mxu2 %v8749_v25  ;;  %v5493_v28 = vld [vmem:[#allocation10 + $0x98] sm:$0xf]  ;;  %v6070_v37 = vor.u32 %v7922_v30, %v6069_v27  ;;  %v4100_v17 = vpop.f32.mrf.mxu2 }
 0x307   :  { %4349 = vmatpush.bf16.msra.mxu2 %v5910_v44  ;;  %4338 = vmatpush.bf16.msra.mxu1 %v5590_v57  ;;  %v7778_v32 = vld [vmem:[#allocation10 + $0xb4] sm:$0xf0]  ;;  %v4126_v57 = vpop.f32.mrf.mxu0 }
 0x308   :  { %4318 = vmatmul.bf16.vlgmr.msrb.gmra.mxu3 %v8751_v29  ;;  %v7970_v36 = vld [vmem:[#allocation10 + $0x6b4] sm:$0xf0]  ;;  %v5494_v11 = vor.u32 %v7778_v32, %v5493_v28 }
 0x309   :  { %4362 = vmatpush.bf16.msra.mxu3 %v6166_v47  ;;  %4377 = vmatpush.bf16.msrb.mxu0 %v6358_v33  ;;  %v5781_v16 = vld [vmem:[#allocation10 + $0x2d8] sm:$0xf]  ;;  %v6262_v12 = vor.u32 %v7970_v36, %v6261_v35 }
 0x30a   :  { %v7850_v7 = vld [vmem:[#allocation10 + $0x2f4] sm:$0xf0]  ;;  %v4113_v57 = vpop.f32.mrf.mxu3 }
 0x30b   :  { %4350 = vmatpush.bf16.msra.mxu2 %v5878_v54  ;;  %4339 = vmatpush.bf16.msra.mxu1 %v5558_v2  ;;  %v6037_v39 = vld [vmem:[#allocation10 + $0x4d8] sm:$0xf]  ;;  %v5782_v44 = vor.u32 %v7850_v7, %v5781_v16 }
 0x30c   :  { %v7770_v43 = vld [vmem:[#allocation10 + $0x74] sm:$0xf0]  ;;  %v6038_v47 = vor.u32 %v7914_v41, %v6037_v39 }
 0x30d   :  { %4363 = vmatpush.bf16.msra.mxu3 %v6134_v61  ;;  %4378 = vmatpush.bf16.msrb.mxu0 %v6326_v1  ;;  %v6229_v45 = vld [vmem:[#allocation10 + $0x658] sm:$0xf]  ;;  %v5462_v40 = vor.u32 %v7770_v43, %v5461_v42 }
 0x30e   :  { %v7962_v46 = vld [vmem:[#allocation10 + $0x674] sm:$0xf0] }
 0x30f   :  { %4351 = vmatpush.bf16.msra.mxu2 %v5846_v13  ;;  %4340 = vmatpush.bf16.msra.mxu1 %v5526_v26  ;;  %v5749_v49 = vld [vmem:[#allocation10 + $0x298] sm:$0xf]  ;;  %v6230_v53 = vor.u32 %v7962_v46, %v6229_v45  ;;  %v4099_v13 = vadd.f32 %v4098_v4, %v4086_v24 }
 0x310   :  { %v7842_v50 = vld [vmem:[#allocation10 + $0x2b4] sm:$0xf0] }
 0x311   :  { %4364 = vmatpush.bf16.msra.mxu3 %v6102_v48  ;;  %4379 = vmatpush.bf16.msrb.mxu0 %v6294_v31  ;;  %v6005_v51 = vld [vmem:[#allocation10 + $0x498] sm:$0xf]  ;;  %v5750_v61 = vor.u32 %v7842_v50, %v5749_v49  ;;  %v4112_v27 = vadd.f32 %v4111_v18, %v4099_v13 }
 0x312   :  { %v7906_v33 = vld [vmem:[#allocation10 + $0x4b4] sm:$0xf0] }
 0x313   :  { %4352 = vmatpush.bf16.msra.mxu2 %v5814_v34  ;;  %4341 = vmatpush.bf16.msra.mxu1 %v5494_v11  ;;  %v5429_v52 = vld [vmem:[#allocation10 + $0x18] sm:$0xf]  ;;  %v6006_v5 = vor.u32 %v7906_v33, %v6005_v51  ;;  %v8833_v16 = vadd.f32 %v8830_v14, %v4112_v27 }
 0x314   :  { %v7762_v54 = vld [vmem:[#allocation10 + $0x34] sm:$0xf0] }
 0x315   :  { %4365 = vmatpush.bf16.msra.mxu3 %v6070_v37  ;;  %4380 = vmatpush.bf16.msrb.mxu0 %v6262_v12  ;;  %v6677_v62 = vld [vmem:[#allocation10 + $0x9d8] sm:$0xf]  ;;  %v5430_v9 = vor.u32 %v7762_v54, %v5429_v52  ;;  %8366 = vtanh.f32 %v8833_v16  ;;  %v8365_v16 = vpop.eup %8364 }
 0x316   :  { %v8074_v0 = vld [vmem:[#allocation10 + $0x9f4] sm:$0xf0]  ;;  %8368 = vtanh.f32 %v8797_v21 }
 0x317   :  { %4353 = vmatpush.bf16.msra.mxu2 %v5782_v44  ;;  %v7445_v2 = vld [vmem:[#allocation10 + $0xfd8] sm:$0xf]  ;;  %4342 = vmatpush.bf16.msra.mxu1 %v5462_v40  ;;  %v6678_v22 = vor.u32 %v8074_v0, %v6677_v62  ;;  %8370 = vtanh.f32 %v8814_v23 }
 0x318   :  { %v8266_v1 = vld [vmem:[#allocation10 + $0xff4] sm:$0xf0] }
 0x319   :  { %4366 = vmatpush.bf16.msra.mxu3 %v6038_v47  ;;  %v5717_v8 = vld [vmem:[#allocation10 + $0x258] sm:$0xf]  ;;  %4381 = vmatpush.bf16.msrb.mxu0 %v6230_v53  ;;  %v7446_v30 = vor.u32 %v8266_v1, %v7445_v2 }
 0x31a   :  { %v7834_v10 = vld [vmem:[#allocation10 + $0x274] sm:$0xf0] }
 0x31b   :  { %v5973_v19 = vld [vmem:[#allocation10 + $0x458] sm:$0xf]  ;;  %4354 = vmatpush.bf16.msra.mxu2 %v5750_v61  ;;  %v5718_v31 = vor.u32 %v7834_v10, %v5717_v8  ;;  %4343 = vmatpush.bf16.msra.mxu1 %v5430_v9 }
 0x31c   :  { %v7898_v48 = vld [vmem:[#allocation10 + $0x474] sm:$0xf0] }
 0x31d   :  { %v6645_v26 = vld [vmem:[#allocation10 + $0x998] sm:$0xf]  ;;  %4367 = vmatpush.bf16.msra.mxu3 %v6006_v5  ;;  %v5974_v35 = vor.u32 %v7898_v48, %v5973_v19  ;;  %4382 = vmatpush.bf16.msrb.mxu0 %v6198_v56 }
 0x31e   :  { %v8066_v28 = vld [vmem:[#allocation10 + $0x9b4] sm:$0xf0]  ;;  %4344 = vmatmul.bf16.vlgmr.msra.gmra.mxu1 %v8727_v55 }
 0x31f   :  { %v7413_v32 = vld [vmem:[#allocation10 + $0xf98] sm:$0xf]  ;;  %4388 = vmatpush.bf16.msrb.mxu1 %v6678_v22  ;;  %v6646_v41 = vor.u32 %v8066_v28, %v6645_v26  ;;  %4355 = vmatpush.bf16.msra.mxu2 %v5718_v31  ;;  %v4137_v26 = vpop.f32.mrf.mxu1  ;;  %v8839_v28 = vpop.f32.mrf.mxu0 }
 0x320   :  { %v8258_v34 = vld [vmem:[#allocation10 + $0xfb4] sm:$0xf0]  ;;  %4383 = vmatmul.bf16.vlgmr.msrb.gmra.mxu0 %v8729_v59 }
 0x321   :  { %v5685_v36 = vld [vmem:[#allocation10 + $0x218] sm:$0xf]  ;;  %4427 = vmatpush.bf16.msra.mxu0 %v7446_v30  ;;  %v7414_v43 = vor.u32 %v8258_v34, %v7413_v32  ;;  %4368 = vmatpush.bf16.msra.mxu3 %v5974_v35 }
 0x322   :  { %v7826_v24 = vld [vmem:[#allocation10 + $0x234] sm:$0xf0] }
 0x323   :  { %v5941_v37 = vld [vmem:[#allocation10 + $0x418] sm:$0xf]  ;;  %v5686_v44 = vor.u32 %v7826_v24, %v5685_v36  ;;  %4389 = vmatpush.bf16.msrb.mxu1 %v6646_v41 }
 0x324   :  { %v7890_v7 = vld [vmem:[#allocation10 + $0x434] sm:$0xf0] }
 0x325   :  { %v6933_v11 = vld [vmem:[#allocation10 + $0xbd8] sm:$0xf]  ;;  %v5942_v14 = vor.u32 %v7890_v7, %v5941_v37  ;;  %4428 = vmatpush.bf16.msra.mxu0 %v7414_v43  ;;  %4356 = vmatpush.bf16.msra.mxu2 %v5686_v44 }
 0x326   :  { %v8138_v39 = vld [vmem:[#allocation10 + $0xbf4] sm:$0xf0] }
 0x327   :  { %v7189_v12 = vld [vmem:[#allocation10 + $0xdd8] sm:$0xf]  ;;  %v6934_v47 = vor.u32 %v8138_v39, %v6933_v11  ;;  %4369 = vmatpush.bf16.msra.mxu3 %v5942_v14 }
 0x328   :  { %v8202_v42 = vld [vmem:[#allocation10 + $0xdf4] sm:$0xf0]  ;;  %4357 = vmatmul.bf16.vlgmr.msra.gmra.mxu2 %v8735_v15 }
 0x329   :  { %v6613_v45 = vld [vmem:[#allocation10 + $0x958] sm:$0xf]  ;;  %v7190_v40 = vor.u32 %v8202_v42, %v7189_v12  ;;  %4401 = vmatpush.bf16.msrb.mxu2 %v6934_v47  ;;  %v1140_v47 = vperm.slane %v8822_v38, 4 }
 0x32a   :  { %v8058_v46 = vld [vmem:[#allocation10 + $0x974] sm:$0xf0]  ;;  %4370 = vmatmul.bf16.vlgmr.msra.gmra.mxu3 %v8737_v20 }
 0x32b   :  { %v7381_v49 = vld [vmem:[#allocation10 + $0xf58] sm:$0xf]  ;;  %v6614_v52 = vor.u32 %v8058_v46, %v6613_v45  ;;  %4414 = vmatpush.bf16.msrb.mxu3 %v7190_v40  ;;  %v4139_v40 = vpop.f32.mrf.mxu1 }
 0x32c   :  { %v8250_v50 = vld [vmem:[#allocation10 + $0xf74] sm:$0xf0]  ;;  %v5591_v40 = vld [vmem:[#allocation10 + $0x178] sm:$0xf0] }
 0x32d   :  { %v6901_v51 = vld [vmem:[#allocation10 + $0xb98] sm:$0xf]  ;;  %v7382_v58 = vor.u32 %v8250_v50, %v7381_v49  ;;  %4390 = vmatpush.bf16.msrb.mxu1 %v6614_v52 }
 0x32e   :  { %v8130_v33 = vld [vmem:[#allocation10 + $0xbb4] sm:$0xf0] }
 0x32f   :  { %v7157_v53 = vld [vmem:[#allocation10 + $0xd98] sm:$0xf]  ;;  %v6902_v62 = vor.u32 %v8130_v33, %v6901_v51  ;;  %4429 = vmatpush.bf16.msra.mxu0 %v7382_v58 }
 0x330   :  { %v8194_v54 = vld [vmem:[#allocation10 + $0xdb4] sm:$0xf0] }
 0x331   :  { %v6581_v60 = vld [vmem:[#allocation10 + $0x918] sm:$0xf]  ;;  %v7158_v4 = vor.u32 %v8194_v54, %v7157_v53  ;;  %4402 = vmatpush.bf16.msrb.mxu2 %v6902_v62  ;;  %v4178_v53 = vpop.f32.mrf.mxu0 }
 0x332   :  { %v8050_v61 = vld [vmem:[#allocation10 + $0x934] sm:$0xf0]  ;;  %v7990_v53 = vld [vmem:[#allocation10 + $0x75c] sm:$0xf] }
 0x333   :  { %v7349_v0 = vld [vmem:[#allocation10 + $0xf18] sm:$0xf]  ;;  %v6582_v8 = vor.u32 %v8050_v61, %v6581_v60  ;;  %4415 = vmatpush.bf16.msrb.mxu3 %v7158_v4  ;;  %v4138_v4 = vadd.f32 %v4137_v26, %v1140_v47  ;;  %v6167_v47 = vld [vmem:[#allocation10 + $0x5f8] sm:$0xf0] }
 0x334   :  { %v8242_v2 = vld [vmem:[#allocation10 + $0xf34] sm:$0xf0] }
 0x335   :  { %v6869_v5 = vld [vmem:[#allocation10 + $0xb58] sm:$0xf]  ;;  %v7350_v18 = vor.u32 %v8242_v2, %v7349_v0  ;;  %4391 = vmatpush.bf16.msrb.mxu1 %v6582_v8  ;;  %v5655_v8 = vld [vmem:[#allocation10 + $0x1f8] sm:$0xf0] }
 0x336   :  { %v8122_v1 = vld [vmem:[#allocation10 + $0xb74] sm:$0xf0] }
 0x337   :  { %v7125_v10 = vld [vmem:[#allocation10 + $0xd58] sm:$0xf]  ;;  %v6870_v48 = vor.u32 %v8122_v1, %v6869_v5  ;;  %4430 = vmatpush.bf16.msra.mxu0 %v7350_v18  ;;  %v7814_v1 = vld [vmem:[#allocation10 + $0x1dc] sm:$0xf] }
 0x338   :  { %v8186_v13 = vld [vmem:[#allocation10 + $0xd74] sm:$0xf0]  ;;  %v5658_v26 = vor.u32 %v7814_v1, %v5655_v8  ;;  %v7982_v8 = vld [vmem:[#allocation10 + $0x71c] sm:$0xf] }
 0x339   :  { %v6549_v9 = vld [vmem:[#allocation10 + $0x8d8] sm:$0xf]  ;;  %v7126_v27 = vor.u32 %v8186_v13, %v7125_v10  ;;  %4403 = vmatpush.bf16.msrb.mxu2 %v6870_v48  ;;  %v8006_v10 = vld [vmem:[#allocation10 + $0x7dc] sm:$0xf]  ;;  %v4150_v13 = vpop.f32.mrf.mxu2 }
 0x33a   :  { %v8042_v19 = vld [vmem:[#allocation10 + $0x8f4] sm:$0xf0] }
 0x33b   :  { %v7317_v56 = vld [vmem:[#allocation10 + $0xed8] sm:$0xf]  ;;  %v6550_v32 = vor.u32 %v8042_v19, %v6549_v9  ;;  %4416 = vmatpush.bf16.msrb.mxu3 %v7126_v27  ;;  %v6423_v9 = vld [vmem:[#allocation10 + $0x7f8] sm:$0xf0] }
 0x33c   :  { %v8234_v22 = vld [vmem:[#allocation10 + $0xef4] sm:$0xf0] }
 0x33d   :  { %v6837_v30 = vld [vmem:[#allocation10 + $0xb18] sm:$0xf]  ;;  %v7318_v36 = vor.u32 %v8234_v22, %v7317_v56  ;;  %4392 = vmatpush.bf16.msrb.mxu1 %v6550_v32  ;;  %v4151_v56 = vadd.f32 %v4150_v13, %v4138_v4  ;;  %v4163_v22 = vpop.f32.mrf.mxu3  ;;  %v7790_v4 = vld [vmem:[#allocation10 + $0x11c] sm:$0xf] }
 0x33e   :  { %v8114_v31 = vld [vmem:[#allocation10 + $0xb34] sm:$0xf0] }
 0x33f   :  { %v7093_v34 = vld [vmem:[#allocation10 + $0xd18] sm:$0xf]  ;;  %v6838_v7 = vor.u32 %v8114_v31, %v6837_v30  ;;  %4431 = vmatpush.bf16.msra.mxu0 %v7318_v36  ;;  %v6426_v36 = vor.u32 %v8006_v10, %v6423_v9  ;;  %v6327_v10 = vld [vmem:[#allocation10 + $0x738] sm:$0xf0] }
 0x340   :  { %v8178_v35 = vld [vmem:[#allocation10 + $0xd34] sm:$0xf0]  ;;  %v5847_v9 = vld [vmem:[#allocation10 + $0x378] sm:$0xf0] }
 0x341   :  { %v6517_v24 = vld [vmem:[#allocation10 + $0x898] sm:$0xf]  ;;  %v7094_v41 = vor.u32 %v8178_v35, %v7093_v34  ;;  %4404 = vmatpush.bf16.msrb.mxu2 %v6838_v7  ;;  %v7806_v34 = vld [vmem:[#allocation10 + $0x19c] sm:$0xf]  ;;  %v4164_v35 = vadd.f32 %v4163_v22, %v4151_v56  ;;  %v6330_v22 = vor.u32 %v7982_v8, %v6327_v10 }
 0x342   :  { %v8034_v37 = vld [vmem:[#allocation10 + $0x8b4] sm:$0xf0]  ;;  %v7998_v7 = vld [vmem:[#allocation10 + $0x79c] sm:$0xf] }
 0x343   :  { %v7285_v11 = vld [vmem:[#allocation10 + $0xe98] sm:$0xf]  ;;  %v6518_v43 = vor.u32 %v8034_v37, %v6517_v24  ;;  %4417 = vmatpush.bf16.msrb.mxu3 %v7094_v41  ;;  %v5623_v37 = vld [vmem:[#allocation10 + $0x1b8] sm:$0xf0] }
 0x344   :  { %v8226_v39 = vld [vmem:[#allocation10 + $0xeb4] sm:$0xf0]  ;;  %v6103_v56 = vld [vmem:[#allocation10 + $0x578] sm:$0xf0] }
 0x345   :  { %v6805_v12 = vld [vmem:[#allocation10 + $0xad8] sm:$0xf]  ;;  %v7286_v46 = vor.u32 %v8226_v39, %v7285_v11  ;;  %4393 = vmatpush.bf16.msrb.mxu1 %v6518_v43  ;;  %v6391_v11 = vld [vmem:[#allocation10 + $0x7b8] sm:$0xf0] }
 0x346   :  { %v8106_v42 = vld [vmem:[#allocation10 + $0xaf4] sm:$0xf0]  ;;  %v7950_v8 = vld [vmem:[#allocation10 + $0x61c] sm:$0xf] }
 0x347   :  { %v7061_v44 = vld [vmem:[#allocation10 + $0xcd8] sm:$0xf]  ;;  %v6806_v49 = vor.u32 %v8106_v42, %v6805_v12  ;;  %4432 = vmatpush.bf16.msra.mxu0 %v7286_v46  ;;  %v4177_v46 = vadd.f32 %v8839_v28, %v4164_v35  ;;  %v4165_v28 = vpop.f32.mrf.mxu3  ;;  %v6199_v10 = vld [vmem:[#allocation10 + $0x638] sm:$0xf0] }
 0x348   :  { %v8170_v45 = vld [vmem:[#allocation10 + $0xcf4] sm:$0xf0] }
 0x349   :  { %v6485_v17 = vld [vmem:[#allocation10 + $0x858] sm:$0xf]  ;;  %v7062_v51 = vor.u32 %v8170_v45, %v7061_v44  ;;  %4405 = vmatpush.bf16.msrb.mxu2 %v6806_v49  ;;  %v7878_v44 = vld [vmem:[#allocation10 + $0x3dc] sm:$0xf]  ;;  %v6394_v49 = vor.u32 %v7998_v7, %v6391_v11  ;;  %v8847_v7 = vpop.f32.mrf.mxu0 }
 0x34a   :  { %v8026_v14 = vld [vmem:[#allocation10 + $0x874] sm:$0xf0]  ;;  %v5911_v45 = vld [vmem:[#allocation10 + $0x3f8] sm:$0xf0] }
 0x34b   :  { %v7253_v50 = vld [vmem:[#allocation10 + $0xe58] sm:$0xf]  ;;  %v6486_v54 = vor.u32 %v8026_v14, %v6485_v17  ;;  %4418 = vmatpush.bf16.msrb.mxu3 %v7062_v51  ;;  %v5626_v17 = vor.u32 %v7806_v34, %v5623_v37  ;;  %v7942_v14 = vld [vmem:[#allocation10 + $0x5dc] sm:$0xf]  ;;  %v4152_v51 = vpop.f32.mrf.mxu2  ;;  %v4189_v34 = vpop.f32.mrf.mxu1 }
 0x34c   :  { %v8218_v57 = vld [vmem:[#allocation10 + $0xe74] sm:$0xf0]  ;;  %v4190_v37 = vadd.f32 %v4189_v34, %v4177_v46  ;;  %v7766_v51 = vld [vmem:[#allocation10 + $0x5c] sm:$0xf] }
 0x34d   :  { %v6773_v33 = vld [vmem:[#allocation10 + $0xa98] sm:$0xf]  ;;  %v7254_v62 = vor.u32 %v8218_v57, %v7253_v50  ;;  %4394 = vmatpush.bf16.msrb.mxu1 %v6486_v54  ;;  %v7798_v57 = vld [vmem:[#allocation10 + $0x15c] sm:$0xf] }
 0x34e   :  { %v8098_v52 = vld [vmem:[#allocation10 + $0xab4] sm:$0xf0]  ;;  %v6359_v54 = vld [vmem:[#allocation10 + $0x778] sm:$0xf0] }
 0x34f   :  { %v7029_v58 = vld [vmem:[#allocation10 + $0xc98] sm:$0xf]  ;;  %v6774_v5 = vor.u32 %v8098_v52, %v6773_v33  ;;  %4433 = vmatpush.bf16.msra.mxu0 %v7254_v62  ;;  %v5914_v52 = vor.u32 %v7878_v44, %v5911_v45  ;;  %v5594_v62 = vor.u32 %v7798_v57, %v5591_v40  ;;  %v7966_v45 = vld [vmem:[#allocation10 + $0x69c] sm:$0xf] }
 0x350   :  { %v8162_v60 = vld [vmem:[#allocation10 + $0xcb4] sm:$0xf0]  ;;  %v6039_v57 = vld [vmem:[#allocation10 + $0x4f8] sm:$0xf0] }
 0x351   :  { %v6453_v61 = vld [vmem:[#allocation10 + $0x818] sm:$0xf]  ;;  %v7030_v18 = vor.u32 %v8162_v60, %v7029_v58  ;;  %4406 = vmatpush.bf16.msrb.mxu2 %v6774_v5  ;;  %v6170_v58 = vor.u32 %v7942_v14, %v6167_v47  ;;  %v7870_v60 = vld [vmem:[#allocation10 + $0x39c] sm:$0xf] }
 0x352   :  { %v8018_v0 = vld [vmem:[#allocation10 + $0x834] sm:$0xf0]  ;;  %v5559_v5 = vld [vmem:[#allocation10 + $0x138] sm:$0xf0] }
 0x353   :  { %v7221_v2 = vld [vmem:[#allocation10 + $0xe18] sm:$0xf]  ;;  %v6454_v27 = vor.u32 %v8018_v0, %v6453_v61  ;;  %4419 = vmatpush.bf16.msrb.mxu3 %v7030_v18  ;;  %v5879_v61 = vld [vmem:[#allocation10 + $0x3b8] sm:$0xf0]  ;;  %v4191_v28 = vpop.f32.mrf.mxu1 }
 0x354   :  { %v8210_v38 = vld [vmem:[#allocation10 + $0xe34] sm:$0xf0]  ;;  %v7934_v0 = vld [vmem:[#allocation10 + $0x59c] sm:$0xf]  ;;  %v5882_v1 = vor.u32 %v7870_v60, %v5879_v61 }
 0x355   :  { %v6741_v19 = vld [vmem:[#allocation10 + $0xa58] sm:$0xf]  ;;  %v7222_v32 = vor.u32 %v8210_v38, %v7221_v2  ;;  %4395 = vmatpush.bf16.msrb.mxu1 %v6454_v27  ;;  %v6135_v2 = vld [vmem:[#allocation10 + $0x5b8] sm:$0xf0]  ;;  %v6362_v38 = vor.u32 %v7990_v53, %v6359_v54 }
 0x356   :  { %v8090_v48 = vld [vmem:[#allocation10 + $0xa74] sm:$0xf0]  ;;  %v6138_v13 = vor.u32 %v7934_v0, %v6135_v2  ;;  %v7862_v18 = vld [vmem:[#allocation10 + $0x35c] sm:$0xf] }
 0x357   :  { %v6997_v30 = vld [vmem:[#allocation10 + $0xc58] sm:$0xf]  ;;  %v6742_v24 = vor.u32 %v8090_v48, %v6741_v19  ;;  %4434 = vmatpush.bf16.msra.mxu0 %v7222_v32  ;;  %v5562_v19 = vor.u32 %v7790_v4, %v5559_v5  ;;  %v7926_v48 = vld [vmem:[#allocation10 + $0x55c] sm:$0xf] }
 0x358   :  { %v8154_v31 = vld [vmem:[#allocation10 + $0xc74] sm:$0xf0]  ;;  %4396 = vmatmul.bf16.vlgmr.msrb.gmra.mxu1 %v8743_v63  ;;  %v7782_v27 = vld [vmem:[#allocation10 + $0xdc] sm:$0xf]  ;;  %v6106_v35 = vor.u32 %v7926_v48, %v6103_v56  ;;  %v4202_v48 = vpop.f32.mrf.mxu2 }
 0x359   :  { %v6998_v39 = vor.u32 %v8154_v31, %v6997_v30  ;;  %v6709_v41 = vld [vmem:[#allocation10 + $0xa18] sm:$0xf]  ;;  %4440 = vmatpush.bf16.msra.mxu1 %v5658_v26  ;;  %4407 = vmatpush.bf16.msrb.mxu2 %v6742_v24  ;;  %v5527_v30 = vld [vmem:[#allocation10 + $0xf8] sm:$0xf0]  ;;  %v5850_v31 = vor.u32 %v7862_v18, %v5847_v9 }
 0x35a   :  { %v8082_v12 = vld [vmem:[#allocation10 + $0xa34] sm:$0xf0]  ;;  %4435 = vmatmul.bf16.vlgmr.msra.gmra.mxu0 %v8745_v3  ;;  %v7974_v32 = vld [vmem:[#allocation10 + $0x6dc] sm:$0xf]  ;;  %v5530_v11 = vor.u32 %v7782_v27, %v5527_v30 }
 0x35b   :  { %v6965_v42 = vld [vmem:[#allocation10 + $0xc18] sm:$0xf]  ;;  %4479 = vmatpush.bf16.msrb.mxu0 %v6426_v36  ;;  %v6710_v50 = vor.u32 %v8082_v12, %v6709_v41  ;;  %4420 = vmatpush.bf16.msrb.mxu3 %v6998_v39  ;;  %v6295_v26 = vld [vmem:[#allocation10 + $0x6f8] sm:$0xf0] }
 0x35c   :  { %v8146_v43 = vld [vmem:[#allocation10 + $0xc34] sm:$0xf0]  ;;  %v7854_v36 = vld [vmem:[#allocation10 + $0x31c] sm:$0xf]  ;;  %v6298_v12 = vor.u32 %v7974_v32, %v6295_v26  ;;  %v4215_v32 = vpop.f32.mrf.mxu3 }
 0x35d   :  { %v6966_v33 = vor.u32 %v8146_v43, %v6965_v42  ;;  %4441 = vmatpush.bf16.msra.mxu1 %v5626_v17  ;;  %4408 = vmatpush.bf16.msrb.mxu2 %v6710_v50  ;;  %v5815_v24 = vld [vmem:[#allocation10 + $0x338] sm:$0xf0] }
 0x35e   :  { %v7918_v39 = vld [vmem:[#allocation10 + $0x51c] sm:$0xf]  ;;  %v5818_v44 = vor.u32 %v7854_v36, %v5815_v24  ;;  %v6202_v36 = vor.u32 %v7950_v8, %v6199_v10 }
 0x35f   :  { %4480 = vmatpush.bf16.msrb.mxu0 %v6394_v49  ;;  %4421 = vmatpush.bf16.msrb.mxu3 %v6966_v33  ;;  %v6071_v41 = vld [vmem:[#allocation10 + $0x538] sm:$0xf0] }
 0x360   :  { %4409 = vmatmul.bf16.vlgmr.msrb.gmra.mxu2 %v8749_v25  ;;  %v7774_v42 = vld [vmem:[#allocation10 + $0x9c] sm:$0xf]  ;;  %v6074_v14 = vor.u32 %v7918_v39, %v6071_v41  ;;  %v4204_v28 = vpop.f32.mrf.mxu2 }
 0x361   :  { %4453 = vmatpush.bf16.msra.mxu2 %v5914_v52  ;;  %4442 = vmatpush.bf16.msra.mxu1 %v5594_v62  ;;  %v5495_v43 = vld [vmem:[#allocation10 + $0xb8] sm:$0xf0]  ;;  %v4230_v62 = vpop.f32.mrf.mxu0 }
 0x362   :  { %4422 = vmatmul.bf16.vlgmr.msrb.gmra.mxu3 %v8751_v29  ;;  %v6263_v17 = vld [vmem:[#allocation10 + $0x6b8] sm:$0xf0]  ;;  %v5498_v46 = vor.u32 %v7774_v42, %v5495_v43 }
 0x363   :  { %4466 = vmatpush.bf16.msra.mxu3 %v6170_v58  ;;  %4481 = vmatpush.bf16.msrb.mxu0 %v6362_v38  ;;  %v7846_v47 = vld [vmem:[#allocation10 + $0x2dc] sm:$0xf]  ;;  %v6266_v40 = vor.u32 %v7966_v45, %v6263_v17 }
 0x364   :  { %v5783_v49 = vld [vmem:[#allocation10 + $0x2f8] sm:$0xf0]  ;;  %v4217_v62 = vpop.f32.mrf.mxu3 }
 0x365   :  { %4454 = vmatpush.bf16.msra.mxu2 %v5882_v1  ;;  %4443 = vmatpush.bf16.msra.mxu1 %v5562_v19  ;;  %v7910_v50 = vld [vmem:[#allocation10 + $0x4dc] sm:$0xf]  ;;  %v5786_v52 = vor.u32 %v7846_v47, %v5783_v49 }
 0x366   :  { %v5463_v33 = vld [vmem:[#allocation10 + $0x78] sm:$0xf0]  ;;  %v6042_v58 = vor.u32 %v7910_v50, %v6039_v57 }
 0x367   :  { %4467 = vmatpush.bf16.msra.mxu3 %v6138_v13  ;;  %4482 = vmatpush.bf16.msrb.mxu0 %v6330_v22  ;;  %v7958_v53 = vld [vmem:[#allocation10 + $0x65c] sm:$0xf]  ;;  %v5466_v0 = vor.u32 %v7766_v51, %v5463_v33 }
 0x368   :  { %v6231_v54 = vld [vmem:[#allocation10 + $0x678] sm:$0xf0] }
 0x369   :  { %4455 = vmatpush.bf16.msra.mxu2 %v5850_v31  ;;  %4444 = vmatpush.bf16.msra.mxu1 %v5530_v11  ;;  %v7838_v60 = vld [vmem:[#allocation10 + $0x29c] sm:$0xf]  ;;  %v6234_v5 = vor.u32 %v7958_v53, %v6231_v54  ;;  %v4203_v31 = vadd.f32 %v4202_v48, %v4190_v37 }
 0x36a   :  { %v5751_v61 = vld [vmem:[#allocation10 + $0x2b8] sm:$0xf0] }
 0x36b   :  { %4468 = vmatpush.bf16.msra.mxu3 %v6106_v35  ;;  %4483 = vmatpush.bf16.msrb.mxu0 %v6298_v12  ;;  %v7902_v2 = vld [vmem:[#allocation10 + $0x49c] sm:$0xf]  ;;  %v5754_v13 = vor.u32 %v7838_v60, %v5751_v61  ;;  %v4216_v39 = vadd.f32 %v4215_v32, %v4203_v31 }
 0x36c   :  { %v6007_v38 = vld [vmem:[#allocation10 + $0x4b8] sm:$0xf0] }
 0x36d   :  { %4456 = vmatpush.bf16.msra.mxu2 %v5818_v44  ;;  %4445 = vmatpush.bf16.msra.mxu1 %v5498_v46  ;;  %v7758_v4 = vld [vmem:[#allocation10 + $0x1c] sm:$0xf]  ;;  %v6010_v56 = vor.u32 %v7902_v2, %v6007_v38  ;;  %v8850_v47 = vadd.f32 %v8847_v7, %v4216_v39  ;;  %v8858_v39 = vpop.f32.mrf.mxu0 }
 0x36e   :  { %v5431_v1 = vld [vmem:[#allocation10 + $0x38] sm:$0xf0] }
 0x36f   :  { %4469 = vmatpush.bf16.msra.mxu3 %v6074_v14  ;;  %4484 = vmatpush.bf16.msrb.mxu0 %v6266_v40  ;;  %v8070_v18 = vld [vmem:[#allocation10 + $0x9dc] sm:$0xf]  ;;  %v5434_v26 = vor.u32 %v7758_v4, %v5431_v1  ;;  %8372 = vtanh.f32 %v8850_v47  ;;  %v8316_v47 = vld [vmem:[#allocation13 + $0x188] sm:$0xff] }
 0x370   :  { %v6679_v9 = vld [vmem:[#allocation10 + $0x9f8] sm:$0xf0] }
 0x371   :  { %4457 = vmatpush.bf16.msra.mxu2 %v5786_v52  ;;  %v8262_v19 = vld [vmem:[#allocation10 + $0xfdc] sm:$0xf]  ;;  %4446 = vmatpush.bf16.msra.mxu1 %v5466_v0  ;;  %v6682_v24 = vor.u32 %v8070_v18, %v6679_v9 }
 0x372   :  { %v7447_v22 = vld [vmem:[#allocation10 + $0xff8] sm:$0xf0] }
 0x373   :  { %4470 = vmatpush.bf16.msra.mxu3 %v6042_v58  ;;  %v7830_v27 = vld [vmem:[#allocation10 + $0x25c] sm:$0xf]  ;;  %4485 = vmatpush.bf16.msrb.mxu0 %v6234_v5  ;;  %v7450_v41 = vor.u32 %v8262_v19, %v7447_v22 }
 0x374   :  { %v5719_v30 = vld [vmem:[#allocation10 + $0x278] sm:$0xf0] }
 0x375   :  { %v7894_v34 = vld [vmem:[#allocation10 + $0x45c] sm:$0xf]  ;;  %4458 = vmatpush.bf16.msra.mxu2 %v5754_v13  ;;  %v5722_v12 = vor.u32 %v7830_v27, %v5719_v30  ;;  %4447 = vmatpush.bf16.msra.mxu1 %v5434_v26  ;;  %v4282_v62 = vpop.f32.mrf.mxu0 }
 0x376   :  { %v5975_v35 = vld [vmem:[#allocation10 + $0x478] sm:$0xf0] }
 0x377   :  { %v8062_v11 = vld [vmem:[#allocation10 + $0x99c] sm:$0xf]  ;;  %4471 = vmatpush.bf16.msra.mxu3 %v6010_v56  ;;  %v5978_v45 = vor.u32 %v7894_v34, %v5975_v35  ;;  %4486 = vmatpush.bf16.msrb.mxu0 %v6202_v36  ;;  %v8856_v36 = vpop.f32.mrf.mxu1 }
 0x378   :  { %v6647_v42 = vld [vmem:[#allocation10 + $0x9b8] sm:$0xf0]  ;;  %4448 = vmatmul.bf16.vlgmr.msra.gmra.mxu1 %v8727_v55 }
 0x379   :  { %v8254_v43 = vld [vmem:[#allocation10 + $0xf9c] sm:$0xf]  ;;  %4492 = vmatpush.bf16.msrb.mxu1 %v6682_v24  ;;  %v6650_v57 = vor.u32 %v8062_v11, %v6647_v42  ;;  %4459 = vmatpush.bf16.msra.mxu2 %v5722_v12 }
 0x37a   :  { %v7415_v44 = vld [vmem:[#allocation10 + $0xfb8] sm:$0xf0]  ;;  %4487 = vmatmul.bf16.vlgmr.msrb.gmra.mxu0 %v8729_v59 }
 0x37b   :  { %v7822_v17 = vld [vmem:[#allocation10 + $0x21c] sm:$0xf]  ;;  %4531 = vmatpush.bf16.msra.mxu0 %v7450_v41  ;;  %v7418_v33 = vor.u32 %v8254_v43, %v7415_v44  ;;  %4472 = vmatpush.bf16.msra.mxu3 %v5978_v45 }
 0x37c   :  { %v5687_v37 = vld [vmem:[#allocation10 + $0x238] sm:$0xf0] }
 0x37d   :  { %v7886_v14 = vld [vmem:[#allocation10 + $0x41c] sm:$0xf]  ;;  %v5690_v52 = vor.u32 %v7822_v17, %v5687_v37  ;;  %4493 = vmatpush.bf16.msrb.mxu1 %v6650_v57 }
 0x37e   :  { %v5943_v49 = vld [vmem:[#allocation10 + $0x438] sm:$0xf0] }
 0x37f   :  { %v8134_v46 = vld [vmem:[#allocation10 + $0xbdc] sm:$0xf]  ;;  %v5946_v7 = vor.u32 %v7886_v14, %v5943_v49  ;;  %4532 = vmatpush.bf16.msra.mxu0 %v7418_v33  ;;  %4460 = vmatpush.bf16.msra.mxu2 %v5690_v52 }
 0x380   :  { %v6935_v50 = vld [vmem:[#allocation10 + $0xbf8] sm:$0xf0] }
 0x381   :  { %v8198_v40 = vld [vmem:[#allocation10 + $0xddc] sm:$0xf]  ;;  %v6938_v58 = vor.u32 %v8134_v46, %v6935_v50  ;;  %4473 = vmatpush.bf16.msra.mxu3 %v5946_v7  ;;  %v4243_v7 = vpop.f32.mrf.mxu1 }
 0x382   :  { %v7191_v51 = vld [vmem:[#allocation10 + $0xdf8] sm:$0xf0]  ;;  %4461 = vmatmul.bf16.vlgmr.msra.gmra.mxu2 %v8735_v15  ;;  %v8286_v7 = vld [vmem:[#allocation13 + $0x98] sm:$0xff] }
 0x383   :  { %v8054_v53 = vld [vmem:[#allocation10 + $0x95c] sm:$0xf]  ;;  %v7194_v0 = vor.u32 %v8198_v40, %v7191_v51  ;;  %4505 = vmatpush.bf16.msrb.mxu2 %v6938_v58 }
 0x384   :  { %v6615_v54 = vld [vmem:[#allocation10 + $0x978] sm:$0xf0]  ;;  %4474 = vmatmul.bf16.vlgmr.msra.gmra.mxu3 %v8737_v20 }
 0x385   :  { %v8246_v60 = vld [vmem:[#allocation10 + $0xf5c] sm:$0xf]  ;;  %v6618_v4 = vor.u32 %v8054_v53, %v6615_v54  ;;  %4518 = vmatpush.bf16.msrb.mxu3 %v7194_v0 }
 0x386   :  { %v7383_v61 = vld [vmem:[#allocation10 + $0xf78] sm:$0xf0] }
 0x387   :  { %v8126_v2 = vld [vmem:[#allocation10 + $0xb9c] sm:$0xf]  ;;  %v7386_v8 = vor.u32 %v8246_v60, %v7383_v61  ;;  %4494 = vmatpush.bf16.msrb.mxu1 %v6618_v4 }
 0x388   :  { %v6903_v38 = vld [vmem:[#allocation10 + $0xbb8] sm:$0xf0] }
 0x389   :  { %v8190_v5 = vld [vmem:[#allocation10 + $0xd9c] sm:$0xf]  ;;  %v6906_v55 = vor.u32 %v8126_v2, %v6903_v38  ;;  %4533 = vmatpush.bf16.msra.mxu0 %v7386_v8 }
 0x38a   :  { %v7159_v1 = vld [vmem:[#allocation10 + $0xdb8] sm:$0xf0] }
 0x38b   :  { %v8046_v10 = vld [vmem:[#allocation10 + $0x91c] sm:$0xf]  ;;  %v7162_v19 = vor.u32 %v8190_v5, %v7159_v1  ;;  %4506 = vmatpush.bf16.msrb.mxu2 %v6906_v55  ;;  %v8860_v55 = vpop.f32.mrf.mxu2 }
 0x38c   :  { %v6583_v13 = vld [vmem:[#allocation10 + $0x938] sm:$0xf0] }
 0x38d   :  { %v8238_v18 = vld [vmem:[#allocation10 + $0xf1c] sm:$0xf]  ;;  %v6586_v56 = vor.u32 %v8046_v10, %v6583_v13  ;;  %4519 = vmatpush.bf16.msrb.mxu3 %v7162_v19 }
 0x38e   :  { %v7351_v9 = vld [vmem:[#allocation10 + $0xf38] sm:$0xf0] }
 0x38f   :  { %v8118_v59 = vld [vmem:[#allocation10 + $0xb5c] sm:$0xf]  ;;  %v7354_v30 = vor.u32 %v8238_v18, %v7351_v9  ;;  %4495 = vmatpush.bf16.msrb.mxu1 %v6586_v56 }
 0x390   :  { %v6871_v48 = vld [vmem:[#allocation10 + $0xb78] sm:$0xf0] }
 0x391   :  { %v8182_v22 = vld [vmem:[#allocation10 + $0xd5c] sm:$0xf]  ;;  %v6874_v26 = vor.u32 %v8118_v59, %v6871_v48  ;;  %4534 = vmatpush.bf16.msra.mxu0 %v7354_v30  ;;  %v8862_v59 = vpop.f32.mrf.mxu3  ;;  %v8274_v30 = vld [vmem:[#allocation13 + $0x38] sm:$0xff] }
 0x392   :  { %v7127_v27 = vld [vmem:[#allocation10 + $0xd78] sm:$0xf0] }
 0x393   :  { %v8038_v31 = vld [vmem:[#allocation10 + $0x8dc] sm:$0xf]  ;;  %v7130_v24 = vor.u32 %v8182_v22, %v7127_v27  ;;  %4507 = vmatpush.bf16.msrb.mxu2 %v6874_v26 }
 0x394   :  { %v6551_v32 = vld [vmem:[#allocation10 + $0x8f8] sm:$0xf0] }
 0x395   :  { %v8230_v34 = vld [vmem:[#allocation10 + $0xedc] sm:$0xf]  ;;  %v6554_v41 = vor.u32 %v8038_v31, %v6551_v32  ;;  %4520 = vmatpush.bf16.msrb.mxu3 %v7130_v24  ;;  %v8298_v31 = vld [vmem:[#allocation13 + $0xf8] sm:$0xff] }
 0x396   :  { %v7319_v35 = vld [vmem:[#allocation10 + $0xef8] sm:$0xf0] }
 0x397   :  { %v8110_v11 = vld [vmem:[#allocation10 + $0xb1c] sm:$0xf]  ;;  %v7322_v42 = vor.u32 %v8230_v34, %v7319_v35  ;;  %4496 = vmatpush.bf16.msrb.mxu1 %v6554_v41 }
 0x398   :  { %v6839_v15 = vld [vmem:[#allocation10 + $0xb38] sm:$0xf0] }
 0x399   :  { %v8174_v12 = vld [vmem:[#allocation10 + $0xd1c] sm:$0xf]  ;;  %v6842_v45 = vor.u32 %v8110_v11, %v6839_v15  ;;  %4535 = vmatpush.bf16.msra.mxu0 %v7322_v42 }
 0x39a   :  { %v7095_v20 = vld [vmem:[#allocation10 + $0xd38] sm:$0xf0] }
 0x39b   :  { %v8030_v43 = vld [vmem:[#allocation10 + $0x89c] sm:$0xf]  ;;  %v7098_v14 = vor.u32 %v8174_v12, %v7095_v20  ;;  %4508 = vmatpush.bf16.msrb.mxu2 %v6842_v45  ;;  %v4256_v20 = vpop.f32.mrf.mxu2  ;;  %v8290_v45 = vld [vmem:[#allocation13 + $0xb8] sm:$0xff] }
 0x39c   :  { %v6519_v44 = vld [vmem:[#allocation10 + $0x8b8] sm:$0xf0]  ;;  %v8312_v20 = vld [vmem:[#allocation13 + $0x168] sm:$0xff] }
 0x39d   :  { %v8222_v17 = vld [vmem:[#allocation10 + $0xe9c] sm:$0xf]  ;;  %v6522_v50 = vor.u32 %v8030_v43, %v6519_v44  ;;  %4521 = vmatpush.bf16.msrb.mxu3 %v7098_v14  ;;  %v8282_v43 = vld [vmem:[#allocation13 + $0x78] sm:$0xff]  ;;  %v4269_v44 = vpop.f32.mrf.mxu3 }
 0x39e   :  { %v7287_v37 = vld [vmem:[#allocation10 + $0xeb8] sm:$0xf0] }
 0x39f   :  { %v8102_v49 = vld [vmem:[#allocation10 + $0xadc] sm:$0xf]  ;;  %v7290_v51 = vor.u32 %v8222_v17, %v7287_v37  ;;  %4497 = vmatpush.bf16.msrb.mxu1 %v6522_v50  ;;  %v8272_v17 = vld [vmem:[#allocation13 + $0x28] sm:$0xff]  ;;  %v8868_v50 = vpop.f32.mrf.mxu1 }
 0x3a0   :  { %v6807_v46 = vld [vmem:[#allocation10 + $0xaf8] sm:$0xf0]  ;;  %v8296_v37 = vld [vmem:[#allocation13 + $0xe8] sm:$0xff] }
 0x3a1   :  { %v8166_v57 = vld [vmem:[#allocation10 + $0xcdc] sm:$0xf]  ;;  %v6810_v53 = vor.u32 %v8102_v49, %v6807_v46  ;;  %4536 = vmatpush.bf16.msra.mxu0 %v7290_v51  ;;  %v8295_v46 = vld [vmem:[#allocation13 + $0xe0] sm:$0xff]  ;;  %v8270_v51 = vld [vmem:[#allocation13 + $0x18] sm:$0xff] }
 0x3a2   :  { %v7063_v40 = vld [vmem:[#allocation10 + $0xcf8] sm:$0xf0] }
 0x3a3   :  { %v8022_v33 = vld [vmem:[#allocation10 + $0x85c] sm:$0xf]  ;;  %v7066_v58 = vor.u32 %v8166_v57, %v7063_v40  ;;  %4509 = vmatpush.bf16.msrb.mxu2 %v6810_v53  ;;  %v8288_v57 = vld [vmem:[#allocation13 + $0xa8] sm:$0xff]  ;;  %v8870_v40 = vpop.f32.mrf.mxu0 }
 0x3a4   :  { %v6487_v52 = vld [vmem:[#allocation10 + $0x878] sm:$0xf0] }
 0x3a5   :  { %v8214_v54 = vld [vmem:[#allocation10 + $0xe5c] sm:$0xf]  ;;  %v6490_v0 = vor.u32 %v8022_v33, %v6487_v52  ;;  %4522 = vmatpush.bf16.msrb.mxu3 %v7066_v58  ;;  %v8294_v33 = vld [vmem:[#allocation13 + $0xd8] sm:$0xff]  ;;  %v8287_v52 = vld [vmem:[#allocation13 + $0xa0] sm:$0xff] }
 0x3a6   :  { %v7255_v28 = vld [vmem:[#allocation10 + $0xe78] sm:$0xf0] }
 0x3a7   :  { %v8094_v60 = vld [vmem:[#allocation10 + $0xa9c] sm:$0xf]  ;;  %v7258_v4 = vor.u32 %v8214_v54, %v7255_v28  ;;  %4498 = vmatpush.bf16.msrb.mxu1 %v6490_v0  ;;  %v8278_v54 = vld [vmem:[#allocation13 + $0x58] sm:$0xff]  ;;  %v4295_v28 = vpop.f32.mrf.mxu1  ;;  %v8874_v0 = vpop.f32.mrf.mxu2 }
 0x3a8   :  { %v6775_v61 = vld [vmem:[#allocation10 + $0xab8] sm:$0xf0]  ;;  %v8308_v28 = vld [vmem:[#allocation13 + $0x148] sm:$0xff] }
 0x3a9   :  { %v8158_v2 = vld [vmem:[#allocation10 + $0xc9c] sm:$0xf]  ;;  %v6778_v8 = vor.u32 %v8094_v60, %v6775_v61  ;;  %4537 = vmatpush.bf16.msra.mxu0 %v7258_v4  ;;  %v8268_v60 = vld [vmem:[#allocation13 + $0x8] sm:$0xff]  ;;  %v8267_v4 = vld [vmem:[#allocation13] sm:$0xff] }
 0x3aa   :  { %v7031_v38 = vld [vmem:[#allocation10 + $0xcb8] sm:$0xf0]  ;;  %v8292_v61 = vld [vmem:[#allocation13 + $0xc8] sm:$0xff] }
 0x3ab   :  { %v8014_v5 = vld [vmem:[#allocation10 + $0x81c] sm:$0xf]  ;;  %v7034_v18 = vor.u32 %v8158_v2, %v7031_v38  ;;  %4510 = vmatpush.bf16.msrb.mxu2 %v6778_v8  ;;  %v4334_v58 = vpop.f32.mrf.mxu0  ;;  %v8876_v38 = vpop.f32.mrf.mxu3  ;;  %v8306_v8 = vld [vmem:[#allocation13 + $0x138] sm:$0xff] }
 0x3ac   :  { %v6455_v1 = vld [vmem:[#allocation10 + $0x838] sm:$0xf0]  ;;  %v8307_v58 = vld [vmem:[#allocation13 + $0x140] sm:$0xff] }
 0x3ad   :  { %v8206_v10 = vld [vmem:[#allocation10 + $0xe1c] sm:$0xf]  ;;  %v6458_v48 = vor.u32 %v8014_v5, %v6455_v1  ;;  %4523 = vmatpush.bf16.msrb.mxu3 %v7034_v18  ;;  %v8878_v5 = vld [vmem:[#allocation11] sm:$0xff]  ;;  %v8291_v1 = vld [vmem:[#allocation13 + $0xc0] sm:$0xff] }
 0x3ae   :  { %v7223_v13 = vld [vmem:[#allocation10 + $0xe38] sm:$0xf0]  ;;  %v1141_v6 = vperm.slane %v8878_v5, 5  ;;  %v8284_v18 = vld [vmem:[#allocation13 + $0x88] sm:$0xff] }
 0x3af   :  { %v8086_v9 = vld [vmem:[#allocation10 + $0xa5c] sm:$0xf]  ;;  %v7226_v27 = vor.u32 %v8206_v10, %v7223_v13  ;;  %4499 = vmatpush.bf16.msrb.mxu1 %v6458_v48  ;;  %v8276_v10 = vld [vmem:[#allocation13 + $0x48] sm:$0xff]  ;;  %v8367_v13 = vpop.eup %8366  ;;  %v4308_v21 = vpop.f32.mrf.mxu2 }
 0x3b0   :  { %v6743_v19 = vld [vmem:[#allocation10 + $0xa78] sm:$0xf0]  ;;  %v8369_v23 = vpop.eup %8368 }
 0x3b1   :  { %v8150_v56 = vld [vmem:[#allocation10 + $0xc5c] sm:$0xf]  ;;  %v6746_v32 = vor.u32 %v8086_v9, %v6743_v19  ;;  %4538 = vmatpush.bf16.msra.mxu0 %v7226_v27  ;;  %v4552_v9 = vpack.c.bf16 %v8365_v16, %v8365_v16  ;;  %v4242_v19 = vadd.f32 %v8856_v36, %v1141_v6  ;;  %v8322_v36 = vld [vmem:[#allocation13 + $0x1b8] sm:$0xff] }
 0x3b2   :  { %v6999_v22 = vld [vmem:[#allocation10 + $0xc78] sm:$0xf0]  ;;  %4500 = vmatmul.bf16.vlgmr.msrb.gmra.mxu1 %v8743_v63  ;;  %v8271_v63 = vld [vmem:[#allocation13 + $0x20] sm:$0xff] }
 0x3b3   :  { %v7002_v26 = vor.u32 %v8150_v56, %v6999_v22  ;;  %v8078_v34 = vld [vmem:[#allocation10 + $0xa1c] sm:$0xf]  ;;  %5076 = vmatpush.bf16.msra.mxu1 %v8274_v30  ;;  %4511 = vmatpush.bf16.msrb.mxu2 %v6746_v32  ;;  %v4555_v56 = vpack.c.bf16 %v8367_v13, %v8367_v13  ;;  %v8275_v22 = vld [vmem:[#allocation13 + $0x40] sm:$0xff]  ;;  %v4255_v27 = vadd.f32 %v8860_v55, %v4242_v19  ;;  %v4321_v32 = vpop.f32.mrf.mxu3 }
 0x3b4   :  { %v6711_v35 = vld [vmem:[#allocation10 + $0xa38] sm:$0xf0]  ;;  %4539 = vmatmul.bf16.vlgmr.msra.gmra.mxu0 %v8745_v3  ;;  %v8280_v3 = vld [vmem:[#allocation13 + $0x68] sm:$0xff]  ;;  %v8283_v30 = vld [vmem:[#allocation13 + $0x80] sm:$0xff] }
 0x3b5   :  { %v8142_v24 = vld [vmem:[#allocation10 + $0xc1c] sm:$0xf]  ;;  %5115 = vmatpush.bf16.msrb.mxu0 %v8298_v31  ;;  %v6714_v12 = vor.u32 %v8078_v34, %v6711_v35  ;;  %4524 = vmatpush.bf16.msrb.mxu3 %v7002_v26  ;;  %v8314_v31 = vld [vmem:[#allocation13 + $0x178] sm:$0xff]  ;;  %v8371_v26 = vpop.eup %8370  ;;  %v8304_v34 = vld [vmem:[#allocation13 + $0x128] sm:$0xff]  ;;  %v4553_v35 = vpack.c.bf16 %v8369_v23, %v8369_v23 }
 0x3b6   :  { %v6967_v11 = vld [vmem:[#allocation10 + $0xc38] sm:$0xf0]  ;;  %v4554_v55 = vpack.c.bf16 %v8371_v26, %v8371_v26  ;;  %v8328_v26 = vld [vmem:[#allocation13 + $0x1e8] sm:$0xff] }
 0x3b7   :  { %v8273_v15 = vld [vmem:[#allocation13 + $0x30] sm:$0xff]  ;;  %v6970_v42 = vor.u32 %v8142_v24, %v6967_v11  ;;  %4512 = vmatpush.bf16.msrb.mxu2 %v6714_v12  ;;  %v4268_v24 = vadd.f32 %v8862_v59, %v4255_v27  ;;  %v4384_v59 = vpop.f32.mrf.mxu0  ;;  %v8330_v27 = vld [vmem:[#allocation13 + $0x1f8] sm:$0xff] }
 0x3b8   :  { %v8297_v41 = vld [vmem:[#allocation13 + $0xf0] sm:$0xff]  ;;  %5077 = vmatpush.bf16.msra.mxu1 %v8273_v15  ;;  %v8303_v15 = vld [vmem:[#allocation13 + $0x120] sm:$0xff] }
 0x3b9   :  { %5116 = vmatpush.bf16.msrb.mxu0 %v8297_v41  ;;  %4525 = vmatpush.bf16.msrb.mxu3 %v6970_v42  ;;  %v8281_v14 = vld [vmem:[#allocation13 + $0x70] sm:$0xff]  ;;  %v4281_v12 = vadd.f32 %v8858_v39, %v4268_v24  ;;  %v4345_v42 = vpop.f32.mrf.mxu1 }
 0x3ba   :  { %v8289_v49 = vld [vmem:[#allocation13 + $0xb0] sm:$0xff]  ;;  %4513 = vmatmul.bf16.vlgmr.msrb.gmra.mxu2 %v8749_v25  ;;  %v8279_v25 = vld [vmem:[#allocation13 + $0x60] sm:$0xff] }
 0x3bb   :  { %5089 = vmatpush.bf16.msra.mxu2 %v8282_v43  ;;  %v8293_v53 = vld [vmem:[#allocation13 + $0xd0] sm:$0xff]  ;;  %v8320_v43 = vld [vmem:[#allocation13 + $0x1a8] sm:$0xff]  ;;  %v4294_v44 = vadd.f32 %v8868_v50, %v4281_v12 }
 0x3bc   :  { %5078 = vmatpush.bf16.msra.mxu1 %v8272_v17  ;;  %4526 = vmatmul.bf16.vlgmr.msrb.gmra.mxu3 %v8751_v29  ;;  %v8269_v29 = vld [vmem:[#allocation13 + $0x10] sm:$0xff]  ;;  %v8300_v50 = vld [vmem:[#allocation13 + $0x108] sm:$0xff] }
 0x3bd   :  { %5102 = vmatpush.bf16.msra.mxu3 %v8290_v45  ;;  %5117 = vmatpush.bf16.msrb.mxu0 %v8296_v37  ;;  %v8277_v62 = vld [vmem:[#allocation13 + $0x50] sm:$0xff]  ;;  %v8302_v45 = vld [vmem:[#allocation13 + $0x118] sm:$0xff]  ;;  %v4307_v17 = vadd.f32 %v8874_v0, %v4294_v44  ;;  %v8311_v37 = vld [vmem:[#allocation13 + $0x160] sm:$0xff] }
 0x3be   :  { %v8285_v2 = vld [vmem:[#allocation13 + $0x90] sm:$0xff]  ;;  %v8323_v44 = vld [vmem:[#allocation13 + $0x1c0] sm:$0xff] }
 0x3bf   :  { %5090 = vmatpush.bf16.msra.mxu2 %v8281_v14  ;;  %v8305_v48 = vld [vmem:[#allocation13 + $0x130] sm:$0xff]  ;;  %v4320_v39 = vadd.f32 %v8876_v38, %v4307_v17 }
 0x3c0   :  { %5079 = vmatpush.bf16.msra.mxu1 %v8271_v63  ;;  %v8313_v11 = vld [vmem:[#allocation13 + $0x170] sm:$0xff]  ;;  %v8310_v63 = vld [vmem:[#allocation13 + $0x158] sm:$0xff] }
 0x3c1   :  { %5103 = vmatpush.bf16.msra.mxu3 %v8289_v49  ;;  %5118 = vmatpush.bf16.msrb.mxu0 %v8295_v46  ;;  %v8321_v41 = vld [vmem:[#allocation13 + $0x1b0] sm:$0xff]  ;;  %v8319_v49 = vld [vmem:[#allocation13 + $0x1a0] sm:$0xff]  ;;  %v4347_v46 = vpop.f32.mrf.mxu1 }
 0x3c2   :  { %v8301_v14 = vld [vmem:[#allocation13 + $0x110] sm:$0xff] }
 0x3c3   :  { %5091 = vmatpush.bf16.msra.mxu2 %v8280_v3  ;;  %v4386_v3 = vpop.f32.mrf.mxu0  ;;  %v8329_v32 = vld [vmem:[#allocation13 + $0x1f0] sm:$0xff] }
 0x3c4   :  { %5080 = vmatpush.bf16.msra.mxu1 %v8270_v51  ;;  %v4333_v51 = vadd.f32 %v8870_v40, %v4320_v39  ;;  %v8325_v12 = vld [vmem:[#allocation13 + $0x1d0] sm:$0xff] }
 0x3c5   :  { %5104 = vmatpush.bf16.msra.mxu3 %v8288_v57  ;;  %5119 = vmatpush.bf16.msrb.mxu0 %v8294_v33  ;;  %v8318_v57 = vld [vmem:[#allocation13 + $0x198] sm:$0xff]  ;;  %v8309_v33 = vld [vmem:[#allocation13 + $0x150] sm:$0xff] }
 0x3c6   :  { %8374 = vtanh.f32 %v4333_v51 }
 0x3c7   :  { %5092 = vmatpush.bf16.msra.mxu2 %v8279_v25  ;;  %v4358_v25 = vpop.f32.mrf.mxu2 }
 0x3c8   :  { %5081 = vmatpush.bf16.msra.mxu1 %v8269_v29  ;;  %v8299_v29 = vld [vmem:[#allocation13 + $0x100] sm:$0xff] }
 0x3c9   :  { %5105 = vmatpush.bf16.msra.mxu3 %v8287_v52  ;;  %5120 = vmatpush.bf16.msrb.mxu0 %v8293_v53  ;;  %v4371_v52 = vpop.f32.mrf.mxu3  ;;  %v8317_v53 = vld [vmem:[#allocation13 + $0x190] sm:$0xff] }
 0x3cb   :  { %5093 = vmatpush.bf16.msra.mxu2 %v8278_v54  ;;  %v8373_v54 = vpop.eup %8372 }
 0x3cc   :  { %5082 = vmatpush.bf16.msra.mxu1 %v8268_v60  ;;  %v8375_v40 = vpop.eup %8374 }
 0x3cd   :  { %5106 = vmatpush.bf16.msra.mxu3 %v8286_v7  ;;  %5121 = vmatpush.bf16.msrb.mxu0 %v8292_v61  ;;  %v4556_v7 = vpack.c.bf16 %v8373_v54, %v8373_v54  ;;  %v4557_v0 = vpack.c.bf16 %v8375_v40, %v8375_v40 }
 0x3cf   :  { %5094 = vmatpush.bf16.msra.mxu2 %v8277_v62  ;;  %v4360_v60 = vpop.f32.mrf.mxu2  ;;  %v8315_v62 = vld [vmem:[#allocation13 + $0x180] sm:$0xff] }
 0x3d0   :  { %5083 = vmatpush.bf16.msra.mxu1 %v8267_v4 }
 0x3d1   :  { %5107 = vmatpush.bf16.msra.mxu3 %v8285_v2  ;;  %5122 = vmatpush.bf16.msrb.mxu0 %v8291_v1  ;;  %v4373_v61 = vpop.f32.mrf.mxu3  ;;  %v1142_v2 = vperm.slane %v8878_v5, 6 }
 0x3d3   :  { %5095 = vmatpush.bf16.msra.mxu2 %v8276_v10  ;;  %5084 = vmatmul.bf16.vlgmr.msra.gmra.mxu1 %v4552_v9  ;;  %v4346_v38 = vadd.f32 %v4345_v42, %v1142_v2 }
 0x3d4   :  { %5128 = vmatpush.bf16.msrb.mxu1 %v8306_v8  ;;  %5123 = vmatmul.bf16.vlgmr.msrb.gmra.mxu0 %v4555_v56 }
 0x3d5   :  { %5108 = vmatpush.bf16.msra.mxu3 %v8284_v18  ;;  %v4397_v4 = vpop.f32.mrf.mxu1  ;;  %v4359_v6 = vadd.f32 %v4358_v25, %v4346_v38  ;;  %5167 = vmatpush.bf16.msra.mxu0 %v8330_v27 }
 0x3d7   :  { %5096 = vmatpush.bf16.msra.mxu2 %v8275_v22  ;;  %v4436_v1 = vpop.f32.mrf.mxu0  ;;  %v4372_v8 = vadd.f32 %v4371_v52, %v4359_v6 }
 0x3d8   :  { %5129 = vmatpush.bf16.msrb.mxu1 %v8305_v48 }
 0x3d9   :  { %5109 = vmatpush.bf16.msra.mxu3 %v8283_v30  ;;  %v4385_v10 = vadd.f32 %v4384_v59, %v4372_v8  ;;  %5168 = vmatpush.bf16.msra.mxu0 %v8329_v32  ;;  %v1143_v59 = vperm.slane %v8878_v5, 7 }
 0x3da   :  { %5097 = vmatmul.bf16.vlgmr.msra.gmra.mxu2 %v4553_v35  ;;  %v8327_v35 = vld [vmem:[#allocation13 + $0x1e0] sm:$0xff] }
 0x3db   :  { %5141 = vmatpush.bf16.msrb.mxu2 %v8314_v31  ;;  %v4398_v18 = vadd.f32 %v4397_v4, %v4385_v10 }
 0x3dc   :  { %5130 = vmatpush.bf16.msrb.mxu1 %v8304_v34  ;;  %5110 = vmatmul.bf16.vlgmr.msra.gmra.mxu3 %v4554_v55  ;;  %v8326_v55 = vld [vmem:[#allocation13 + $0x1d8] sm:$0xff] }
 0x3dd   :  { %5154 = vmatpush.bf16.msrb.mxu3 %v8322_v36  ;;  %v4399_v16 = vpop.f32.mrf.mxu1  ;;  %5169 = vmatpush.bf16.msra.mxu0 %v8328_v26 }
 0x3df   :  { %5142 = vmatpush.bf16.msrb.mxu2 %v8313_v11  ;;  %v4438_v13 = vpop.f32.mrf.mxu0 }
 0x3e0   :  { %5131 = vmatpush.bf16.msrb.mxu1 %v8303_v15 }
 0x3e1   :  { %5155 = vmatpush.bf16.msrb.mxu3 %v8321_v41  ;;  %5170 = vmatpush.bf16.msra.mxu0 %v8327_v35 }
 0x3e3   :  { %5143 = vmatpush.bf16.msrb.mxu2 %v8312_v20  ;;  %v4410_v9 = vpop.f32.mrf.mxu2  ;;  %v8324_v20 = vld [vmem:[#allocation13 + $0x1c8] sm:$0xff] }
 0x3e4   :  { %5132 = vmatpush.bf16.msrb.mxu1 %v8302_v45  ;;  %v4411_v19 = vadd.f32 %v4410_v9, %v4398_v18 }
 0x3e5   :  { %5156 = vmatpush.bf16.msrb.mxu3 %v8320_v43  ;;  %v4423_v48 = vpop.f32.mrf.mxu3  ;;  %5171 = vmatpush.bf16.msra.mxu0 %v8326_v55 }
 0x3e6   :  { %v4424_v56 = vadd.f32 %v4423_v48, %v4411_v19 }
 0x3e7   :  { %5144 = vmatpush.bf16.msrb.mxu2 %v8311_v37 }
 0x3e8   :  { %5133 = vmatpush.bf16.msrb.mxu1 %v8301_v14  ;;  %v4437_v22 = vadd.f32 %v4436_v1, %v4424_v56 }
 0x3e9   :  { %5157 = vmatpush.bf16.msrb.mxu3 %v8319_v49  ;;  %5172 = vmatpush.bf16.msra.mxu0 %v8325_v12 }
 0x3ea   :  { %8376 = vtanh.f32 %v4437_v22 }
 0x3eb   :  { %5145 = vmatpush.bf16.msrb.mxu2 %v8310_v63  ;;  %v4412_v21 = vpop.f32.mrf.mxu2 }
 0x3ec   :  { %5134 = vmatpush.bf16.msrb.mxu1 %v8300_v50 }
 0x3ed   :  { %5158 = vmatpush.bf16.msrb.mxu3 %v8318_v57  ;;  %v4425_v30 = vpop.f32.mrf.mxu3  ;;  %5173 = vmatpush.bf16.msra.mxu0 %v8324_v20 }
 0x3ef   :  { %5146 = vmatpush.bf16.msrb.mxu2 %v8309_v33 }
 0x3f0   :  { %5135 = vmatpush.bf16.msrb.mxu1 %v8299_v29  ;;  %v8377_v31 = vpop.eup %8376 }
 0x3f1   :  { %5159 = vmatpush.bf16.msrb.mxu3 %v8317_v53  ;;  %v4558_v23 = vpack.c.bf16 %v8377_v31, %v8377_v31  ;;  %5174 = vmatpush.bf16.msra.mxu0 %v8323_v44 }
 0x3f3   :  { %5147 = vmatpush.bf16.msrb.mxu2 %v8308_v28  ;;  %5136 = vmatmul.bf16.vlgmr.msrb.gmra.mxu1 %v4556_v7 }
 0x3f5   :  { %5160 = vmatpush.bf16.msrb.mxu3 %v8316_v47  ;;  %v4449_v34 = vpop.f32.mrf.mxu1  ;;  %v8347_v47 = vld [vmem:[#allocation14] ss:$0 sm:$0xff] }
 0x3f6   :  { %v4450_v45 = vadd.f32 %v4449_v34, %v1143_v59 }
 0x3f7   :  { %5148 = vmatpush.bf16.msrb.mxu2 %v8307_v58  ;;  %v4488_v36 = vpop.f32.mrf.mxu0 }
 0x3f9   :  { %5161 = vmatpush.bf16.msrb.mxu3 %v8315_v62 }
 0x3fa   :  { %5149 = vmatmul.bf16.vlgmr.msrb.gmra.mxu2 %v4557_v0 }
 0x3fc   :  { %5162 = vmatmul.bf16.vlgmr.msrb.gmra.mxu3 %v4558_v23 }
 0x3fd   :  { %v4451_v24 = vpop.f32.mrf.mxu1 }
 0x3ff   :  { %v4490_v11 = vpop.f32.mrf.mxu0 }
 0x405   :  { %v4462_v15 = vpop.f32.mrf.mxu2 }
 0x406   :  { %v4463_v37 = vadd.f32 %v4462_v15, %v4450_v45 }
 0x407   :  { %v4475_v41 = vpop.f32.mrf.mxu3 }
 0x408   :  { %v4476_v49 = vadd.f32 %v4475_v41, %v4463_v37 }
 0x40a   :  { %v4489_v63 = vadd.f32 %v4488_v36, %v4476_v49 }
 0x40d   :  { %v4464_v42 = vpop.f32.mrf.mxu2 }
 0x40f   :  { %v4477_v43 = vpop.f32.mrf.mxu3 }
 0x42f   :  { %v4501_v17 = vpop.f32.mrf.mxu1 }
 0x430   :  { %v4502_v3 = vadd.f32 %v4501_v17, %v4489_v63 }
 0x431   :  { %v4540_v14 = vpop.f32.mrf.mxu0 }
 0x437   :  { %v4503_v39 = vpop.f32.mrf.mxu1 }
 0x439   :  { %v4542_v46 = vpop.f32.mrf.mxu0 }
 0x43d   :  { %v4514_v50 = vpop.f32.mrf.mxu2 }
 0x43e   :  { %v4515_v57 = vadd.f32 %v4514_v50, %v4502_v3 }
 0x43f   :  { %v4527_v51 = vpop.f32.mrf.mxu3 }
 0x440   :  { %v4528_v33 = vadd.f32 %v4527_v51, %v4515_v57 }
 0x442   :  { %v4541_v25 = vadd.f32 %v4540_v14, %v4528_v33 }
 0x444   :  { %8378 = vtanh.f32 %v4541_v25 }
 0x445   :  { %v4516_v52 = vpop.f32.mrf.mxu2 }
 0x447   :  { %v4529_v29 = vpop.f32.mrf.mxu3 }
 0x44a   :  { %v8379_v53 = vpop.eup %8378 }
 0x44b   :  { %v4559_v54 = vpack.c.bf16 %v8379_v53, %v8379_v53 }
 0x44d   :  { %5175 = vmatmul.bf16.vlgmr.msra.gmra.mxu0 %v4559_v54 }
 0x450   :  { %v5085_v5 = vpop.f32.mrf.mxu1 }
 0x451   :  { %v5124_v28 = vpop.f32.mrf.mxu0  ;;  %v5086_v60 = vadd.f32 %v8347_v47, %v5085_v5 }
 0x458   :  { %v5087_v7 = vpop.f32.mrf.mxu1 }
 0x459   :  { %v5126_v58 = vpop.f32.mrf.mxu0 }
 0x45d   :  { %v5098_v40 = vpop.f32.mrf.mxu2 }
 0x45e   :  { %v5099_v61 = vadd.f32 %v5098_v40, %v5086_v60 }
 0x45f   :  { %v5111_v62 = vpop.f32.mrf.mxu3 }
 0x460   :  { %v5112_v0 = vadd.f32 %v5111_v62, %v5099_v61 }
 0x462   :  { %v5125_v2 = vadd.f32 %v5124_v28, %v5112_v0 }
 0x465   :  { %v5100_v38 = vpop.f32.mrf.mxu2 }
 0x467   :  { %v5113_v4 = vpop.f32.mrf.mxu3 }
 0x470   :  { %v5137_v6 = vpop.f32.mrf.mxu1 }
 0x471   :  { %v5138_v1 = vadd.f32 %v5137_v6, %v5125_v2 }
 0x478   :  { %v5139_v8 = vpop.f32.mrf.mxu1 }
 0x47d   :  { %v5150_v16 = vpop.f32.mrf.mxu2 }
 0x47e   :  { %v5151_v10 = vadd.f32 %v5150_v16, %v5138_v1 }
 0x47f   :  { %v5163_v18 = vpop.f32.mrf.mxu3 }
 0x480   :  { %v5164_v19 = vadd.f32 %v5163_v18, %v5151_v10 }
 0x485   :  { %v5152_v13 = vpop.f32.mrf.mxu2 }
 0x487   :  { %v5165_v9 = vpop.f32.mrf.mxu3 }
 0x4ca   :  { %v5176_v48 = vpop.f32.mrf.mxu0 }
 0x4cb   :  { %v5177_v56 = vadd.f32 %v5176_v48, %v5164_v19 }
 0x4cd   :  { %5180 = vst [vmem:[#allocation16] sm:$0x3] %v5177_v56 }
 0x4ce   :  { %5191 = dma.vmem_to_hbm [thread:$0]  %s5187_s26, 32, %s5189_s29, [#allocation4]  }
 0x4d2   :  { %v5178_v22 = vpop.f32.mrf.mxu0 }
 0x4d3   :  { %8608 = dma.done.wait [#allocation4], 32  }
 0x4d4   :  { %8609 = vsyncadd [#allocation4], 4294967264 }
 0x4d5   :  { %5196 = vsyncpa [#allocation3], 1 }
 0x4d6   :  { %5197 = vsyncpa [#allocation6], 1 }
 0x4d7   :  { %5198 = vsyncpa [#allocation9], 1 }
 0x4d8   :  { %5199 = vsyncpa [#allocation12], 1 }
 0x4d9   :  { %5200 = vsyncpa [#allocation15], 1 }
 0x4da   :  { %5201 = vsyncpa [#allocation4], 1 }

</bundles_post_ra>
